<compile_context>
chip_gen: v6e
topology: v6e:2x2x1
jax: 0.10.0
libtpu: 0.0.40
codegen_flags: <defaults>
</compile_context>

<pallas_src>
import jax
import jax.numpy as jnp
from jax.experimental import pallas as pl
from jax.experimental.pallas import tpu as pltpu

BATCH_TILE = 8  # images per grid step -> conv matmuls at M = 8*32 = 256


# ------------------------------ fused kernel ------------------------------- #

def _lenet_kernel(x_ref, w1_ref, b1_ref, e1_ref, w2_ref, b2_ref,
                  wf1_ref, bf1_ref, e3_ref, wf2_ref, bf2_ref, wf3_ref, bf3_ref,
                  out_ref):
    f32, bf16 = jnp.float32, jnp.bfloat16

    x = x_ref[...]                                     # (B*32, 96) bf16
    r1 = x.shape[0]

    # ---- conv1: 5 banded matmuls on the full slab, realigned with rolls.
    #      pltpu.roll(v, (r - i) % r, 0)[row] == v[row + i]  (jnp.roll semantics)
    acc1 = jnp.dot(x, w1_ref[0], preferred_element_type=f32)        # (r1, 256)
    for i in range(1, 5):
        part = jnp.dot(x, w1_ref[i], preferred_element_type=f32)
        acc1 = acc1 + pltpu.roll(part, (r1 - i) % r1, axis=0)
    # width pool = max of even/odd 128-lane halves; bias shared per channel.
    yw = jnp.maximum(jnp.maximum(acc1[:, :128], acc1[:, 128:]) + b1_ref[...], 0.0)

    # ---- height pool 1 + per-image row compaction (precomputed 0/1 matmul).
    m1 = jnp.maximum(yw, pltpu.roll(yw, r1 - 1, axis=0)).astype(bf16)
    p1 = jnp.dot(e1_ref[...], m1, preferred_element_type=f32).astype(bf16)  # (B*14,128)
    r2 = p1.shape[0]

    # ---- conv2 (same banded scheme; K padded to 128, even/odd merged to 256).
    acc2 = jnp.dot(p1, w2_ref[0], preferred_element_type=f32)       # (r2, 256)
    for i in range(1, 5):
        part = jnp.dot(p1, w2_ref[i], preferred_element_type=f32)
        acc2 = acc2 + pltpu.roll(part, (r2 - i) % r2, axis=0)
    zw = jnp.maximum(jnp.maximum(acc2[:, :128], acc2[:, 128:]) + b2_ref[...], 0.0)

    # ---- height pool 2 (pooled row h of image b lives at slab row b*14 + 2h).
    m2 = jnp.maximum(zw, pltpu.roll(zw, r2 - 1, axis=0)).astype(bf16)

    # ---- fc1 with the PyTorch (c,h,w) flatten folded into per-row weights.
    accf = jnp.dot(m2, wf1_ref[0], preferred_element_type=f32)      # (r2, 128)
    for h in range(1, 5):
        part = jnp.dot(m2, wf1_ref[h], preferred_element_type=f32)
        accf = accf + pltpu.roll(part, (r2 - 2 * h) % r2, axis=0)
    z1 = jnp.maximum(accf + bf1_ref[...], 0.0)                      # valid at rows b*14

    # ---- compact to one row per image, then fc2 / fc3 (all lane-padded to 128).
    z1c = jnp.dot(e3_ref[...], z1.astype(bf16), preferred_element_type=f32)   # (B, 128)
    z2 = jnp.maximum(jnp.dot(z1c.astype(bf16), wf2_ref[...],
                             preferred_element_type=f32) + bf2_ref[...], 0.0)
    z3 = jnp.dot(z2.astype(bf16), wf3_ref[...],
                 preferred_element_type=f32) + bf3_ref[...]
    out_ref[...] = z3                                               # (B, 128) lane-dense


# --------------------------- weight pre-packing ----------------------------- #

def _conv_bands_merged(w, in_w, out_w, k_pad):
    """Conv weight (O,Cin,KH,KW) -> KH band matrices (k_pad, 256).

    Band i satisfies  conv_out[h, wo*O + o] = sum_i x2d[h+i, :] @ band[i]
    for x2d[h, w*Cin + c];  even output columns land in lanes [0, half),
    odd in lanes [128, 128+half), everything else zero (lane-aligned split).
    """
    O, C, KH, KW = w.shape
    wt = jnp.transpose(w, (2, 3, 1, 0))                                  # (i, j, c, o)
    sel = (jnp.arange(in_w)[None, :, None] ==
           (jnp.arange(out_w)[None, None, :] + jnp.arange(KW)[:, None, None]))
    band = jnp.einsum('jJw,ijco->iJcwo', sel.astype(w.dtype), wt)        # (KH,in_w,C,out_w,O)
    band = band.reshape(KH, in_w * C, out_w, O)
    half = (out_w // 2) * O
    be = band[:, :, 0::2, :].reshape(KH, in_w * C, half)
    bo = band[:, :, 1::2, :].reshape(KH, in_w * C, half)
    merged = jnp.zeros((KH, k_pad, 256), jnp.float32)
    merged = merged.at[:, :in_w * C, :half].set(be)
    merged = merged.at[:, :in_w * C, 128:128 + half].set(bo)
    return merged.astype(jnp.bfloat16)


def _row_select(b, rows_in, rows_out, stride):
    """0/1 compaction matrix: E[i*rows_out + r, i*rows_in + stride*r] = 1."""
    out_idx = jnp.arange(b * rows_out)
    img = out_idx // rows_out
    r = out_idx % rows_out
    src = img * rows_in + stride * r
    return (jnp.arange(b * rows_in)[None, :] == src[:, None]).astype(jnp.bfloat16)


def _pad2(m, rows, cols):
    return jnp.zeros((rows, cols), jnp.float32).at[:m.shape[0], :m.shape[1]].set(m)


def prepare_params(params, batch_tile=BATCH_TILE):
    """One-time layout prep: merged conv bands, pool selectors, padded FC weights."""
    b = batch_tile
    # fc1 input columns permuted from PyTorch (c,h,w) flatten to our (h, w, c) order
    wf1 = params['fc1_w'].reshape(120, 16, 5, 5).transpose(2, 3, 1, 0).reshape(5, 80, 120)
    wf1p = jnp.zeros((5, 128, 128), jnp.float32).at[:, :80, :120].set(wf1)
    return dict(
        w1=_conv_bands_merged(params['conv1_w'], 32, 28, 96),    # (5, 96, 256) bf16
        b1=_pad2(jnp.tile(params['conv1_b'], 14)[None, :], 1, 128),
        e1=_row_select(b, 32, 14, 2),                            # (B*14, B*32) bf16
        w2=_conv_bands_merged(params['conv2_w'], 14, 10, 128),   # (5, 128, 256) bf16
        b2=_pad2(jnp.tile(params['conv2_b'], 5)[None, :], 1, 128),
        wf1=wf1p.astype(jnp.bfloat16),                           # (5, 128, 128) bf16
        bf1=_pad2(params['fc1_b'][None, :], 1, 128),
        e3=_row_select(b, 14, 1, 1),                             # (B, B*14) bf16
        wf2=_pad2(params['fc2_w'].T, 128, 128).astype(jnp.bfloat16),
        bf2=_pad2(params['fc2_b'][None, :], 1, 128),
        wf3=_pad2(params['fc3_w'].T, 128, 128).astype(jnp.bfloat16),
        bf3=_pad2(params['fc3_b'][None, :], 1, 128),
    )


# --------------------------------- forward ---------------------------------- #

@jax.jit
def forward(prepped, x_nchw):
    p = prepped
    B = p['e3'].shape[0]                      # batch tile (static)
    N = x_nchw.shape[0]
    n_pad = (-N) % B
    Np = N + n_pad

    # NCHW -> per-image (H, W*C) rows, stacked into one (Np*32, 96) bf16 slab.
    x2d = jnp.transpose(x_nchw, (0, 2, 3, 1)).reshape(N, 32, 96).astype(jnp.bfloat16)
    if n_pad:
        x2d = jnp.pad(x2d, ((0, n_pad), (0, 0), (0, 0)))
    x2d = x2d.reshape(Np * 32, 96)

    def full(*shape):
        return pl.BlockSpec(shape, lambda n, _s=len(shape): (0,) * _s)

    out = pl.pallas_call(
        _lenet_kernel,
        out_shape=jax.ShapeDtypeStruct((Np, 128), jnp.float32),
        grid=(Np // B,),
        in_specs=[
            pl.BlockSpec((B * 32, 96), lambda n: (n, 0)),        # x slab per tile
            full(5, 96, 256), full(1, 128), full(B * 14, B * 32),  # conv1 + pool1 sel
            full(5, 128, 256), full(1, 128),                       # conv2
            full(5, 128, 128), full(1, 128), full(B, B * 14),      # fc1 + final sel
            full(128, 128), full(1, 128),                          # fc2
            full(128, 128), full(1, 128),                          # fc3
        ],
        out_specs=pl.BlockSpec((B, 128), lambda n: (n, 0)),
        compiler_params=pltpu.CompilerParams(
            dimension_semantics=("parallel",)),
    )(x2d, p['w1'], p['b1'], p['e1'], p['w2'], p['b2'],
      p['wf1'], p['bf1'], p['e3'], p['wf2'], p['bf2'], p['wf3'], p['bf3'])
    return out[:N, :10]


# ------------------------------ init & reference ---------------------------- #

def init_params(key):
    """Deterministic init mimicking PyTorch's default uniform(-1/sqrt(fan_in), ...)."""
    def uni(k, shape, fan_in):
        bound = 1.0 / float(fan_in) ** 0.5
        return jax.random.uniform(k, shape, jnp.float32, -bound, bound)

    ks = jax.random.split(key, 10)
    return {
        'conv1_w': uni(ks[0], (6, 3, 5, 5), 3 * 5 * 5),
        'conv1_b': uni(ks[1], (6,), 3 * 5 * 5),
        'conv2_w': uni(ks[2], (16, 6, 5, 5), 6 * 5 * 5),
        'conv2_b': uni(ks[3], (16,), 6 * 5 * 5),
        'fc1_w':   uni(ks[4], (120, 400), 400),   # PyTorch (out, in) layout
        'fc1_b':   uni(ks[5], (120,), 400),
        'fc2_w':   uni(ks[6], (64, 120), 120),
        'fc2_b':   uni(ks[7], (64,), 120),
        'fc3_w':   uni(ks[8], (10, 64), 64),
        'fc3_b':   uni(ks[9], (10,), 64),
    }


def _reference_forward(params, x):
    """Pure-JAX (XLA) reference of the PyTorch module, for validation only."""
    def conv(x, w, b):
        dn = jax.lax.conv_dimension_numbers(x.shape, w.shape, ('NCHW', 'OIHW', 'NCHW'))
        y = jax.lax.conv_general_dilated(x, w, (1, 1), 'VALID', dimension_numbers=dn)
        return jax.nn.relu(y + b[None, :, None, None])

    def pool(x):
        return jax.lax.reduce_window(x, -jnp.inf, jax.lax.max,
                                     (1, 1, 2, 2), (1, 1, 2, 2), 'VALID')

    x = pool(conv(x, params['conv1_w'], params['conv1_b']))
    x = pool(conv(x, params['conv2_w'], params['conv2_b']))
    x = x.reshape(x.shape[0], -1)
    x = jax.nn.relu(x @ params['fc1_w'].T + params['fc1_b'])
    x = jax.nn.relu(x @ params['fc2_w'].T + params['fc2_b'])
    return x @ params['fc3_w'].T + params['fc3_b']


if __name__ == "__main__":
    # Spatial size 32 is implied by fc1's 16*5*5 input (32 -> 28 -> 14 -> 10 -> 5).
    N = 16                                      # 2 grid steps of 8 images each
    x = jax.random.normal(jax.random.PRNGKey(0), (N, 3, 32, 32), jnp.float32)
    params = init_params(jax.random.PRNGKey(42))

    prepped = prepare_params(params)            # one-time weight layout prep
    out = jax.block_until_ready(forward(prepped, x))

    assert out.shape == (N, 10), out.shape
    assert out.dtype == jnp.float32
    assert bool(jnp.all(jnp.isfinite(out)))

    ref = _reference_forward(params, x)
    max_err = float(jnp.max(jnp.abs(out - ref)))
    assert bool(jnp.allclose(out, ref, atol=5e-2, rtol=5e-2)), max_err

    print("KERNEL_OK")
</pallas_src>

<mosaic_0001>
module attributes {stable_mosaic.version = 11 : i64} {
  func.func @_lenet_kernel(%arg0: i32, %arg1: memref<256x96xbf16, #tpu.memory_space<vmem>>, %arg2: memref<5x96x256xbf16, #tpu.memory_space<vmem>>, %arg3: memref<1x128xf32, #tpu.memory_space<vmem>>, %arg4: memref<112x256xbf16, #tpu.memory_space<vmem>>, %arg5: memref<5x128x256xbf16, #tpu.memory_space<vmem>>, %arg6: memref<1x128xf32, #tpu.memory_space<vmem>>, %arg7: memref<5x128x128xbf16, #tpu.memory_space<vmem>>, %arg8: memref<1x128xf32, #tpu.memory_space<vmem>>, %arg9: memref<8x112xbf16, #tpu.memory_space<vmem>>, %arg10: memref<128x128xbf16, #tpu.memory_space<vmem>>, %arg11: memref<1x128xf32, #tpu.memory_space<vmem>>, %arg12: memref<128x128xbf16, #tpu.memory_space<vmem>>, %arg13: memref<1x128xf32, #tpu.memory_space<vmem>>, %arg14: memref<8x128xf32, #tpu.memory_space<vmem>>) attributes {dimension_semantics = [#tpu.dimension_semantics<parallel>], iteration_bounds = array<i64: 2>, scalar_prefetch = 0 : i64, scratch_operands = 0 : i64, tpu.core_type = #tpu.core_type<tc>, window_params = [{transform_indices = @transform_0, window_bounds = array<i64: 256, 96>}, {pipeline_mode = #tpu.pipeline_mode<synchronous>, transform_indices = @transform_1, window_bounds = array<i64: 5, 96, 256>}, {pipeline_mode = #tpu.pipeline_mode<synchronous>, transform_indices = @transform_2, window_bounds = array<i64: 1, 128>}, {pipeline_mode = #tpu.pipeline_mode<synchronous>, transform_indices = @transform_3, window_bounds = array<i64: 112, 256>}, {pipeline_mode = #tpu.pipeline_mode<synchronous>, transform_indices = @transform_4, window_bounds = array<i64: 5, 128, 256>}, {pipeline_mode = #tpu.pipeline_mode<synchronous>, transform_indices = @transform_5, window_bounds = array<i64: 1, 128>}, {pipeline_mode = #tpu.pipeline_mode<synchronous>, transform_indices = @transform_6, window_bounds = array<i64: 5, 128, 128>}, {pipeline_mode = #tpu.pipeline_mode<synchronous>, transform_indices = @transform_7, window_bounds = array<i64: 1, 128>}, {pipeline_mode = #tpu.pipeline_mode<synchronous>, transform_indices = @transform_8, window_bounds = array<i64: 8, 112>}, {pipeline_mode = #tpu.pipeline_mode<synchronous>, transform_indices = @transform_9, window_bounds = array<i64: 128, 128>}, {pipeline_mode = #tpu.pipeline_mode<synchronous>, transform_indices = @transform_10, window_bounds = array<i64: 1, 128>}, {pipeline_mode = #tpu.pipeline_mode<synchronous>, transform_indices = @transform_11, window_bounds = array<i64: 128, 128>}, {pipeline_mode = #tpu.pipeline_mode<synchronous>, transform_indices = @transform_12, window_bounds = array<i64: 1, 128>}, {transform_indices = @transform_13, window_bounds = array<i64: 8, 128>}]} {
    %c0 = arith.constant 0 : index
    %c0_0 = arith.constant 0 : index
    %0 = vector.load %arg1[%c0, %c0_0] : memref<256x96xbf16, #tpu.memory_space<vmem>>, vector<256x96xbf16>
    %c0_1 = arith.constant 0 : index
    %c0_2 = arith.constant 0 : index
    %c0_3 = arith.constant 0 : index
    %1 = vector.load %arg2[%c0_1, %c0_2, %c0_3] : memref<5x96x256xbf16, #tpu.memory_space<vmem>>, vector<1x96x256xbf16>
    %2 = vector.shape_cast %1 : vector<1x96x256xbf16> to vector<96x256xbf16>
    %cst = arith.constant dense<0.000000e+00> : vector<256x256xf32>
    %3 = tpu.matmul %0, %2, %cst {dimension_numbers = #tpu.dot_dimension_numbers<[1], [0], [0], [1], [0, 0, 1, 1], [], []>} : vector<256x96xbf16>, vector<96x256xbf16>, vector<256x256xf32> -> vector<256x256xf32>
    %c1 = arith.constant 1 : index
    %c0_4 = arith.constant 0 : index
    %c0_5 = arith.constant 0 : index
    %4 = vector.load %arg2[%c1, %c0_4, %c0_5] : memref<5x96x256xbf16, #tpu.memory_space<vmem>>, vector<1x96x256xbf16>
    %5 = vector.shape_cast %4 : vector<1x96x256xbf16> to vector<96x256xbf16>
    %cst_6 = arith.constant dense<0.000000e+00> : vector<256x256xf32>
    %6 = tpu.matmul %0, %5, %cst_6 {dimension_numbers = #tpu.dot_dimension_numbers<[1], [0], [0], [1], [0, 0, 1, 1], [], []>} : vector<256x96xbf16>, vector<96x256xbf16>, vector<256x256xf32> -> vector<256x256xf32>
    %c255_i32 = arith.constant 255 : i32
    %7 = tpu.dynamic_rotate %6 by %c255_i32 dim 0 : vector<256x256xf32>, i32 -> vector<256x256xf32>
    %8 = arith.addf %3, %7 : vector<256x256xf32>
    %c2 = arith.constant 2 : index
    %c0_7 = arith.constant 0 : index
    %c0_8 = arith.constant 0 : index
    %9 = vector.load %arg2[%c2, %c0_7, %c0_8] : memref<5x96x256xbf16, #tpu.memory_space<vmem>>, vector<1x96x256xbf16>
    %10 = vector.shape_cast %9 : vector<1x96x256xbf16> to vector<96x256xbf16>
    %cst_9 = arith.constant dense<0.000000e+00> : vector<256x256xf32>
    %11 = tpu.matmul %0, %10, %cst_9 {dimension_numbers = #tpu.dot_dimension_numbers<[1], [0], [0], [1], [0, 0, 1, 1], [], []>} : vector<256x96xbf16>, vector<96x256xbf16>, vector<256x256xf32> -> vector<256x256xf32>
    %c254_i32 = arith.constant 254 : i32
    %12 = tpu.dynamic_rotate %11 by %c254_i32 dim 0 : vector<256x256xf32>, i32 -> vector<256x256xf32>
    %13 = arith.addf %8, %12 : vector<256x256xf32>
    %c3 = arith.constant 3 : index
    %c0_10 = arith.constant 0 : index
    %c0_11 = arith.constant 0 : index
    %14 = vector.load %arg2[%c3, %c0_10, %c0_11] : memref<5x96x256xbf16, #tpu.memory_space<vmem>>, vector<1x96x256xbf16>
    %15 = vector.shape_cast %14 : vector<1x96x256xbf16> to vector<96x256xbf16>
    %cst_12 = arith.constant dense<0.000000e+00> : vector<256x256xf32>
    %16 = tpu.matmul %0, %15, %cst_12 {dimension_numbers = #tpu.dot_dimension_numbers<[1], [0], [0], [1], [0, 0, 1, 1], [], []>} : vector<256x96xbf16>, vector<96x256xbf16>, vector<256x256xf32> -> vector<256x256xf32>
    %c253_i32 = arith.constant 253 : i32
    %17 = tpu.dynamic_rotate %16 by %c253_i32 dim 0 : vector<256x256xf32>, i32 -> vector<256x256xf32>
    %18 = arith.addf %13, %17 : vector<256x256xf32>
    %c4 = arith.constant 4 : index
    %c0_13 = arith.constant 0 : index
    %c0_14 = arith.constant 0 : index
    %19 = vector.load %arg2[%c4, %c0_13, %c0_14] : memref<5x96x256xbf16, #tpu.memory_space<vmem>>, vector<1x96x256xbf16>
    %20 = vector.shape_cast %19 : vector<1x96x256xbf16> to vector<96x256xbf16>
    %cst_15 = arith.constant dense<0.000000e+00> : vector<256x256xf32>
    %21 = tpu.matmul %0, %20, %cst_15 {dimension_numbers = #tpu.dot_dimension_numbers<[1], [0], [0], [1], [0, 0, 1, 1], [], []>} : vector<256x96xbf16>, vector<96x256xbf16>, vector<256x256xf32> -> vector<256x256xf32>
    %c252_i32 = arith.constant 252 : i32
    %22 = tpu.dynamic_rotate %21 by %c252_i32 dim 0 : vector<256x256xf32>, i32 -> vector<256x256xf32>
    %23 = arith.addf %18, %22 : vector<256x256xf32>
    %24 = vector.extract_strided_slice %23 {offsets = [0, 0], sizes = [256, 128], strides = [1, 1]} : vector<256x256xf32> to vector<256x128xf32>
    %25 = vector.extract_strided_slice %23 {offsets = [0, 128], sizes = [256, 128], strides = [1, 1]} : vector<256x256xf32> to vector<256x128xf32>
    %26 = arith.maximumf %24, %25 : vector<256x128xf32>
    %c0_16 = arith.constant 0 : index
    %c0_17 = arith.constant 0 : index
    %27 = vector.load %arg3[%c0_16, %c0_17] : memref<1x128xf32, #tpu.memory_space<vmem>>, vector<1x128xf32>
    %28 = vector.broadcast %27 : vector<1x128xf32> to vector<256x128xf32>
    %29 = arith.addf %26, %28 : vector<256x128xf32>
    %cst_18 = arith.constant 0.000000e+00 : f32
    %30 = vector.broadcast %cst_18 : f32 to vector<256x128xf32>
    %31 = arith.maximumf %29, %30 : vector<256x128xf32>
    %c255_i32_19 = arith.constant 255 : i32
    %32 = tpu.dynamic_rotate %31 by %c255_i32_19 dim 0 : vector<256x128xf32>, i32 -> vector<256x128xf32>
    %33 = arith.maximumf %31, %32 : vector<256x128xf32>
    %34 = arith.truncf %33 : vector<256x128xf32> to vector<256x128xbf16>
    %c0_20 = arith.constant 0 : index
    %c0_21 = arith.constant 0 : index
    %35 = vector.load %arg4[%c0_20, %c0_21] : memref<112x256xbf16, #tpu.memory_space<vmem>>, vector<112x256xbf16>
    %cst_22 = arith.constant dense<0.000000e+00> : vector<112x128xf32>
    %36 = tpu.matmul %35, %34, %cst_22 {dimension_numbers = #tpu.dot_dimension_numbers<[1], [0], [0], [1], [0, 0, 1, 1], [], []>} : vector<112x256xbf16>, vector<256x128xbf16>, vector<112x128xf32> -> vector<112x128xf32>
    %37 = arith.truncf %36 : vector<112x128xf32> to vector<112x128xbf16>
    %c0_23 = arith.constant 0 : index
    %c0_24 = arith.constant 0 : index
    %c0_25 = arith.constant 0 : index
    %38 = vector.load %arg5[%c0_23, %c0_24, %c0_25] : memref<5x128x256xbf16, #tpu.memory_space<vmem>>, vector<1x128x256xbf16>
    %39 = vector.shape_cast %38 : vector<1x128x256xbf16> to vector<128x256xbf16>
    %cst_26 = arith.constant dense<0.000000e+00> : vector<112x256xf32>
    %40 = tpu.matmul %37, %39, %cst_26 {dimension_numbers = #tpu.dot_dimension_numbers<[1], [0], [0], [1], [0, 0, 1, 1], [], []>} : vector<112x128xbf16>, vector<128x256xbf16>, vector<112x256xf32> -> vector<112x256xf32>
    %c1_27 = arith.constant 1 : index
    %c0_28 = arith.constant 0 : index
    %c0_29 = arith.constant 0 : index
    %41 = vector.load %arg5[%c1_27, %c0_28, %c0_29] : memref<5x128x256xbf16, #tpu.memory_space<vmem>>, vector<1x128x256xbf16>
    %42 = vector.shape_cast %41 : vector<1x128x256xbf16> to vector<128x256xbf16>
    %cst_30 = arith.constant dense<0.000000e+00> : vector<112x256xf32>
    %43 = tpu.matmul %37, %42, %cst_30 {dimension_numbers = #tpu.dot_dimension_numbers<[1], [0], [0], [1], [0, 0, 1, 1], [], []>} : vector<112x128xbf16>, vector<128x256xbf16>, vector<112x256xf32> -> vector<112x256xf32>
    %c111_i32 = arith.constant 111 : i32
    %44 = tpu.dynamic_rotate %43 by %c111_i32 dim 0 : vector<112x256xf32>, i32 -> vector<112x256xf32>
    %45 = arith.addf %40, %44 : vector<112x256xf32>
    %c2_31 = arith.constant 2 : index
    %c0_32 = arith.constant 0 : index
    %c0_33 = arith.constant 0 : index
    %46 = vector.load %arg5[%c2_31, %c0_32, %c0_33] : memref<5x128x256xbf16, #tpu.memory_space<vmem>>, vector<1x128x256xbf16>
    %47 = vector.shape_cast %46 : vector<1x128x256xbf16> to vector<128x256xbf16>
    %cst_34 = arith.constant dense<0.000000e+00> : vector<112x256xf32>
    %48 = tpu.matmul %37, %47, %cst_34 {dimension_numbers = #tpu.dot_dimension_numbers<[1], [0], [0], [1], [0, 0, 1, 1], [], []>} : vector<112x128xbf16>, vector<128x256xbf16>, vector<112x256xf32> -> vector<112x256xf32>
    %c110_i32 = arith.constant 110 : i32
    %49 = tpu.dynamic_rotate %48 by %c110_i32 dim 0 : vector<112x256xf32>, i32 -> vector<112x256xf32>
    %50 = arith.addf %45, %49 : vector<112x256xf32>
    %c3_35 = arith.constant 3 : index
    %c0_36 = arith.constant 0 : index
    %c0_37 = arith.constant 0 : index
    %51 = vector.load %arg5[%c3_35, %c0_36, %c0_37] : memref<5x128x256xbf16, #tpu.memory_space<vmem>>, vector<1x128x256xbf16>
    %52 = vector.shape_cast %51 : vector<1x128x256xbf16> to vector<128x256xbf16>
    %cst_38 = arith.constant dense<0.000000e+00> : vector<112x256xf32>
    %53 = tpu.matmul %37, %52, %cst_38 {dimension_numbers = #tpu.dot_dimension_numbers<[1], [0], [0], [1], [0, 0, 1, 1], [], []>} : vector<112x128xbf16>, vector<128x256xbf16>, vector<112x256xf32> -> vector<112x256xf32>
    %c109_i32 = arith.constant 109 : i32
    %54 = tpu.dynamic_rotate %53 by %c109_i32 dim 0 : vector<112x256xf32>, i32 -> vector<112x256xf32>
    %55 = arith.addf %50, %54 : vector<112x256xf32>
    %c4_39 = arith.constant 4 : index
    %c0_40 = arith.constant 0 : index
    %c0_41 = arith.constant 0 : index
    %56 = vector.load %arg5[%c4_39, %c0_40, %c0_41] : memref<5x128x256xbf16, #tpu.memory_space<vmem>>, vector<1x128x256xbf16>
    %57 = vector.shape_cast %56 : vector<1x128x256xbf16> to vector<128x256xbf16>
    %cst_42 = arith.constant dense<0.000000e+00> : vector<112x256xf32>
    %58 = tpu.matmul %37, %57, %cst_42 {dimension_numbers = #tpu.dot_dimension_numbers<[1], [0], [0], [1], [0, 0, 1, 1], [], []>} : vector<112x128xbf16>, vector<128x256xbf16>, vector<112x256xf32> -> vector<112x256xf32>
    %c108_i32 = arith.constant 108 : i32
    %59 = tpu.dynamic_rotate %58 by %c108_i32 dim 0 : vector<112x256xf32>, i32 -> vector<112x256xf32>
    %60 = arith.addf %55, %59 : vector<112x256xf32>
    %61 = vector.extract_strided_slice %60 {offsets = [0, 0], sizes = [112, 128], strides = [1, 1]} : vector<112x256xf32> to vector<112x128xf32>
    %62 = vector.extract_strided_slice %60 {offsets = [0, 128], sizes = [112, 128], strides = [1, 1]} : vector<112x256xf32> to vector<112x128xf32>
    %63 = arith.maximumf %61, %62 : vector<112x128xf32>
    %c0_43 = arith.constant 0 : index
    %c0_44 = arith.constant 0 : index
    %64 = vector.load %arg6[%c0_43, %c0_44] : memref<1x128xf32, #tpu.memory_space<vmem>>, vector<1x128xf32>
    %65 = vector.broadcast %64 : vector<1x128xf32> to vector<112x128xf32>
    %66 = arith.addf %63, %65 : vector<112x128xf32>
    %cst_45 = arith.constant 0.000000e+00 : f32
    %67 = vector.broadcast %cst_45 : f32 to vector<112x128xf32>
    %68 = arith.maximumf %66, %67 : vector<112x128xf32>
    %c111_i32_46 = arith.constant 111 : i32
    %69 = tpu.dynamic_rotate %68 by %c111_i32_46 dim 0 : vector<112x128xf32>, i32 -> vector<112x128xf32>
    %70 = arith.maximumf %68, %69 : vector<112x128xf32>
    %71 = arith.truncf %70 : vector<112x128xf32> to vector<112x128xbf16>
    %c0_47 = arith.constant 0 : index
    %c0_48 = arith.constant 0 : index
    %c0_49 = arith.constant 0 : index
    %72 = vector.load %arg7[%c0_47, %c0_48, %c0_49] : memref<5x128x128xbf16, #tpu.memory_space<vmem>>, vector<1x128x128xbf16>
    %73 = vector.shape_cast %72 : vector<1x128x128xbf16> to vector<128x128xbf16>
    %cst_50 = arith.constant dense<0.000000e+00> : vector<112x128xf32>
    %74 = tpu.matmul %71, %73, %cst_50 {dimension_numbers = #tpu.dot_dimension_numbers<[1], [0], [0], [1], [0, 0, 1, 1], [], []>} : vector<112x128xbf16>, vector<128x128xbf16>, vector<112x128xf32> -> vector<112x128xf32>
    %c1_51 = arith.constant 1 : index
    %c0_52 = arith.constant 0 : index
    %c0_53 = arith.constant 0 : index
    %75 = vector.load %arg7[%c1_51, %c0_52, %c0_53] : memref<5x128x128xbf16, #tpu.memory_space<vmem>>, vector<1x128x128xbf16>
    %76 = vector.shape_cast %75 : vector<1x128x128xbf16> to vector<128x128xbf16>
    %cst_54 = arith.constant dense<0.000000e+00> : vector<112x128xf32>
    %77 = tpu.matmul %71, %76, %cst_54 {dimension_numbers = #tpu.dot_dimension_numbers<[1], [0], [0], [1], [0, 0, 1, 1], [], []>} : vector<112x128xbf16>, vector<128x128xbf16>, vector<112x128xf32> -> vector<112x128xf32>
    %c110_i32_55 = arith.constant 110 : i32
    %78 = tpu.dynamic_rotate %77 by %c110_i32_55 dim 0 : vector<112x128xf32>, i32 -> vector<112x128xf32>
    %79 = arith.addf %74, %78 : vector<112x128xf32>
    %c2_56 = arith.constant 2 : index
    %c0_57 = arith.constant 0 : index
    %c0_58 = arith.constant 0 : index
    %80 = vector.load %arg7[%c2_56, %c0_57, %c0_58] : memref<5x128x128xbf16, #tpu.memory_space<vmem>>, vector<1x128x128xbf16>
    %81 = vector.shape_cast %80 : vector<1x128x128xbf16> to vector<128x128xbf16>
    %cst_59 = arith.constant dense<0.000000e+00> : vector<112x128xf32>
    %82 = tpu.matmul %71, %81, %cst_59 {dimension_numbers = #tpu.dot_dimension_numbers<[1], [0], [0], [1], [0, 0, 1, 1], [], []>} : vector<112x128xbf16>, vector<128x128xbf16>, vector<112x128xf32> -> vector<112x128xf32>
    %c108_i32_60 = arith.constant 108 : i32
    %83 = tpu.dynamic_rotate %82 by %c108_i32_60 dim 0 : vector<112x128xf32>, i32 -> vector<112x128xf32>
    %84 = arith.addf %79, %83 : vector<112x128xf32>
    %c3_61 = arith.constant 3 : index
    %c0_62 = arith.constant 0 : index
    %c0_63 = arith.constant 0 : index
    %85 = vector.load %arg7[%c3_61, %c0_62, %c0_63] : memref<5x128x128xbf16, #tpu.memory_space<vmem>>, vector<1x128x128xbf16>
    %86 = vector.shape_cast %85 : vector<1x128x128xbf16> to vector<128x128xbf16>
    %cst_64 = arith.constant dense<0.000000e+00> : vector<112x128xf32>
    %87 = tpu.matmul %71, %86, %cst_64 {dimension_numbers = #tpu.dot_dimension_numbers<[1], [0], [0], [1], [0, 0, 1, 1], [], []>} : vector<112x128xbf16>, vector<128x128xbf16>, vector<112x128xf32> -> vector<112x128xf32>
    %c106_i32 = arith.constant 106 : i32
    %88 = tpu.dynamic_rotate %87 by %c106_i32 dim 0 : vector<112x128xf32>, i32 -> vector<112x128xf32>
    %89 = arith.addf %84, %88 : vector<112x128xf32>
    %c4_65 = arith.constant 4 : index
    %c0_66 = arith.constant 0 : index
    %c0_67 = arith.constant 0 : index
    %90 = vector.load %arg7[%c4_65, %c0_66, %c0_67] : memref<5x128x128xbf16, #tpu.memory_space<vmem>>, vector<1x128x128xbf16>
    %91 = vector.shape_cast %90 : vector<1x128x128xbf16> to vector<128x128xbf16>
    %cst_68 = arith.constant dense<0.000000e+00> : vector<112x128xf32>
    %92 = tpu.matmul %71, %91, %cst_68 {dimension_numbers = #tpu.dot_dimension_numbers<[1], [0], [0], [1], [0, 0, 1, 1], [], []>} : vector<112x128xbf16>, vector<128x128xbf16>, vector<112x128xf32> -> vector<112x128xf32>
    %c104_i32 = arith.constant 104 : i32
    %93 = tpu.dynamic_rotate %92 by %c104_i32 dim 0 : vector<112x128xf32>, i32 -> vector<112x128xf32>
    %94 = arith.addf %89, %93 : vector<112x128xf32>
    %c0_69 = arith.constant 0 : index
    %c0_70 = arith.constant 0 : index
    %95 = vector.load %arg8[%c0_69, %c0_70] : memref<1x128xf32, #tpu.memory_space<vmem>>, vector<1x128xf32>
    %96 = vector.broadcast %95 : vector<1x128xf32> to vector<112x128xf32>
    %97 = arith.addf %94, %96 : vector<112x128xf32>
    %cst_71 = arith.constant 0.000000e+00 : f32
    %98 = vector.broadcast %cst_71 : f32 to vector<112x128xf32>
    %99 = arith.maximumf %97, %98 : vector<112x128xf32>
    %c0_72 = arith.constant 0 : index
    %c0_73 = arith.constant 0 : index
    %100 = vector.load %arg9[%c0_72, %c0_73] : memref<8x112xbf16, #tpu.memory_space<vmem>>, vector<8x112xbf16>
    %101 = arith.truncf %99 : vector<112x128xf32> to vector<112x128xbf16>
    %cst_74 = arith.constant dense<0.000000e+00> : vector<8x128xf32>
    %102 = tpu.matmul %100, %101, %cst_74 {dimension_numbers = #tpu.dot_dimension_numbers<[1], [0], [0], [1], [0, 0, 1, 1], [], []>} : vector<8x112xbf16>, vector<112x128xbf16>, vector<8x128xf32> -> vector<8x128xf32>
    %103 = arith.truncf %102 : vector<8x128xf32> to vector<8x128xbf16>
    %c0_75 = arith.constant 0 : index
    %c0_76 = arith.constant 0 : index
    %104 = vector.load %arg10[%c0_75, %c0_76] : memref<128x128xbf16, #tpu.memory_space<vmem>>, vector<128x128xbf16>
    %cst_77 = arith.constant dense<0.000000e+00> : vector<8x128xf32>
    %105 = tpu.matmul %103, %104, %cst_77 {dimension_numbers = #tpu.dot_dimension_numbers<[1], [0], [0], [1], [0, 0, 1, 1], [], []>} : vector<8x128xbf16>, vector<128x128xbf16>, vector<8x128xf32> -> vector<8x128xf32>
    %c0_78 = arith.constant 0 : index
    %c0_79 = arith.constant 0 : index
    %106 = vector.load %arg11[%c0_78, %c0_79] : memref<1x128xf32, #tpu.memory_space<vmem>>, vector<1x128xf32>
    %107 = vector.broadcast %106 : vector<1x128xf32> to vector<8x128xf32>
    %108 = arith.addf %105, %107 : vector<8x128xf32>
    %cst_80 = arith.constant 0.000000e+00 : f32
    %109 = vector.broadcast %cst_80 : f32 to vector<8x128xf32>
    %110 = arith.maximumf %108, %109 : vector<8x128xf32>
    %111 = arith.truncf %110 : vector<8x128xf32> to vector<8x128xbf16>
    %c0_81 = arith.constant 0 : index
    %c0_82 = arith.constant 0 : index
    %112 = vector.load %arg12[%c0_81, %c0_82] : memref<128x128xbf16, #tpu.memory_space<vmem>>, vector<128x128xbf16>
    %cst_83 = arith.constant dense<0.000000e+00> : vector<8x128xf32>
    %113 = tpu.matmul %111, %112, %cst_83 {dimension_numbers = #tpu.dot_dimension_numbers<[1], [0], [0], [1], [0, 0, 1, 1], [], []>} : vector<8x128xbf16>, vector<128x128xbf16>, vector<8x128xf32> -> vector<8x128xf32>
    %c0_84 = arith.constant 0 : index
    %c0_85 = arith.constant 0 : index
    %114 = vector.load %arg13[%c0_84, %c0_85] : memref<1x128xf32, #tpu.memory_space<vmem>>, vector<1x128xf32>
    %115 = vector.broadcast %114 : vector<1x128xf32> to vector<8x128xf32>
    %116 = arith.addf %113, %115 : vector<8x128xf32>
    %c0_86 = arith.constant 0 : index
    %c0_87 = arith.constant 0 : index
    %117 = vector.load %arg14[%c0_86, %c0_87] : memref<8x128xf32, #tpu.memory_space<vmem>>, vector<8x128xf32>
    tpu.vector_store %arg14[%c0_86, %c0_87], %116 {strides = array<i32>} : memref<8x128xf32, #tpu.memory_space<vmem>>, vector<8x128xf32>,
    return
  }
  func.func @transform_0(%arg0: i32) -> (i32, i32) {
    %c0_i32 = arith.constant 0 : i32
    %c0_i32_0 = arith.constant 0 : i32
    return %arg0, %c0_i32 : i32, i32
  }
  func.func @transform_1(%arg0: i32) -> (i32, i32, i32) {
    %c0_i32 = arith.constant 0 : i32
    %c0_i32_0 = arith.constant 0 : i32
    %c0_i32_1 = arith.constant 0 : i32
    %c0_i32_2 = arith.constant 0 : i32
    return %c0_i32, %c0_i32_0, %c0_i32_1 : i32, i32, i32
  }
  func.func @transform_2(%arg0: i32) -> (i32, i32) {
    %c0_i32 = arith.constant 0 : i32
    %c0_i32_0 = arith.constant 0 : i32
    %c0_i32_1 = arith.constant 0 : i32
    return %c0_i32, %c0_i32_0 : i32, i32
  }
  func.func @transform_3(%arg0: i32) -> (i32, i32) {
    %c0_i32 = arith.constant 0 : i32
    %c0_i32_0 = arith.constant 0 : i32
    %c0_i32_1 = arith.constant 0 : i32
    return %c0_i32, %c0_i32_0 : i32, i32
  }
  func.func @transform_4(%arg0: i32) -> (i32, i32, i32) {
    %c0_i32 = arith.constant 0 : i32
    %c0_i32_0 = arith.constant 0 : i32
    %c0_i32_1 = arith.constant 0 : i32
    %c0_i32_2 = arith.constant 0 : i32
    return %c0_i32, %c0_i32_0, %c0_i32_1 : i32, i32, i32
  }
  func.func @transform_5(%arg0: i32) -> (i32, i32) {
    %c0_i32 = arith.constant 0 : i32
    %c0_i32_0 = arith.constant 0 : i32
    %c0_i32_1 = arith.constant 0 : i32
    return %c0_i32, %c0_i32_0 : i32, i32
  }
  func.func @transform_6(%arg0: i32) -> (i32, i32, i32) {
    %c0_i32 = arith.constant 0 : i32
    %c0_i32_0 = arith.constant 0 : i32
    %c0_i32_1 = arith.constant 0 : i32
    %c0_i32_2 = arith.constant 0 : i32
    return %c0_i32, %c0_i32_0, %c0_i32_1 : i32, i32, i32
  }
  func.func @transform_7(%arg0: i32) -> (i32, i32) {
    %c0_i32 = arith.constant 0 : i32
    %c0_i32_0 = arith.constant 0 : i32
    %c0_i32_1 = arith.constant 0 : i32
    return %c0_i32, %c0_i32_0 : i32, i32
  }
  func.func @transform_8(%arg0: i32) -> (i32, i32) {
    %c0_i32 = arith.constant 0 : i32
    %c0_i32_0 = arith.constant 0 : i32
    %c0_i32_1 = arith.constant 0 : i32
    return %c0_i32, %c0_i32_0 : i32, i32
  }
  func.func @transform_9(%arg0: i32) -> (i32, i32) {
    %c0_i32 = arith.constant 0 : i32
    %c0_i32_0 = arith.constant 0 : i32
    %c0_i32_1 = arith.constant 0 : i32
    return %c0_i32, %c0_i32_0 : i32, i32
  }
  func.func @transform_10(%arg0: i32) -> (i32, i32) {
    %c0_i32 = arith.constant 0 : i32
    %c0_i32_0 = arith.constant 0 : i32
    %c0_i32_1 = arith.constant 0 : i32
    return %c0_i32, %c0_i32_0 : i32, i32
  }
  func.func @transform_11(%arg0: i32) -> (i32, i32) {
    %c0_i32 = arith.constant 0 : i32
    %c0_i32_0 = arith.constant 0 : i32
    %c0_i32_1 = arith.constant 0 : i32
    return %c0_i32, %c0_i32_0 : i32, i32
  }
  func.func @transform_12(%arg0: i32) -> (i32, i32) {
    %c0_i32 = arith.constant 0 : i32
    %c0_i32_0 = arith.constant 0 : i32
    %c0_i32_1 = arith.constant 0 : i32
    return %c0_i32, %c0_i32_0 : i32, i32
  }
  func.func @transform_13(%arg0: i32) -> (i32, i32) {
    %c0_i32 = arith.constant 0 : i32
    %c0_i32_0 = arith.constant 0 : i32
    return %arg0, %c0_i32 : i32, i32
  }
}

</mosaic_0001>

<bundles_post_ra>
// kernel: forward.1
= control target key start
LH: loop header
LB: loop body
LE: loop exit
PB: predicated region body
PF: predicated region fallthrough
CT: control target
= control target key end

     0   :  { %18 = vsyncpa [#allocation3], 0  ;;  %s11056_s0 = inlined_call_operand.vmem [shape: bf16[512,96], index: 0, kind: input, shape index: {}]   ;;  %s11057_s1 = inlined_call_operand.vmem [shape: bf16[5,96,256], index: 1, kind: input, shape index: {}]   ;;  %s11058_s2 = inlined_call_operand.vmem [shape: f32[1,128], index: 2, kind: input, shape index: {}]   ;;  %s11059_s3 = inlined_call_operand.vmem [shape: bf16[112,256], index: 3, kind: input, shape index: {}]   ;;  %s11060_s4 = inlined_call_operand.vmem [shape: bf16[5,128,256], index: 4, kind: input, shape index: {}]   ;;  %s11061_s5 = inlined_call_operand.vmem [shape: f32[1,128], index: 5, kind: input, shape index: {}]   ;;  %s11062_s6 = inlined_call_operand.vmem [shape: bf16[5,128,128], index: 6, kind: input, shape index: {}]   ;;  %s11063_s7 = inlined_call_operand.vmem [shape: f32[1,128], index: 7, kind: input, shape index: {}]   ;;  %s11064_s8 = inlined_call_operand.vmem [shape: bf16[8,112], index: 8, kind: input, shape index: {}]   ;;  %s11065_s9 = inlined_call_operand.vmem [shape: bf16[128,128], index: 9, kind: input, shape index: {}]   ;;  %s11066_s10 = inlined_call_operand.vmem [shape: f32[1,128], index: 10, kind: input, shape index: {}]   ;;  %s11067_s11 = inlined_call_operand.vmem [shape: bf16[128,128], index: 11, kind: input, shape index: {}]   ;;  %s11068_s12 = inlined_call_operand.vmem [shape: f32[1,128], index: 12, kind: input, shape index: {}]   ;;  %s11069_s13 = inlined_call_operand.hbm [shape: f32[16,128], index: 13, kind: output, shape index: {}]  }
   0x1   :  { %20 = vsyncpa [#allocation3 + $0x1], 0  ;;  %s7158_s25 = smov 0   ;;  %s7160_s26 = smov 0  }
   0x2   :  { %s7162_s27 = smov 0   ;;  %s7164_s28 = smov 0  }
   0x3 LB: > { %11115 = sst [smem:[#allocation5_spill]] %s7078_s27  ;;  %s7179_s29 = sadd.s32 4294967295, %s7082_s28   ;;  %s7082_s28 = sphi %s7164_s28, %s11443_s28   ;;  %s7078_s27 = sphi %s7162_s27, %s11445_s27   ;;  %s7074_s26 = sphi %s7160_s26, %s11447_s26   ;;  %s7070_s25 = sphi %s7158_s25, %s11446_s25  }
   0x4   : > { %s5724_s30 = sadd.s32 4294967294, %s7082_s28   ;;  %s7183_s14 = sadd.s32 1, %s7082_s28  }
   0x5   : > { %11116 = sst [smem:[#allocation6_spill]] %s7183_s14  ;;  %s311_s15 = sadd.s32 1, %s7078_s27 }
   0x6   : > { %s308_s16 = ssub.s32 %s7082_s28, %s7183_s14  ;;  %p321_p0 = scmp.ne.s32.totalorder %s7078_s27, %s7074_s26 }
   0x7   : > { %p309_p1 = scmp.eq.s32.totalorder %s308_s16, 0  ;;  %p322_p2 = scmp.eq.s32.totalorder %s7179_s29, 1 }
   0x8   : > { %p327_p3 = scmp.ne.s32.totalorder %s7074_s26, %s7070_s25  ;;  %p328_p4 = scmp.eq.s32.totalorder %s5724_s30, 1 }
   0x9   : > { %s7194_s17 = scalar_select %p309_p1, %s7078_s27, %s311_s15  }
   0xa   : > { %p7196_p5 = por %p322_p2, %p321_p0  ;;  %p7200_p6 = por %p328_p4, %p327_p3 }
   0xb   : > { %11117 = sst [smem:[#allocation7_spill]] %s7194_s17  ;;  %p5727_p7 = scmp.ge.s32.totalorder %s7082_s28, 1 }
   0xc   : > { %s11119_s19 = scalar_select %p7200_p6, 1, 0 }
   0xd   : > { %p391_p8 = scmp.lt.s32.totalorder %s7082_s28, 3 }
   0xe   : > { %11120 = sst [smem:[#allocation8_spill]] %s11119_s19 }
   0xf   : > { %p392_p9 = pnand %p5727_p7, %p391_p8 }
  0x11   : > { %395 = sbr.rel (%p392_p9) target bundleno = 2215 (0x8a7), region = 72 }
  0x16   : > { %v6702_v0 = vld [vmem:[%s11057_s1 + $0xb4] ss:$8 sps:$4 sm:$0xff]   ;;  %v11076_v2 = vmov 0   ;;  %s5729_s24 = sshll.u32 %s7179_s29, 5  ;;  %v6706_v3 = vld [vmem:[%s11057_s1 + $0xb0] ss:$8 sps:$4 sm:$0xff]  }
  0x17   : > { %v6704_v1 = vld [vmem:[%s11057_s1 + $0x54] ss:$8 sps:$4 sm:$0xff]   ;;  %720 = vmatprep.mubr.bf16.mxu0 %v11076_v2  ;;  %1104 = vmatprep.mubr.bf16.mxu1 %v11076_v2  ;;  %v6707_v4 = vld [vmem:[%s11057_s1 + $0x50] ss:$8 sps:$4 sm:$0xff]   ;;  %v6708_v5 = vld [vmem:[%s11057_s1 + $0xa4] ss:$8 sps:$4 sm:$0xff]  }
  0x18   : > { %692 = vmatprep.subr.bf16.mxu0 %v6702_v0  ;;  %1076 = vmatprep.subr.bf16.mxu1 %v6704_v1  ;;  %v6710_v6 = vld [vmem:[%s11057_s1 + $0x44] ss:$8 sps:$4 sm:$0xff]   ;;  %v6712_v7 = vld [vmem:[%s11057_s1 + $0xa0] ss:$8 sps:$4 sm:$0xff]   ;;  %p436_p10 = scmp.lt.s32.totalorder %s5729_s24, 63  ;;  %vm639_vm0 = vcmask 785408  }
  0x19   : > { %693 = vmatpush1.bf16.msra.mxu0 %v6706_v3  ;;  %1077 = vmatpush1.bf16.msra.mxu1 %v6707_v4  ;;  %v6713_v8 = vld [vmem:[%s11057_s1 + $0x40] ss:$8 sps:$4 sm:$0xff]   ;;  %v6714_v9 = vld [vmem:[%s11057_s1 + $0x94] ss:$8 sps:$4 sm:$0xff]   ;;  %v6718_v11 = vld [vmem:[%s11057_s1 + $0x90] ss:$8 sps:$4 sm:$0xff]  }
  0x1a   : > { %694 = vmatprep.subr.bf16.mxu0 %v6708_v5  ;;  %1078 = vmatprep.subr.bf16.mxu1 %v6710_v6  ;;  %v6716_v10 = vld [vmem:[%s11057_s1 + $0x34] ss:$8 sps:$4 sm:$0xff]   ;;  %v6719_v12 = vld [vmem:[%s11057_s1 + $0x30] ss:$8 sps:$4 sm:$0xff]   ;;  %v6720_v13 = vld [vmem:[%s11057_s1 + $0x84] ss:$8 sps:$4 sm:$0xff]  }
  0x1b   : > { %s11449_s24 = smov (!%p436_p10, %s5729_s24), 63  ;;  %v6722_v14 = vld [vmem:[%s11057_s1 + $0x24] ss:$8 sps:$4 sm:$0xff]   ;;  %v6724_v15 = vld [vmem:[%s11057_s1 + $0x80] ss:$8 sps:$4 sm:$0xff]   ;;  %vm7086_vm5 = vmmov 0  }
  0x1c   : > { %v6725_v16 = vld [vmem:[%s11057_s1 + $0x20] ss:$8 sps:$4 sm:$0xff]   ;;  %v6726_v17 = vld [vmem:[%s11057_s1 + $0x74] ss:$8 sps:$4 sm:$0xff]   ;;  %s5730_s30 = sshll.u32 %s11449_s24, 2  ;;  %vm5381_vm7 = vcmask 916480  }
  0x1d   : > { %695 = vmatpush1.bf16.msra.mxu0 %v6712_v7  ;;  %1079 = vmatpush1.bf16.msra.mxu1 %v6713_v8  ;;  %v6728_v18 = vld [vmem:[%s11057_s1 + $0x14] ss:$8 sps:$4 sm:$0xff]   ;;  %v6730_v19 = vld [vmem:[%s11057_s1 + $0x70] ss:$8 sps:$4 sm:$0xff]   ;;  %s7272_s27 = scalar_lea.vmem %s11056_s0, %s5730_s30  ;;  %v6732_v21 = vld [vmem:[%s11057_s1 + $0x64] ss:$8 sps:$4 sm:$0xff]  }
  0x1e   : > { %696 = vmatprep.subr.bf16.mxu0 %v6714_v9  ;;  %1080 = vmatprep.subr.bf16.mxu1 %v6716_v10  ;;  %v6731_v20 = vld [vmem:[%s11057_s1 + $0x10] ss:$8 sps:$4 sm:$0xff]   ;;  %v6734_v22 = vld [vmem:[%s11057_s1 + $0x4] ss:$8 sps:$4 sm:$0xff]   ;;  %v6736_v23 = vld [vmem:[%s11057_s1 + $0x60] ss:$8 sps:$4 sm:$0xff]  }
  0x1f   : > { %v6737_v24 = vld [vmem:[%s11057_s1] ss:$8 sps:$4 sm:$0xff]   ;;  %v6751_v26 = vld [vmem:[%s11057_s1 + $0x110] ss:$8 sps:$4 sm:$0xff]   ;;  %v6753_v27 = vld [vmem:[%s11057_s1 + $0x114] ss:$8 sps:$4 sm:$0xff]  }
  0x20   : > { %v7287_v25 = vld [vmem:[%s7272_s27] sm:$0xff]   ;;  %v7302_v28 = vld [vmem:[%s7272_s27 + $0x8] sm:$0xff]   ;;  %v6757_v29 = vld [vmem:[%s11057_s1 + $0x174] ss:$8 sps:$4 sm:$0xff]   ;;  %s6220_s30 = sshll.u32 %s7179_s29, 7  ;;  %s7087_s29 = smov [#allocation2]  }
  0x21   : > { %697 = vmatpush1.bf16.msra.mxu0 %v6718_v11  ;;  %1081 = vmatpush1.bf16.msra.mxu1 %v6719_v12  ;;  %v6755_v30 = vld [vmem:[%s11057_s1 + $0x170] ss:$8 sps:$4 sm:$0xff]   ;;  %v6760_v31 = vld [vmem:[%s11057_s1 + $0x104] ss:$8 sps:$4 sm:$0xff]   ;;  %v6758_v32 = vld [vmem:[%s11057_s1 + $0x100] ss:$8 sps:$4 sm:$0xff]   ;;  %s11015_s24 = scalar_lea.hbm %s11069_s13, %s6220_s30 }
  0x22   : > { %698 = vmatprep.subr.bf16.mxu0 %v6720_v13  ;;  %1082 = vmatprep.subr.bf16.mxu1 %v6722_v14  ;;  %v6763_v33 = vld [vmem:[%s11057_s1 + $0x164] ss:$8 sps:$4 sm:$0xff]   ;;  %v6761_v34 = vld [vmem:[%s11057_s1 + $0x160] ss:$8 sps:$4 sm:$0xff]   ;;  %v6767_v35 = vld [vmem:[%s11057_s1 + $0xf4] ss:$8 sps:$4 sm:$0xff]   ;;  %v945_v14 = vlaneseq }
  0x23   : > { %v6765_v36 = vld [vmem:[%s11057_s1 + $0xf0] ss:$8 sps:$4 sm:$0xff]   ;;  %v6770_v37 = vld [vmem:[%s11057_s1 + $0x154] ss:$8 sps:$4 sm:$0xff]   ;;  %v6771_v40 = vld [vmem:[%s11057_s1 + $0xe0] ss:$8 sps:$4 sm:$0xff]  }
  0x24   : > { %v7338_v38 = vld [vmem:[%s7272_s27 + $0x10] sm:$0xff]   ;;  %v6773_v41 = vld [vmem:[%s11057_s1 + $0xe4] ss:$8 sps:$4 sm:$0xff]   ;;  %v7362_v44 = vld [vmem:[%s7272_s27 + $0x18] sm:$0xff]  }
  0x25   : > { %699 = vmatpush1.bf16.msra.mxu0 %v6724_v15  ;;  %1083 = vmatpush1.bf16.msra.mxu1 %v6725_v16  ;;  %v6768_v39 = vld [vmem:[%s11057_s1 + $0x150] ss:$8 sps:$4 sm:$0xff]   ;;  %v6776_v42 = vld [vmem:[%s11057_s1 + $0x144] ss:$8 sps:$4 sm:$0xff]   ;;  %v6780_v43 = vld [vmem:[%s11057_s1 + $0xd4] ss:$8 sps:$4 sm:$0xff]  }
  0x26   : > { %700 = vmatprep.subr.bf16.mxu0 %v6726_v17  ;;  %1084 = vmatprep.subr.bf16.mxu1 %v6728_v18  ;;  %v6774_v45 = vld [vmem:[%s11057_s1 + $0x140] ss:$8 sps:$4 sm:$0xff]   ;;  %v6778_v46 = vld [vmem:[%s11057_s1 + $0xd0] ss:$8 sps:$4 sm:$0xff]   ;;  %v6783_v47 = vld [vmem:[%s11057_s1 + $0x134] ss:$8 sps:$4 sm:$0xff]  }
  0x27   : > { %v6781_v48 = vld [vmem:[%s11057_s1 + $0x130] ss:$8 sps:$4 sm:$0xff]   ;;  %v6786_v49 = vld [vmem:[%s11057_s1 + $0xc4] ss:$8 sps:$4 sm:$0xff]   ;;  %v6784_v50 = vld [vmem:[%s11057_s1 + $0xc0] ss:$8 sps:$4 sm:$0xff]  }
  0x28   : > { %v6789_v51 = vld [vmem:[%s11057_s1 + $0x124] ss:$8 sps:$4 sm:$0xff]   ;;  %v6787_v52 = vld [vmem:[%s11057_s1 + $0x120] ss:$8 sps:$4 sm:$0xff]   ;;  %v7413_v55 = vld [vmem:[%s7272_s27 + $0x30] sm:$0xff]   ;;  %v7592_v17 = vshrl.u32 %v945_v14, 7 }
  0x29   : > { %701 = vmatpush1.bf16.msra.mxu0 %v6730_v19  ;;  %1085 = vmatpush1.bf16.msra.mxu1 %v6731_v20  ;;  %v7395_v53 = vld [vmem:[%s7272_s27 + $0x20] sm:$0xff]   ;;  %v7404_v54 = vld [vmem:[%s7272_s27 + $0x28] sm:$0xff]   ;;  %v7422_v56 = vld [vmem:[%s7272_s27 + $0x38] sm:$0xff]  }
  0x2a   : > { %702 = vmatprep.subr.bf16.mxu0 %v6732_v21  ;;  %1086 = vmatprep.subr.bf16.mxu1 %v6734_v22  ;;  %v7431_v57 = vld [vmem:[%s7272_s27 + $0x40] sm:$0xff]   ;;  %v7440_v58 = vld [vmem:[%s7272_s27 + $0x48] sm:$0xff]   ;;  %v7449_v59 = vld [vmem:[%s7272_s27 + $0x50] sm:$0xff]   ;;  %vm947_vm1 = vcmp.lt.s32.totalorder %v7592_v17, 7  ;;  %vm1595_vm2 = vcmp.lt.s32.totalorder %v7592_v17, 6  ;;  %vm2054_vm3 = vcmp.lt.s32.totalorder %v7592_v17, 5 }
  0x2b   : > { %v7458_v60 = vld [vmem:[%s7272_s27 + $0x58] sm:$0xff]   ;;  %v7467_v61 = vld [vmem:[%s7272_s27 + $0x60] sm:$0xff]   ;;  %v7476_v62 = vld [vmem:[%s7272_s27 + $0x68] sm:$0xff]   ;;  %vm2513_vm4 = vcmp.lt.s32.totalorder %v7592_v17, 4  ;;  %vm5141_vm6 = vcmp.lt.s32.totalorder %v7592_v17, 2 }
  0x2c   : > { %v6792_v63 = vld [vmem:[%s11057_s1 + $0x1d4] ss:$8 sps:$4 sm:$0xff]   ;;  %v6790_v3 = vld [vmem:[%s11057_s1 + $0x1d0] ss:$8 sps:$4 sm:$0xff]   ;;  %v6795_v4 = vld [vmem:[%s11057_s1 + $0x1c4] ss:$8 sps:$4 sm:$0xff]  }
  0x2d   : > { %703 = vmatpush1.bf16.msra.mxu0 %v6736_v23  ;;  %1087 = vmatpush1.bf16.msra.mxu1 %v6737_v24  ;;  %v7488_v0 = vld [vmem:[%s7272_s27 + $0x70] sm:$0xff]   ;;  %v7497_v1 = vld [vmem:[%s7272_s27 + $0x78] sm:$0xff]   ;;  %v6793_v5 = vld [vmem:[%s11057_s1 + $0x1c0] ss:$8 sps:$4 sm:$0xff]  }
  0x2e   : > { %1342 = vmatprep.subr.bf16.mxu0 %v6753_v27  ;;  %1801 = vmatprep.subr.bf16.mxu1 %v6757_v29  ;;  %v6798_v6 = vld [vmem:[%s11057_s1 + $0x1b4] ss:$8 sps:$4 sm:$0xff]   ;;  %v6796_v7 = vld [vmem:[%s11057_s1 + $0x1b0] ss:$8 sps:$4 sm:$0xff]   ;;  %v6801_v8 = vld [vmem:[%s11057_s1 + $0x1a4] ss:$8 sps:$4 sm:$0xff]  }
  0x2f   : > { %v6799_v9 = vld [vmem:[%s11057_s1 + $0x1a0] ss:$8 sps:$4 sm:$0xff]   ;;  %v6804_v10 = vld [vmem:[%s11057_s1 + $0x194] ss:$8 sps:$4 sm:$0xff]   ;;  %v6802_v11 = vld [vmem:[%s11057_s1 + $0x190] ss:$8 sps:$4 sm:$0xff]  }
  0x30   : > { %5771 = vmatmul.mubr.msk.bf16.vlgmr.msra.gmra.mxu0 %vm639_vm0, %v7287_v25  ;;  %5799 = vmatmul.mubr.msk.bf16.vlgmr.msra.gmra.mxu1 %vm639_vm0, %v7287_v25  ;;  %v6807_v12 = vld [vmem:[%s11057_s1 + $0x184] ss:$8 sps:$4 sm:$0xff]   ;;  %v6805_v13 = vld [vmem:[%s11057_s1 + $0x180] ss:$8 sps:$4 sm:$0xff]  }
  0x31   : > { %730 = vmatprep.mubr.bf16.mxu0 %v11076_v2  ;;  %1114 = vmatprep.mubr.bf16.mxu1 %v11076_v2  ;;  %v5373_v17 = vld [vmem:[%s11064_s8] sm:$0xf] }
  0x32   : > { %1343 = vmatpush1.bf16.msra.mxu0 %v6751_v26  ;;  %1802 = vmatpush1.bf16.msra.mxu1 %v6755_v30 }
  0x33   : > { %1344 = vmatprep.subr.bf16.mxu0 %v6760_v31  ;;  %1803 = vmatprep.subr.bf16.mxu1 %v6763_v33 }
  0x36   : > { %1345 = vmatpush1.bf16.msra.mxu0 %v6758_v32  ;;  %1804 = vmatpush1.bf16.msra.mxu1 %v6761_v34 }
  0x37   : > { %1346 = vmatprep.subr.bf16.mxu0 %v6767_v35  ;;  %1805 = vmatprep.subr.bf16.mxu1 %v6770_v37 }
  0x38   : > { %5772 = vmatmul.mubr.msk.bf16.gmra.mxu0 %vm639_vm0, %v7302_v28  ;;  %5800 = vmatmul.mubr.msk.bf16.gmra.mxu1 %vm639_vm0, %v7302_v28 }
  0x39   : > { %740 = vmatprep.mubr.bf16.mxu0 %v11076_v2  ;;  %1124 = vmatprep.mubr.bf16.mxu1 %v11076_v2 }
  0x3a   : > { %1347 = vmatpush1.bf16.msra.mxu0 %v6765_v36  ;;  %1806 = vmatpush1.bf16.msra.mxu1 %v6768_v39 }
  0x3b   : > { %1348 = vmatprep.subr.bf16.mxu0 %v6773_v41  ;;  %1807 = vmatprep.subr.bf16.mxu1 %v6776_v42 }
  0x3e   : > { %1349 = vmatpush1.bf16.msra.mxu0 %v6771_v40  ;;  %1808 = vmatpush1.bf16.msra.mxu1 %v6774_v45 }
  0x3f   : > { %1350 = vmatprep.subr.bf16.mxu0 %v6780_v43  ;;  %1809 = vmatprep.subr.bf16.mxu1 %v6783_v47 }
  0x40   : > { %5773 = vmatmul.mubr.msk.bf16.gmra.mxu0 %vm639_vm0, %v7338_v38  ;;  %5801 = vmatmul.mubr.msk.bf16.gmra.mxu1 %vm639_vm0, %v7338_v38 }
  0x41   : > { %750 = vmatprep.mubr.bf16.mxu0 %v11076_v2  ;;  %1134 = vmatprep.mubr.bf16.mxu1 %v11076_v2 }
  0x42   : > { %1351 = vmatpush1.bf16.msra.mxu0 %v6778_v46  ;;  %1810 = vmatpush1.bf16.msra.mxu1 %v6781_v48 }
  0x43   : > { %1352 = vmatprep.subr.bf16.mxu0 %v6786_v49  ;;  %1811 = vmatprep.subr.bf16.mxu1 %v6789_v51 }
  0x46   : > { %1353 = vmatpush1.bf16.msra.mxu0 %v6784_v50  ;;  %1812 = vmatpush1.bf16.msra.mxu1 %v6787_v52 }
  0x47   : > { %2260 = vmatprep.subr.bf16.mxu0 %v6792_v63 }
  0x48   : > { %5774 = vmatmul.mubr.msk.bf16.gmra.mxu0 %vm639_vm0, %v7362_v44  ;;  %5802 = vmatmul.mubr.msk.bf16.gmra.mxu1 %vm639_vm0, %v7362_v44 }
  0x49   : > { %760 = vmatprep.mubr.bf16.mxu0 %v11076_v2  ;;  %1144 = vmatprep.mubr.bf16.mxu1 %v11076_v2 }
  0x50   : > { %5775 = vmatmul.mubr.msk.bf16.gmra.mxu0 %vm639_vm0, %v7395_v53  ;;  %5803 = vmatmul.mubr.msk.bf16.gmra.mxu1 %vm639_vm0, %v7395_v53 }
  0x51   : > { %770 = vmatprep.mubr.bf16.mxu0 %v11076_v2  ;;  %1154 = vmatprep.mubr.bf16.mxu1 %v11076_v2 }
  0x58   : > { %5776 = vmatmul.mubr.msk.bf16.gmra.mxu0 %vm639_vm0, %v7404_v54  ;;  %5804 = vmatmul.mubr.msk.bf16.gmra.mxu1 %vm639_vm0, %v7404_v54 }
  0x59   : > { %780 = vmatprep.mubr.bf16.mxu0 %v11076_v2  ;;  %1164 = vmatprep.mubr.bf16.mxu1 %v11076_v2 }
  0x60   : > { %5777 = vmatmul.mubr.msk.bf16.gmra.mxu0 %vm639_vm0, %v7413_v55  ;;  %5805 = vmatmul.mubr.msk.bf16.gmra.mxu1 %vm639_vm0, %v7413_v55 }
  0x61   : > { %790 = vmatprep.mubr.bf16.mxu0 %v11076_v2  ;;  %1174 = vmatprep.mubr.bf16.mxu1 %v11076_v2 }
  0x68   : > { %5778 = vmatmul.mubr.msk.bf16.gmra.mxu0 %vm639_vm0, %v7422_v56  ;;  %5806 = vmatmul.mubr.msk.bf16.gmra.mxu1 %vm639_vm0, %v7422_v56 }
  0x69   : > { %800 = vmatprep.mubr.bf16.mxu0 %v11076_v2  ;;  %1184 = vmatprep.mubr.bf16.mxu1 %v11076_v2 }
  0x70   : > { %5779 = vmatmul.mubr.msk.bf16.gmra.mxu0 %vm639_vm0, %v7431_v57  ;;  %5807 = vmatmul.mubr.msk.bf16.gmra.mxu1 %vm639_vm0, %v7431_v57 }
  0x71   : > { %810 = vmatprep.mubr.bf16.mxu0 %v11076_v2  ;;  %1194 = vmatprep.mubr.bf16.mxu1 %v11076_v2 }
  0x78   : > { %5780 = vmatmul.mubr.msk.bf16.gmra.mxu0 %vm639_vm0, %v7440_v58  ;;  %5808 = vmatmul.mubr.msk.bf16.gmra.mxu1 %vm639_vm0, %v7440_v58 }
  0x79   : > { %820 = vmatprep.mubr.bf16.mxu0 %v11076_v2  ;;  %1204 = vmatprep.mubr.bf16.mxu1 %v11076_v2 }
  0x80   : > { %5781 = vmatmul.mubr.msk.bf16.gmra.mxu0 %vm639_vm0, %v7449_v59  ;;  %5809 = vmatmul.mubr.msk.bf16.gmra.mxu1 %vm639_vm0, %v7449_v59 }
  0x81   : > { %830 = vmatprep.mubr.bf16.mxu0 %v11076_v2  ;;  %1214 = vmatprep.mubr.bf16.mxu1 %v11076_v2 }
  0x88   : > { %5782 = vmatmul.mubr.msk.bf16.gmra.mxu0 %vm639_vm0, %v7458_v60  ;;  %5810 = vmatmul.mubr.msk.bf16.gmra.mxu1 %vm639_vm0, %v7458_v60 }
  0x89   : > { %840 = vmatprep.mubr.bf16.mxu0 %v11076_v2  ;;  %1224 = vmatprep.mubr.bf16.mxu1 %v11076_v2 }
  0x90   : > { %5783 = vmatmul.mubr.msk.bf16.gmra.mxu0 %vm639_vm0, %v7467_v61  ;;  %5811 = vmatmul.mubr.msk.bf16.gmra.mxu1 %vm639_vm0, %v7467_v61 }
  0x91   : > { %850 = vmatprep.mubr.bf16.mxu0 %v11076_v2  ;;  %1234 = vmatprep.mubr.bf16.mxu1 %v11076_v2 }
  0x98   : > { %5784 = vmatmul.mubr.msk.bf16.gmra.mxu0 %vm639_vm0, %v7476_v62  ;;  %5812 = vmatmul.mubr.msk.bf16.gmra.mxu1 %vm639_vm0, %v7476_v62 }
  0x99   : > { %860 = vmatprep.mubr.bf16.mxu0 %v11076_v2  ;;  %1244 = vmatprep.mubr.bf16.mxu1 %v11076_v2 }
  0xa0   : > { %5785 = vmatmul.mubr.msk.bf16.gmra.mxu0 %vm639_vm0, %v7488_v0  ;;  %5813 = vmatmul.mubr.msk.bf16.gmra.mxu1 %vm639_vm0, %v7488_v0 }
  0xa1   : > { %870 = vmatprep.mubr.bf16.mxu0 %v11076_v2  ;;  %1254 = vmatprep.mubr.bf16.mxu1 %v11076_v2 }
  0xa8   : > { %5786 = vmatmul.mubr.msk.bf16.gmra.mxu0 %vm639_vm0, %v7497_v1  ;;  %5814 = vmatmul.mubr.msk.bf16.gmra.mxu1 %vm639_vm0, %v7497_v1 }
  0xa9   : > { %1370 = vmatprep.mubr.bf16.mxu0 %v11076_v2  ;;  %1829 = vmatprep.mubr.bf16.mxu1 %v11076_v2 }
  0xb0   : > { %5839 = vmatmul.mubr.msk.bf16.vlgmr.msra.gmra.mxu0 %vm639_vm0, %v7287_v25  ;;  %5879 = vmatmul.mubr.msk.bf16.vlgmr.msra.gmra.mxu1 %vm639_vm0, %v7287_v25 }
  0xb1   : > { %1380 = vmatprep.mubr.bf16.mxu0 %v11076_v2  ;;  %1839 = vmatprep.mubr.bf16.mxu1 %v11076_v2 }
  0xb2   : > { %2261 = vmatpush1.bf16.msra.mxu0 %v6790_v3 }
  0xb3   : > { %2262 = vmatprep.subr.bf16.mxu0 %v6795_v4 }
  0xb6   : > { %2263 = vmatpush1.bf16.msra.mxu0 %v6793_v5 }
  0xb7   : > { %2264 = vmatprep.subr.bf16.mxu0 %v6798_v6 }
  0xb8   : > { %5840 = vmatmul.mubr.msk.bf16.gmra.mxu0 %vm639_vm0, %v7302_v28  ;;  %5880 = vmatmul.mubr.msk.bf16.gmra.mxu1 %vm639_vm0, %v7302_v28 }
  0xb9   : > { %1390 = vmatprep.mubr.bf16.mxu0 %v11076_v2  ;;  %1849 = vmatprep.mubr.bf16.mxu1 %v11076_v2 }
  0xba   : > { %2265 = vmatpush1.bf16.msra.mxu0 %v6796_v7 }
  0xbb   : > { %2266 = vmatprep.subr.bf16.mxu0 %v6801_v8 }
  0xbe   : > { %2267 = vmatpush1.bf16.msra.mxu0 %v6799_v9 }
  0xbf   : > { %2268 = vmatprep.subr.bf16.mxu0 %v6804_v10 }
  0xc0   : > { %5841 = vmatmul.mubr.msk.bf16.gmra.mxu0 %vm639_vm0, %v7338_v38  ;;  %5881 = vmatmul.mubr.msk.bf16.gmra.mxu1 %vm639_vm0, %v7338_v38 }
  0xc1   : > { %1400 = vmatprep.mubr.bf16.mxu0 %v11076_v2  ;;  %1859 = vmatprep.mubr.bf16.mxu1 %v11076_v2 }
  0xc2   : > { %2269 = vmatpush1.bf16.msra.mxu0 %v6802_v11 }
  0xc3   : > { %2270 = vmatprep.subr.bf16.mxu0 %v6807_v12 }
  0xc6   : > { %2271 = vmatpush1.bf16.msra.mxu0 %v6805_v13 }
  0xc8   : > { %5842 = vmatmul.mubr.msk.bf16.gmra.mxu0 %vm639_vm0, %v7362_v44  ;;  %5882 = vmatmul.mubr.msk.bf16.gmra.mxu1 %vm639_vm0, %v7362_v44 }
  0xc9   : > { %1410 = vmatprep.mubr.bf16.mxu0 %v11076_v2  ;;  %1869 = vmatprep.mubr.bf16.mxu1 %v11076_v2 }
  0xd0   : > { %5843 = vmatmul.mubr.msk.bf16.gmra.mxu0 %vm639_vm0, %v7395_v53  ;;  %5883 = vmatmul.mubr.msk.bf16.gmra.mxu1 %vm639_vm0, %v7395_v53 }
  0xd1   : > { %1420 = vmatprep.mubr.bf16.mxu0 %v11076_v2  ;;  %1879 = vmatprep.mubr.bf16.mxu1 %v11076_v2 }
  0xd8   : > { %5844 = vmatmul.mubr.msk.bf16.gmra.mxu0 %vm639_vm0, %v7404_v54  ;;  %5884 = vmatmul.mubr.msk.bf16.gmra.mxu1 %vm639_vm0, %v7404_v54 }
  0xd9   : > { %1430 = vmatprep.mubr.bf16.mxu0 %v11076_v2  ;;  %1889 = vmatprep.mubr.bf16.mxu1 %v11076_v2 }
  0xe0   : > { %5845 = vmatmul.mubr.msk.bf16.gmra.mxu0 %vm639_vm0, %v7413_v55  ;;  %5885 = vmatmul.mubr.msk.bf16.gmra.mxu1 %vm639_vm0, %v7413_v55 }
  0xe1   : > { %1440 = vmatprep.mubr.bf16.mxu0 %v11076_v2  ;;  %1899 = vmatprep.mubr.bf16.mxu1 %v11076_v2 }
  0xe8   : > { %5846 = vmatmul.mubr.msk.bf16.gmra.mxu0 %vm639_vm0, %v7422_v56  ;;  %5886 = vmatmul.mubr.msk.bf16.gmra.mxu1 %vm639_vm0, %v7422_v56 }
  0xe9   : > { %1450 = vmatprep.mubr.bf16.mxu0 %v11076_v2  ;;  %1909 = vmatprep.mubr.bf16.mxu1 %v11076_v2 }
  0xf0   : > { %v7586_v15 = vpop.f32.mrf.mxu0  ;;  %v1106_v16 = vpop.f32.mrf.mxu1  ;;  %5847 = vmatmul.mubr.msk.bf16.gmra.mxu0 %vm639_vm0, %v7431_v57  ;;  %5887 = vmatmul.mubr.msk.bf16.gmra.mxu1 %vm639_vm0, %v7431_v57 }
  0xf1   : > { %1460 = vmatprep.mubr.bf16.mxu0 %v11076_v2  ;;  %1919 = vmatprep.mubr.bf16.mxu1 %v11076_v2  ;;  %v11075_v22 = vrot.slane %v7586_v15, 1 }
  0xf2   : > { %v7596_v18 = vpop.f32.mrf.mxu0  ;;  %v1108_v19 = vpop.f32.mrf.mxu1 }
  0xf3   : > { %v11074_v26 = vrot.slane %v7596_v18, 1 }
  0xf4   : > { %v726_v20 = vpop.f32.mrf.mxu0  ;;  %v1110_v21 = vpop.f32.mrf.mxu1 }
  0xf5   : > { %v883_v23 = vrot.slane %v726_v20, 1 }
  0xf6   : > { %v728_v24 = vpop.f32.mrf.mxu0  ;;  %v1112_v25 = vpop.f32.mrf.mxu1 }
  0xf7   : > { %v1008_v27 = vsel %vm947_vm1, %v11075_v22, %v883_v23  ;;  %v884_v28 = vrot.slane %v728_v24, 1 }
  0xf8   : > { %v7605_v29 = vadd.f32 %v1106_v16, %v1008_v27  ;;  %v732_v30 = vpop.f32.mrf.mxu0  ;;  %v1116_v31 = vpop.f32.mrf.mxu1  ;;  %5848 = vmatmul.mubr.msk.bf16.gmra.mxu0 %vm639_vm0, %v7440_v58  ;;  %5888 = vmatmul.mubr.msk.bf16.gmra.mxu1 %vm639_vm0, %v7440_v58 }
  0xf9   : > { %v1009_v32 = vsel %vm947_vm1, %v11074_v26, %v884_v28  ;;  %v885_v33 = vrot.slane %v732_v30, 1  ;;  %1470 = vmatprep.mubr.bf16.mxu0 %v11076_v2  ;;  %1929 = vmatprep.mubr.bf16.mxu1 %v11076_v2 }
  0xfa   : > { %v7617_v34 = vadd.f32 %v1108_v19, %v1009_v32  ;;  %v734_v35 = vpop.f32.mrf.mxu0  ;;  %v1118_v36 = vpop.f32.mrf.mxu1 }
  0xfb   : > { %v1006_v37 = vsel %vm947_vm1, %v883_v23, %v885_v33  ;;  %v886_v38 = vrot.slane %v734_v35, 1 }
  0xfc   : > { %v7621_v39 = vadd.f32 %v1110_v21, %v1006_v37  ;;  %v736_v40 = vpop.f32.mrf.mxu0  ;;  %v1120_v41 = vpop.f32.mrf.mxu1 }
  0xfd   : > { %v1007_v42 = vsel %vm947_vm1, %v884_v28, %v886_v38  ;;  %v887_v43 = vrot.slane %v736_v40, 1 }
  0xfe   : > { %v7625_v44 = vadd.f32 %v1112_v25, %v1007_v42  ;;  %v738_v45 = vpop.f32.mrf.mxu0  ;;  %v1122_v46 = vpop.f32.mrf.mxu1 }
  0xff   : > { %v1004_v47 = vsel %vm947_vm1, %v885_v33, %v887_v43  ;;  %v888_v48 = vrot.slane %v738_v45, 1 }
 0x100   : > { %v7629_v49 = vadd.f32 %v1116_v31, %v1004_v47  ;;  %v742_v50 = vpop.f32.mrf.mxu0  ;;  %v1126_v51 = vpop.f32.mrf.mxu1  ;;  %5849 = vmatmul.mubr.msk.bf16.gmra.mxu0 %vm639_vm0, %v7449_v59  ;;  %5889 = vmatmul.mubr.msk.bf16.gmra.mxu1 %vm639_vm0, %v7449_v59 }
 0x101   : > { %v1005_v52 = vsel %vm947_vm1, %v886_v38, %v888_v48  ;;  %v889_v53 = vrot.slane %v742_v50, 1  ;;  %1480 = vmatprep.mubr.bf16.mxu0 %v11076_v2  ;;  %1939 = vmatprep.mubr.bf16.mxu1 %v11076_v2 }
 0x102   : > { %v7639_v54 = vadd.f32 %v1118_v36, %v1005_v52  ;;  %v744_v55 = vpop.f32.mrf.mxu0  ;;  %v1128_v56 = vpop.f32.mrf.mxu1 }
 0x103   : > { %v1002_v57 = vsel %vm947_vm1, %v887_v43, %v889_v53  ;;  %v890_v58 = vrot.slane %v744_v55, 1 }
 0x104   : > { %v7643_v63 = vadd.f32 %v1120_v41, %v1002_v57  ;;  %v746_v3 = vpop.f32.mrf.mxu0  ;;  %v1130_v59 = vpop.f32.mrf.mxu1 }
 0x105   : > { %v1003_v4 = vsel %vm947_vm1, %v888_v48, %v890_v58  ;;  %v891_v5 = vrot.slane %v746_v3, 1 }
 0x106   : > { %v7647_v6 = vadd.f32 %v1122_v46, %v1003_v4  ;;  %v748_v7 = vpop.f32.mrf.mxu0  ;;  %v1132_v8 = vpop.f32.mrf.mxu1 }
 0x107   : > { %v1000_v9 = vsel %vm947_vm1, %v889_v53, %v891_v5  ;;  %v892_v10 = vrot.slane %v748_v7, 1 }
 0x108   : > { %v7651_v11 = vadd.f32 %v1126_v51, %v1000_v9  ;;  %v752_v12 = vpop.f32.mrf.mxu0  ;;  %v1136_v13 = vpop.f32.mrf.mxu1  ;;  %5850 = vmatmul.mubr.msk.bf16.gmra.mxu0 %vm639_vm0, %v7458_v60  ;;  %5890 = vmatmul.mubr.msk.bf16.gmra.mxu1 %vm639_vm0, %v7458_v60 }
 0x109   : > { %v1001_v14 = vsel %vm947_vm1, %v890_v58, %v892_v10  ;;  %v893_v16 = vrot.slane %v752_v12, 1  ;;  %1490 = vmatprep.mubr.bf16.mxu0 %v11076_v2  ;;  %1949 = vmatprep.mubr.bf16.mxu1 %v11076_v2 }
 0x10a   : > { %v7661_v19 = vadd.f32 %v1128_v56, %v1001_v14  ;;  %v754_v20 = vpop.f32.mrf.mxu0  ;;  %v1138_v21 = vpop.f32.mrf.mxu1 }
 0x10b   : > { %v998_v23 = vsel %vm947_vm1, %v891_v5, %v893_v16  ;;  %v894_v24 = vrot.slane %v754_v20, 1 }
 0x10c   : > { %v7665_v25 = vadd.f32 %v1130_v59, %v998_v23  ;;  %v756_v27 = vpop.f32.mrf.mxu0  ;;  %v1140_v60 = vpop.f32.mrf.mxu1 }
 0x10d   : > { %v999_v28 = vsel %vm947_vm1, %v892_v10, %v894_v24  ;;  %v895_v30 = vrot.slane %v756_v27, 1 }
 0x10e   : > { %v7669_v31 = vadd.f32 %v1132_v8, %v999_v28  ;;  %v758_v32 = vpop.f32.mrf.mxu0  ;;  %v1142_v33 = vpop.f32.mrf.mxu1 }
 0x10f   : > { %v996_v35 = vsel %vm947_vm1, %v893_v16, %v895_v30  ;;  %v896_v36 = vrot.slane %v758_v32, 1 }
 0x110   : > { %v7673_v37 = vadd.f32 %v1136_v13, %v996_v35  ;;  %v762_v38 = vpop.f32.mrf.mxu0  ;;  %v1146_v40 = vpop.f32.mrf.mxu1  ;;  %5851 = vmatmul.mubr.msk.bf16.gmra.mxu0 %vm639_vm0, %v7467_v61  ;;  %5891 = vmatmul.mubr.msk.bf16.gmra.mxu1 %vm639_vm0, %v7467_v61 }
 0x111   : > { %v997_v41 = vsel %vm947_vm1, %v894_v24, %v896_v36  ;;  %v897_v42 = vrot.slane %v762_v38, 1  ;;  %1500 = vmatprep.mubr.bf16.mxu0 %v11076_v2  ;;  %1959 = vmatprep.mubr.bf16.mxu1 %v11076_v2 }
 0x112   : > { %v7683_v43 = vadd.f32 %v1138_v21, %v997_v41  ;;  %v764_v45 = vpop.f32.mrf.mxu0  ;;  %v1148_v46 = vpop.f32.mrf.mxu1 }
 0x113   : > { %v994_v47 = vsel %vm947_vm1, %v895_v30, %v897_v42  ;;  %v898_v48 = vrot.slane %v764_v45, 1 }
 0x114   : > { %v7687_v50 = vadd.f32 %v1140_v60, %v994_v47  ;;  %v766_v51 = vpop.f32.mrf.mxu0  ;;  %v1150_v61 = vpop.f32.mrf.mxu1 }
 0x115   : > { %v995_v52 = vsel %vm947_vm1, %v896_v36, %v898_v48  ;;  %v899_v53 = vrot.slane %v766_v51, 1 }
 0x116   : > { %v7691_v55 = vadd.f32 %v1142_v33, %v995_v52  ;;  %v768_v56 = vpop.f32.mrf.mxu0  ;;  %v7693_v57 = vpop.f32.mrf.mxu1 }
 0x117   : > { %v992_v58 = vsel %vm947_vm1, %v897_v42, %v899_v53  ;;  %v900_v3 = vrot.slane %v768_v56, 1 }
 0x118   : > { %v7697_v59 = vadd.f32 %v1146_v40, %v992_v58  ;;  %v772_v4 = vpop.f32.mrf.mxu0  ;;  %v1156_v5 = vpop.f32.mrf.mxu1  ;;  %5852 = vmatmul.mubr.msk.bf16.gmra.mxu0 %vm639_vm0, %v7476_v62  ;;  %5892 = vmatmul.mubr.msk.bf16.gmra.mxu1 %vm639_vm0, %v7476_v62 }
 0x119   : > { %v993_v7 = vsel %vm947_vm1, %v898_v48, %v900_v3  ;;  %v901_v8 = vrot.slane %v772_v4, 1  ;;  %1510 = vmatprep.mubr.bf16.mxu0 %v11076_v2  ;;  %1969 = vmatprep.mubr.bf16.mxu1 %v11076_v2 }
 0x11a   : > { %v7707_v9 = vadd.f32 %v1148_v46, %v993_v7  ;;  %v774_v10 = vpop.f32.mrf.mxu0  ;;  %v1158_v12 = vpop.f32.mrf.mxu1 }
 0x11b   : > { %v990_v13 = vsel %vm947_vm1, %v899_v53, %v901_v8  ;;  %v902_v14 = vrot.slane %v774_v10, 1 }
 0x11c   : > { %v7711_v16 = vadd.f32 %v1150_v61, %v990_v13  ;;  %v776_v20 = vpop.f32.mrf.mxu0  ;;  %v1160_v62 = vpop.f32.mrf.mxu1 }
 0x11d   : > { %v7715_v21 = vsel %vm947_vm1, %v900_v3, %v902_v14  ;;  %v903_v23 = vrot.slane %v776_v20, 1 }
 0x11e   : > { %v778_v24 = vpop.f32.mrf.mxu0  ;;  %v7717_v27 = vpop.f32.mrf.mxu1 }
 0x11f   : > { %v988_v60 = vsel %vm947_vm1, %v901_v8, %v903_v23  ;;  %v904_v28 = vrot.slane %v778_v24, 1 }
 0x120   : > { %v7721_v30 = vadd.f32 %v1156_v5, %v988_v60  ;;  %v782_v32 = vpop.f32.mrf.mxu0  ;;  %v1166_v33 = vpop.f32.mrf.mxu1  ;;  %5853 = vmatmul.mubr.msk.bf16.gmra.mxu0 %vm639_vm0, %v7488_v0  ;;  %5893 = vmatmul.mubr.msk.bf16.gmra.mxu1 %vm639_vm0, %v7488_v0 }
 0x121   : > { %v989_v35 = vsel %vm947_vm1, %v902_v14, %v904_v28  ;;  %v905_v36 = vrot.slane %v782_v32, 1  ;;  %1520 = vmatprep.mubr.bf16.mxu0 %v11076_v2  ;;  %1979 = vmatprep.mubr.bf16.mxu1 %v11076_v2 }
 0x122   : > { %v7731_v38 = vadd.f32 %v1158_v12, %v989_v35  ;;  %v784_v40 = vpop.f32.mrf.mxu0  ;;  %v1168_v41 = vpop.f32.mrf.mxu1 }
 0x123   : > { %v986_v42 = vsel %vm947_vm1, %v903_v23, %v905_v36  ;;  %v906_v45 = vrot.slane %v784_v40, 1 }
 0x124   : > { %v7735_v46 = vadd.f32 %v1160_v62, %v986_v42  ;;  %v786_v47 = vpop.f32.mrf.mxu0  ;;  %v1170_v0 = vpop.f32.mrf.mxu1 }
 0x125   : > { %v7739_v48 = vsel %vm947_vm1, %v904_v28, %v906_v45  ;;  %v907_v51 = vrot.slane %v786_v47, 1 }
 0x126   : > { %v788_v61 = vpop.f32.mrf.mxu0  ;;  %v7741_v52 = vpop.f32.mrf.mxu1 }
 0x127   : > { %v984_v53 = vsel %vm947_vm1, %v905_v36, %v907_v51  ;;  %v908_v56 = vrot.slane %v788_v61, 1 }
 0x128   : > { %v7745_v58 = vadd.f32 %v1166_v33, %v984_v53  ;;  %v792_v3 = vpop.f32.mrf.mxu0  ;;  %v1176_v4 = vpop.f32.mrf.mxu1  ;;  %5854 = vmatmul.mubr.msk.bf16.gmra.mxu0 %vm639_vm0, %v7497_v1  ;;  %5894 = vmatmul.mubr.msk.bf16.gmra.mxu1 %vm639_vm0, %v7497_v1 }
 0x129   : > { %v985_v5 = vsel %vm947_vm1, %v906_v45, %v908_v56  ;;  %v909_v7 = vrot.slane %v792_v3, 1  ;;  %2288 = vmatprep.mubr.bf16.mxu0 %v11076_v2 }
 0x12a   : > { %v7754_v8 = vadd.f32 %v1168_v41, %v985_v5  ;;  %v794_v10 = vpop.f32.mrf.mxu0  ;;  %v1178_v12 = vpop.f32.mrf.mxu1  ;;  %v7005_v41 = vld [vmem:[%s7272_s27] sm:$0xff]  }
 0x12b   : > { %v982_v13 = vsel %vm947_vm1, %v907_v51, %v909_v7  ;;  %v910_v14 = vrot.slane %v794_v10, 1 }
 0x12c   : > { %v7758_v20 = vadd.f32 %v1170_v0, %v982_v13  ;;  %v796_v62 = vpop.f32.mrf.mxu0  ;;  %v1180_v23 = vpop.f32.mrf.mxu1 }
 0x12d   : > { %v7762_v1 = vsel %vm947_vm1, %v908_v56, %v910_v14  ;;  %v911_v24 = vrot.slane %v796_v62, 1 }
 0x12e   : > { %v798_v60 = vpop.f32.mrf.mxu0  ;;  %v7764_v28 = vpop.f32.mrf.mxu1 }
 0x12f   : > { %v980_v32 = vsel %vm947_vm1, %v909_v7, %v911_v24  ;;  %v912_v33 = vrot.slane %v798_v60, 1 }
 0x130   : > { %v7768_v35 = vadd.f32 %v1176_v4, %v980_v32  ;;  %v802_v36 = vpop.f32.mrf.mxu0  ;;  %v1186_v40 = vpop.f32.mrf.mxu1  ;;  %5919 = vmatmul.mubr.msk.bf16.vlgmr.msra.gmra.mxu0 %vm639_vm0, %v7005_v41 }
 0x131   : > { %v981_v42 = vsel %vm947_vm1, %v910_v14, %v912_v33  ;;  %v913_v45 = vrot.slane %v802_v36, 1  ;;  %2298 = vmatprep.mubr.bf16.mxu0 %v11076_v2 }
 0x132   : > { %v7775_v47 = vadd.f32 %v1178_v12, %v981_v42  ;;  %v804_v0 = vpop.f32.mrf.mxu0  ;;  %v1188_v51 = vpop.f32.mrf.mxu1 }
 0x133   : > { %v978_v61 = vsel %vm947_vm1, %v911_v24, %v913_v45  ;;  %v914_v53 = vrot.slane %v804_v0, 1 }
 0x134   : > { %v7779_v56 = vadd.f32 %v1180_v23, %v978_v61  ;;  %v806_v3 = vpop.f32.mrf.mxu0  ;;  %v1190_v4 = vpop.f32.mrf.mxu1  ;;  %v7006_v23 = vld [vmem:[%s7272_s27 + $0x8] sm:$0xff]  }
 0x135   : > { %v7783_v5 = vsel %vm947_vm1, %v912_v33, %v914_v53  ;;  %v915_v7 = vrot.slane %v806_v3, 1 }
 0x136   : > { %v808_v10 = vpop.f32.mrf.mxu0  ;;  %v7785_v13 = vpop.f32.mrf.mxu1 }
 0x137   : > { %v976_v12 = vsel %vm947_vm1, %v913_v45, %v915_v7  ;;  %v916_v14 = vrot.slane %v808_v10, 1 }
 0x138   : > { %v7789_v62 = vadd.f32 %v1186_v40, %v976_v12  ;;  %v812_v24 = vpop.f32.mrf.mxu0  ;;  %v1196_v60 = vpop.f32.mrf.mxu1  ;;  %5920 = vmatmul.mubr.msk.bf16.gmra.mxu0 %vm639_vm0, %v7006_v23 }
 0x139   : > { %v977_v32 = vsel %vm947_vm1, %v914_v53, %v916_v14  ;;  %v917_v33 = vrot.slane %v812_v24, 1  ;;  %2308 = vmatprep.mubr.bf16.mxu0 %v11076_v2 }
 0x13a   : > { %v7796_v36 = vadd.f32 %v1188_v51, %v977_v32  ;;  %v814_v41 = vpop.f32.mrf.mxu0  ;;  %v1198_v42 = vpop.f32.mrf.mxu1 }
 0x13b   : > { %v974_v40 = vsel %vm947_vm1, %v915_v7, %v917_v33  ;;  %v918_v45 = vrot.slane %v814_v41, 1 }
 0x13c   : > { %v7800_v0 = vadd.f32 %v1190_v4, %v974_v40  ;;  %v816_v61 = vpop.f32.mrf.mxu0  ;;  %v1200_v3 = vpop.f32.mrf.mxu1  ;;  %v7007_v4 = vld [vmem:[%s7272_s27 + $0x10] sm:$0xff]  }
 0x13d   : > { %v7804_v10 = vsel %vm947_vm1, %v916_v14, %v918_v45  ;;  %v919_v53 = vrot.slane %v816_v61, 1 }
 0x13e   : > { %v818_v12 = vpop.f32.mrf.mxu0  ;;  %v7806_v24 = vpop.f32.mrf.mxu1 }
 0x13f   : > { %11121 = vst [vmem:[#allocation9_spill] sm:$0xff] %v7806_v24  ;;  %v972_v51 = vsel %vm947_vm1, %v917_v33, %v919_v53  ;;  %v920_v23 = vrot.slane %v818_v12, 1 }
 0x140   : > { %v7810_v32 = vadd.f32 %v1196_v60, %v972_v51  ;;  %v822_v7 = vpop.f32.mrf.mxu0  ;;  %v1206_v41 = vpop.f32.mrf.mxu1  ;;  %5921 = vmatmul.mubr.msk.bf16.gmra.mxu0 %vm639_vm0, %v7007_v4 }
 0x141   : > { %v973_v40 = vsel %vm947_vm1, %v918_v45, %v920_v23  ;;  %v921_v14 = vrot.slane %v822_v7, 1  ;;  %2318 = vmatprep.mubr.bf16.mxu0 %v11076_v2 }
 0x142   : > { %11122 = vst [vmem:[#allocation10_spill] sm:$0xff] %v7810_v32  ;;  %v7817_v61 = vadd.f32 %v1198_v42, %v973_v40  ;;  %v824_v26 = vpop.f32.mrf.mxu0  ;;  %v1208_v22 = vpop.f32.mrf.mxu1 }
 0x143   : > { %v970_v60 = vsel %vm947_vm1, %v919_v53, %v921_v14  ;;  %v922_v33 = vrot.slane %v824_v26, 1 }
 0x144   : > { %11123 = vst [vmem:[#allocation11_spill] sm:$0xff] %v7817_v61  ;;  %v7821_v12 = vadd.f32 %v1200_v3, %v970_v60  ;;  %v826_v51 = vpop.f32.mrf.mxu0  ;;  %v1210_v24 = vpop.f32.mrf.mxu1  ;;  %v7008_v3 = vld [vmem:[%s7272_s27 + $0x18] sm:$0xff]  }
 0x145   : > { %v7825_v4 = vsel %vm947_vm1, %v920_v23, %v922_v33  ;;  %v923_v45 = vrot.slane %v826_v51, 1 }
 0x146   : > { %11124 = vst [vmem:[#allocation12_spill] sm:$0xff] %v7821_v12  ;;  %11125 = vst [vmem:[#allocation13_spill] sm:$0xff] %v7825_v4  ;;  %v828_v7 = vpop.f32.mrf.mxu0  ;;  %v7827_v2 = vpop.f32.mrf.mxu1  ;;  %v11128_v12 = vmov 0  }
 0x147   : > { %11126 = vst [vmem:[#allocation14_spill] sm:$0xff] %v7827_v2  ;;  %v968_v42 = vsel %vm947_vm1, %v921_v14, %v923_v45  ;;  %v924_v40 = vrot.slane %v828_v7, 1 }
 0x148   : > { %v7831_v61 = vadd.f32 %v1206_v41, %v968_v42  ;;  %v832_v53 = vpop.f32.mrf.mxu0  ;;  %v1216_v26 = vpop.f32.mrf.mxu1  ;;  %5922 = vmatmul.mubr.msk.bf16.gmra.mxu0 %vm639_vm0, %v7008_v3 }
 0x149   : > { %v969_v60 = vsel %vm947_vm1, %v922_v33, %v924_v40  ;;  %v925_v23 = vrot.slane %v832_v53, 1  ;;  %2328 = vmatprep.mubr.bf16.mxu0 %v11128_v12 }
 0x14a   : > { %11127 = vst [vmem:[#allocation15_spill] sm:$0xff] %v7831_v61  ;;  %v7838_v51 = vadd.f32 %v1208_v22, %v969_v60  ;;  %v834_v2 = vpop.f32.mrf.mxu0  ;;  %v1218_v4 = vpop.f32.mrf.mxu1 }
 0x14b   : > { %v966_v41 = vsel %vm947_vm1, %v923_v45, %v925_v23  ;;  %v926_v14 = vrot.slane %v834_v2, 1 }
 0x14c   : > { %11129 = vst [vmem:[#allocation16_spill] sm:$0xff] %v7838_v51  ;;  %v7842_v7 = vadd.f32 %v1210_v24, %v966_v41  ;;  %v836_v42 = vpop.f32.mrf.mxu0  ;;  %v1220_v61 = vpop.f32.mrf.mxu1  ;;  %v7009_v24 = vld [vmem:[%s7272_s27 + $0x20] sm:$0xff]  }
 0x14d   : > { %v7846_v3 = vsel %vm947_vm1, %v924_v40, %v926_v14  ;;  %v927_v33 = vrot.slane %v836_v42, 1 }
 0x14e   : > { %11130 = vst [vmem:[#allocation17_spill] sm:$0xff] %v7842_v7  ;;  %11131 = vst [vmem:[#allocation18_spill] sm:$0xff] %v7846_v3  ;;  %v838_v53 = vpop.f32.mrf.mxu0  ;;  %v7848_v32 = vpop.f32.mrf.mxu1 }
 0x14f   : > { %11132 = vst [vmem:[#allocation19_spill] sm:$0xff] %v7848_v32  ;;  %v964_v22 = vsel %vm947_vm1, %v925_v23, %v927_v33  ;;  %v928_v60 = vrot.slane %v838_v53, 1 }
 0x150   : > { %v7852_v51 = vadd.f32 %v1216_v26, %v964_v22  ;;  %v842_v45 = vpop.f32.mrf.mxu0  ;;  %v1226_v2 = vpop.f32.mrf.mxu1  ;;  %5923 = vmatmul.mubr.msk.bf16.gmra.mxu0 %vm639_vm0, %v7009_v24 }
 0x151   : > { %v965_v41 = vsel %vm947_vm1, %v926_v14, %v928_v60  ;;  %v929_v40 = vrot.slane %v842_v45, 1  ;;  %2338 = vmatprep.mubr.bf16.mxu0 %v11128_v12 }
 0x152   : > { %11133 = vst [vmem:[#allocation20_spill] sm:$0xff] %v7852_v51  ;;  %v7859_v42 = vadd.f32 %v1218_v4, %v965_v41  ;;  %v844_v32 = vpop.f32.mrf.mxu0  ;;  %v1228_v7 = vpop.f32.mrf.mxu1 }
 0x153   : > { %v962_v26 = vsel %vm947_vm1, %v927_v33, %v929_v40  ;;  %v930_v23 = vrot.slane %v844_v32, 1 }
 0x154   : > { %11134 = vst [vmem:[#allocation21_spill] sm:$0xff] %v7859_v42  ;;  %v7863_v53 = vadd.f32 %v1220_v61, %v962_v26  ;;  %v846_v22 = vpop.f32.mrf.mxu0  ;;  %v1230_v51 = vpop.f32.mrf.mxu1  ;;  %v7010_v61 = vld [vmem:[%s7272_s27 + $0x28] sm:$0xff]  }
 0x155   : > { %v7867_v24 = vsel %vm947_vm1, %v928_v60, %v930_v23  ;;  %v931_v14 = vrot.slane %v846_v22, 1 }
 0x156   : > { %11135 = vst [vmem:[#allocation22_spill] sm:$0xff] %v7863_v53  ;;  %11136 = vst [vmem:[#allocation23_spill] sm:$0xff] %v7867_v24  ;;  %v848_v45 = vpop.f32.mrf.mxu0  ;;  %v7869_v3 = vpop.f32.mrf.mxu1 }
 0x157   : > { %11137 = vst [vmem:[#allocation24_spill] sm:$0xff] %v7869_v3  ;;  %v960_v4 = vsel %vm947_vm1, %v929_v40, %v931_v14  ;;  %v932_v41 = vrot.slane %v848_v45, 1 }
 0x158   : > { %v7873_v42 = vadd.f32 %v1226_v2, %v960_v4  ;;  %v852_v33 = vpop.f32.mrf.mxu0  ;;  %v1236_v32 = vpop.f32.mrf.mxu1  ;;  %5924 = vmatmul.mubr.msk.bf16.gmra.mxu0 %vm639_vm0, %v7010_v61 }
 0x159   : > { %v961_v26 = vsel %vm947_vm1, %v930_v23, %v932_v41  ;;  %v933_v60 = vrot.slane %v852_v33, 1  ;;  %2348 = vmatprep.mubr.bf16.mxu0 %v11128_v12 }
 0x15a   : > { %11138 = vst [vmem:[#allocation25_spill] sm:$0xff] %v7873_v42  ;;  %v7880_v22 = vadd.f32 %v1228_v7, %v961_v26  ;;  %v854_v3 = vpop.f32.mrf.mxu0  ;;  %v1238_v53 = vpop.f32.mrf.mxu1 }
 0x15b   : > { %v958_v2 = vsel %vm947_vm1, %v931_v14, %v933_v60  ;;  %v934_v40 = vrot.slane %v854_v3, 1 }
 0x15c   : > { %11139 = vst [vmem:[#allocation26_spill] sm:$0xff] %v7880_v22  ;;  %v7884_v45 = vadd.f32 %v1230_v51, %v958_v2  ;;  %v856_v4 = vpop.f32.mrf.mxu0  ;;  %v1240_v42 = vpop.f32.mrf.mxu1  ;;  %v7011_v51 = vld [vmem:[%s7272_s27 + $0x30] sm:$0xff]  }
 0x15d   : > { %v7888_v61 = vsel %vm947_vm1, %v932_v41, %v934_v40  ;;  %v935_v23 = vrot.slane %v856_v4, 1 }
 0x15e   : > { %11140 = vst [vmem:[#allocation27_spill] sm:$0xff] %v7884_v45  ;;  %11141 = vst [vmem:[#allocation28_spill] sm:$0xff] %v7888_v61  ;;  %v858_v33 = vpop.f32.mrf.mxu0  ;;  %v7890_v24 = vpop.f32.mrf.mxu1 }
 0x15f   : > { %11142 = vst [vmem:[#allocation29_spill] sm:$0xff] %v7890_v24  ;;  %v956_v7 = vsel %vm947_vm1, %v933_v60, %v935_v23  ;;  %v936_v26 = vrot.slane %v858_v33, 1 }
 0x160   : > { %v7894_v22 = vadd.f32 %v1236_v32, %v956_v7  ;;  %v862_v14 = vpop.f32.mrf.mxu0  ;;  %v1246_v3 = vpop.f32.mrf.mxu1  ;;  %5925 = vmatmul.mubr.msk.bf16.gmra.mxu0 %vm639_vm0, %v7011_v51 }
 0x161   : > { %v957_v2 = vsel %vm947_vm1, %v934_v40, %v936_v26  ;;  %v937_v41 = vrot.slane %v862_v14, 1  ;;  %2358 = vmatprep.mubr.bf16.mxu0 %v11128_v12 }
 0x162   : > { %11143 = vst [vmem:[#allocation30_spill] sm:$0xff] %v7894_v22  ;;  %v7901_v4 = vadd.f32 %v1238_v53, %v957_v2  ;;  %v864_v24 = vpop.f32.mrf.mxu0  ;;  %v1248_v45 = vpop.f32.mrf.mxu1 }
 0x163   : > { %v954_v32 = vsel %vm947_vm1, %v935_v23, %v937_v41  ;;  %v938_v60 = vrot.slane %v864_v24, 1 }
 0x164   : > { %11144 = vst [vmem:[#allocation31_spill] sm:$0xff] %v7901_v4  ;;  %v7905_v33 = vadd.f32 %v1240_v42, %v954_v32  ;;  %v866_v7 = vpop.f32.mrf.mxu0  ;;  %v1250_v22 = vpop.f32.mrf.mxu1  ;;  %v7012_v42 = vld [vmem:[%s7272_s27 + $0x38] sm:$0xff]  }
 0x165   : > { %v7909_v51 = vsel %vm947_vm1, %v936_v26, %v938_v60  ;;  %v939_v40 = vrot.slane %v866_v7, 1 }
 0x166   : > { %11145 = vst [vmem:[#allocation32_spill] sm:$0xff] %v7905_v33  ;;  %11146 = vst [vmem:[#allocation33_spill] sm:$0xff] %v7909_v51  ;;  %v868_v14 = vpop.f32.mrf.mxu0  ;;  %v7911_v61 = vpop.f32.mrf.mxu1 }
 0x167   : > { %11147 = vst [vmem:[#allocation34_spill] sm:$0xff] %v7911_v61  ;;  %v952_v53 = vsel %vm947_vm1, %v937_v41, %v939_v40  ;;  %v940_v2 = vrot.slane %v868_v14, 1 }
 0x168   : > { %v7915_v4 = vadd.f32 %v1246_v3, %v952_v53  ;;  %v872_v23 = vpop.f32.mrf.mxu0  ;;  %v1256_v24 = vpop.f32.mrf.mxu1  ;;  %5926 = vmatmul.mubr.msk.bf16.gmra.mxu0 %vm639_vm0, %v7012_v42 }
 0x169   : > { %v953_v32 = vsel %vm947_vm1, %v938_v60, %v940_v2  ;;  %v941_v26 = vrot.slane %v872_v23, 1  ;;  %2368 = vmatprep.mubr.bf16.mxu0 %v11128_v12 }
 0x16a   : > { %11148 = vst [vmem:[#allocation35_spill] sm:$0xff] %v7915_v4  ;;  %v7922_v7 = vadd.f32 %v1248_v45, %v953_v32  ;;  %v874_v61 = vpop.f32.mrf.mxu0  ;;  %v1258_v33 = vpop.f32.mrf.mxu1  ;;  %v11153_v32 = vrot.slane %v7586_v15, 1  ;;  %v11158_v15 = vrot.slane %v7596_v18, 1 }
 0x16b   : > { %v950_v41 = vsel %vm947_vm1, %v939_v40, %v941_v26  ;;  %v942_v3 = vrot.slane %v874_v61, 1 }
 0x16c   : > { %11149 = vst [vmem:[#allocation36_spill] sm:$0xff] %v7922_v7  ;;  %v7926_v14 = vadd.f32 %v1250_v22, %v950_v41  ;;  %v876_v53 = vpop.f32.mrf.mxu0  ;;  %v1260_v4 = vpop.f32.mrf.mxu1 }
 0x16d   : > { %v7930_v42 = vsel %vm947_vm1, %v940_v2, %v942_v3  ;;  %v943_v60 = vrot.slane %v876_v53, 1  ;;  %v7013_v53 = vld [vmem:[%s7272_s27 + $0x40] sm:$0xff]  }
 0x16e   : > { %11150 = vst [vmem:[#allocation37_spill] sm:$0xff] %v7926_v14  ;;  %11151 = vst [vmem:[#allocation38_spill] sm:$0xff] %v7930_v42  ;;  %v878_v23 = vpop.f32.mrf.mxu0  ;;  %v7932_v51 = vpop.f32.mrf.mxu1 }
 0x16f   : > { %11152 = vst [vmem:[#allocation39_spill] sm:$0xff] %v7932_v51  ;;  %v948_v45 = vsel %vm947_vm1, %v941_v26, %v943_v60  ;;  %v1010_v61 = vsel %vm947_vm1, %v943_v60, %v11153_v32  ;;  %v944_v22 = vrot.slane %v878_v23, 1 }
 0x170   : > { %v7940_v40 = vadd.f32 %v1256_v24, %v948_v45  ;;  %v7942_v41 = vadd.f32 %v1260_v4, %v1010_v61  ;;  %v7944_v14 = vpop.f32.mrf.mxu0  ;;  %v7946_v2 = vpop.f32.mrf.mxu1  ;;  %5927 = vmatmul.mubr.msk.bf16.gmra.mxu0 %vm639_vm0, %v7013_v53 }
 0x171   : > { %11156 = vst [vmem:[#allocation42_spill] sm:$0xff] %v7944_v14  ;;  %11157 = vst [vmem:[#allocation43_spill] sm:$0xff] %v7946_v2  ;;  %v949_v26 = vsel %vm947_vm1, %v942_v3, %v944_v22  ;;  %v7956_v60 = vsel %vm947_vm1, %v944_v22, %v11158_v15  ;;  %2378 = vmatprep.mubr.bf16.mxu0 %v11128_v12  ;;  %v11079_v18 = vrot.slane %v7944_v14, 2 }
 0x172   : > { %11154 = vst [vmem:[#allocation40_spill] sm:$0xff] %v7940_v40  ;;  %11155 = vst [vmem:[#allocation41_spill] sm:$0xff] %v7942_v41  ;;  %v7959_v4 = vadd.f32 %v1258_v33, %v949_v26  ;;  %v7961_v24 = vpop.f32.mrf.mxu0  ;;  %v7963_v23 = vpop.f32.mrf.mxu1  ;;  %v7014_v40 = vld [vmem:[%s7272_s27 + $0x48] sm:$0xff]  }
 0x173   : > { %11159 = vst [vmem:[#allocation44_spill] sm:$0xff] %v7956_v60  ;;  %11161 = vst [vmem:[#allocation46_spill] sm:$0xff] %v7961_v24  ;;  %v11082_v53 = vrot.slane %v7961_v24, 2 }
 0x174   : > { %11160 = vst [vmem:[#allocation45_spill] sm:$0xff] %v7959_v4  ;;  %11162 = vst [vmem:[#allocation47_spill] sm:$0xff] %v7963_v23  ;;  %v1376_v32 = vpop.f32.mrf.mxu0  ;;  %v1835_v3 = vpop.f32.mrf.mxu1  ;;  %v11163_v4 = vrot.slane %v7946_v2, 3 }
 0x175   : > { %v1533_v22 = vrot.slane %v1376_v32, 2  ;;  %v1992_v33 = vrot.slane %v1835_v3, 3 }
 0x176   : > { %v1378_v26 = vpop.f32.mrf.mxu0  ;;  %v1837_v15 = vpop.f32.mrf.mxu1 }
 0x177   : > { %v1656_v45 = vsel %vm1595_vm2, %v11079_v18, %v1533_v22  ;;  %v2115_v51 = vsel %vm2054_vm3, %v11163_v4, %v1992_v33  ;;  %v1534_v60 = vrot.slane %v1378_v26, 2  ;;  %v1993_v41 = vrot.slane %v1837_v15, 3 }
 0x178   : > { %v1660_v61 = vadd.f32 %v1656_v45, %v7605_v29  ;;  %v1382_v32 = vpop.f32.mrf.mxu0  ;;  %v1841_v3 = vpop.f32.mrf.mxu1  ;;  %5928 = vmatmul.mubr.msk.bf16.gmra.mxu0 %vm639_vm0, %v7014_v40  ;;  %v11164_v18 = vrot.slane %v7963_v23, 3 }
 0x179   : > { %v1657_v14 = vsel %vm1595_vm2, %v11082_v53, %v1534_v60  ;;  %v1535_v4 = vrot.slane %v1382_v32, 2  ;;  %v1994_v26 = vrot.slane %v1841_v3, 3  ;;  %2388 = vmatprep.mubr.bf16.mxu0 %v11128_v12 }
 0x17a   : > { %v2116_v2 = vsel %vm2054_vm3, %v11164_v18, %v1993_v41  ;;  %v7991_v29 = vadd.f32 %v2115_v51, %v1660_v61  ;;  %v1661_v45 = vadd.f32 %v1657_v14, %v7617_v34  ;;  %v1384_v15 = vpop.f32.mrf.mxu0  ;;  %v1843_v40 = vpop.f32.mrf.mxu1 }
 0x17b   : > { %v1654_v24 = vsel %vm1595_vm2, %v1533_v22, %v1535_v4  ;;  %v2113_v53 = vsel %vm2054_vm3, %v1992_v33, %v1994_v26  ;;  %v1536_v23 = vrot.slane %v1384_v15, 2  ;;  %v1995_v42 = vrot.slane %v1843_v40, 3 }
 0x17c   : > { %v7998_v7 = vadd.f32 %v2116_v2, %v1661_v45  ;;  %v1662_v18 = vadd.f32 %v1654_v24, %v7621_v39  ;;  %v1386_v32 = vpop.f32.mrf.mxu0  ;;  %v1845_v3 = vpop.f32.mrf.mxu1 }
 0x17d   : > { %v1655_v51 = vsel %vm1595_vm2, %v1534_v60, %v1536_v23  ;;  %v2114_v34 = vsel %vm2054_vm3, %v1993_v41, %v1995_v42  ;;  %v1537_v14 = vrot.slane %v1386_v32, 2  ;;  %v1996_v61 = vrot.slane %v1845_v3, 3 }
 0x17e   : > { %v8005_v22 = vadd.f32 %v2113_v53, %v1662_v18  ;;  %v1663_v33 = vadd.f32 %v1655_v51, %v7625_v44  ;;  %v1388_v15 = vpop.f32.mrf.mxu0  ;;  %v1847_v2 = vpop.f32.mrf.mxu1  ;;  %v7015_v53 = vld [vmem:[%s7272_s27 + $0x50] sm:$0xff]  }
 0x17f   : > { %v1652_v39 = vsel %vm1595_vm2, %v1535_v4, %v1537_v14  ;;  %v2111_v24 = vsel %vm2054_vm3, %v1994_v26, %v1996_v61  ;;  %v1538_v45 = vrot.slane %v1388_v15, 2  ;;  %v1997_v60 = vrot.slane %v1847_v2, 3 }
 0x180   : > { %v8012_v40 = vadd.f32 %v2114_v34, %v1663_v33  ;;  %v1664_v41 = vadd.f32 %v1652_v39, %v7629_v49  ;;  %v1392_v32 = vpop.f32.mrf.mxu0  ;;  %v1851_v3 = vpop.f32.mrf.mxu1  ;;  %5929 = vmatmul.mubr.msk.bf16.gmra.mxu0 %vm639_vm0, %v7015_v53 }
 0x181   : > { %v1653_v44 = vsel %vm1595_vm2, %v1536_v23, %v1538_v45  ;;  %v2112_v4 = vsel %vm2054_vm3, %v1995_v42, %v1997_v60  ;;  %v1539_v18 = vrot.slane %v1392_v32, 2  ;;  %v1998_v51 = vrot.slane %v1851_v3, 3  ;;  %2398 = vmatprep.mubr.bf16.mxu0 %v11128_v12 }
 0x182   : > { %v8022_v26 = vadd.f32 %v2111_v24, %v1664_v41  ;;  %v1665_v34 = vadd.f32 %v1653_v44, %v7639_v54  ;;  %v1394_v49 = vpop.f32.mrf.mxu0  ;;  %v1853_v33 = vpop.f32.mrf.mxu1 }
 0x183   : > { %v1650_v15 = vsel %vm1595_vm2, %v1537_v14, %v1539_v18  ;;  %v2109_v2 = vsel %vm2054_vm3, %v1996_v61, %v1998_v51  ;;  %v1540_v23 = vrot.slane %v1394_v49, 2  ;;  %v1999_v39 = vrot.slane %v1853_v33, 3 }
 0x184   : > { %v8029_v53 = vadd.f32 %v2112_v4, %v1665_v34  ;;  %v1666_v42 = vadd.f32 %v1650_v15, %v7643_v63  ;;  %v1396_v32 = vpop.f32.mrf.mxu0  ;;  %v1855_v3 = vpop.f32.mrf.mxu1 }
 0x185   : > { %v1651_v24 = vsel %vm1595_vm2, %v1538_v45, %v1540_v23  ;;  %v2110_v54 = vsel %vm2054_vm3, %v1997_v60, %v1999_v39  ;;  %v1541_v41 = vrot.slane %v1396_v32, 2  ;;  %v2000_v14 = vrot.slane %v1855_v3, 3 }
 0x186   : > { %v8036_v44 = vadd.f32 %v2109_v2, %v1666_v42  ;;  %v1667_v61 = vadd.f32 %v1651_v24, %v7647_v6  ;;  %v1398_v49 = vpop.f32.mrf.mxu0  ;;  %v1857_v4 = vpop.f32.mrf.mxu1  ;;  %v7016_v2 = vld [vmem:[%s7272_s27 + $0x58] sm:$0xff]  }
 0x187   : > { %v1648_v63 = vsel %vm1595_vm2, %v1539_v18, %v1541_v41  ;;  %v2107_v34 = vsel %vm2054_vm3, %v1998_v51, %v2000_v14  ;;  %v1542_v33 = vrot.slane %v1398_v49, 2  ;;  %v2001_v45 = vrot.slane %v1857_v4, 3 }
 0x188   : > { %v8043_v15 = vadd.f32 %v2110_v54, %v1667_v61  ;;  %v1668_v60 = vadd.f32 %v1648_v63, %v7651_v11  ;;  %v1402_v32 = vpop.f32.mrf.mxu0  ;;  %v1861_v3 = vpop.f32.mrf.mxu1  ;;  %5930 = vmatmul.mubr.msk.bf16.gmra.mxu0 %vm639_vm0, %v7016_v2 }
 0x189   : > { %v1649_v6 = vsel %vm1595_vm2, %v1540_v23, %v1542_v33  ;;  %v2108_v18 = vsel %vm2054_vm3, %v1999_v39, %v2001_v45  ;;  %v1543_v42 = vrot.slane %v1402_v32, 2  ;;  %v2002_v24 = vrot.slane %v1861_v3, 3  ;;  %2408 = vmatprep.mubr.bf16.mxu0 %v11128_v12 }
 0x18a   : > { %v8053_v51 = vadd.f32 %v2107_v34, %v1668_v60  ;;  %v1669_v54 = vadd.f32 %v1649_v6, %v7661_v19  ;;  %v1404_v11 = vpop.f32.mrf.mxu0  ;;  %v1863_v61 = vpop.f32.mrf.mxu1 }
 0x18b   : > { %v1646_v49 = vsel %vm1595_vm2, %v1541_v41, %v1543_v42  ;;  %v2105_v4 = vsel %vm2054_vm3, %v2000_v14, %v2002_v24  ;;  %v1544_v23 = vrot.slane %v1404_v11, 2  ;;  %v2003_v63 = vrot.slane %v1863_v61, 3 }
 0x18c   : > { %v8060_v2 = vadd.f32 %v2108_v18, %v1669_v54  ;;  %v1670_v39 = vadd.f32 %v1646_v49, %v7665_v25  ;;  %v1406_v32 = vpop.f32.mrf.mxu0  ;;  %v1865_v3 = vpop.f32.mrf.mxu1 }
 0x18d   : > { %v1647_v34 = vsel %vm1595_vm2, %v1542_v33, %v1544_v23  ;;  %v2106_v19 = vsel %vm2054_vm3, %v2001_v45, %v2003_v63  ;;  %v1545_v60 = vrot.slane %v1406_v32, 2  ;;  %v2004_v41 = vrot.slane %v1865_v3, 3 }
 0x18e   : > { %v8067_v6 = vadd.f32 %v2105_v4, %v1670_v39  ;;  %v1671_v14 = vadd.f32 %v1647_v34, %v7669_v31  ;;  %v1408_v11 = vpop.f32.mrf.mxu0  ;;  %v1867_v18 = vpop.f32.mrf.mxu1  ;;  %v7017_v4 = vld [vmem:[%s7272_s27 + $0x60] sm:$0xff]  }
 0x18f   : > { %v1644_v25 = vsel %vm1595_vm2, %v1543_v42, %v1545_v60  ;;  %v2103_v54 = vsel %vm2054_vm3, %v2002_v24, %v2004_v41  ;;  %v1546_v61 = vrot.slane %v1408_v11, 2  ;;  %v2005_v33 = vrot.slane %v1867_v18, 3 }
 0x190   : > { %v8074_v49 = vadd.f32 %v2106_v19, %v1671_v14  ;;  %v1672_v45 = vadd.f32 %v1644_v25, %v7673_v37  ;;  %v1412_v32 = vpop.f32.mrf.mxu0  ;;  %v1871_v3 = vpop.f32.mrf.mxu1  ;;  %5931 = vmatmul.mubr.msk.bf16.gmra.mxu0 %vm639_vm0, %v7017_v4 }
 0x191   : > { %v1645_v31 = vsel %vm1595_vm2, %v1544_v23, %v1546_v61  ;;  %v2104_v42 = vsel %vm2054_vm3, %v2003_v63, %v2005_v33  ;;  %v1547_v39 = vrot.slane %v1412_v32, 2  ;;  %v2006_v34 = vrot.slane %v1871_v3, 3  ;;  %2418 = vmatprep.mubr.bf16.mxu0 %v11128_v12 }
 0x192   : > { %v8084_v24 = vadd.f32 %v2103_v54, %v1672_v45  ;;  %v1673_v19 = vadd.f32 %v1645_v31, %v7683_v43  ;;  %v1414_v37 = vpop.f32.mrf.mxu0  ;;  %v1873_v14 = vpop.f32.mrf.mxu1 }
 0x193   : > { %v1642_v11 = vsel %vm1595_vm2, %v1545_v60, %v1547_v39  ;;  %v2101_v18 = vsel %vm2054_vm3, %v2004_v41, %v2006_v34  ;;  %v1548_v23 = vrot.slane %v1414_v37, 2  ;;  %v2007_v25 = vrot.slane %v1873_v14, 3 }
 0x194   : > { %v8091_v4 = vadd.f32 %v2104_v42, %v1673_v19  ;;  %v1674_v63 = vadd.f32 %v1642_v11, %v7687_v50  ;;  %v1416_v32 = vpop.f32.mrf.mxu0  ;;  %v1875_v3 = vpop.f32.mrf.mxu1 }
 0x195   : > { %v1643_v54 = vsel %vm1595_vm2, %v1546_v61, %v1548_v23  ;;  %v2102_v43 = vsel %vm2054_vm3, %v2005_v33, %v2007_v25  ;;  %v1549_v45 = vrot.slane %v1416_v32, 2  ;;  %v2008_v60 = vrot.slane %v1875_v3, 3 }
 0x196   : > { %v8098_v31 = vadd.f32 %v2101_v18, %v1674_v63  ;;  %v1675_v41 = vadd.f32 %v1643_v54, %v7691_v55  ;;  %v1418_v37 = vpop.f32.mrf.mxu0  ;;  %v1877_v42 = vpop.f32.mrf.mxu1  ;;  %v7018_v18 = vld [vmem:[%s7272_s27 + $0x68] sm:$0xff]  }
 0x197   : > { %v1640_v50 = vsel %vm1595_vm2, %v1547_v39, %v1549_v45  ;;  %v2099_v19 = vsel %vm2054_vm3, %v2006_v34, %v2008_v60  ;;  %v1550_v14 = vrot.slane %v1418_v37, 2  ;;  %v2009_v61 = vrot.slane %v1877_v42, 3 }
 0x198   : > { %v8105_v11 = vadd.f32 %v2102_v43, %v1675_v41  ;;  %v1676_v33 = vadd.f32 %v1640_v50, %v7697_v59  ;;  %v1422_v32 = vpop.f32.mrf.mxu0  ;;  %v1881_v3 = vpop.f32.mrf.mxu1  ;;  %5932 = vmatmul.mubr.msk.bf16.gmra.mxu0 %vm639_vm0, %v7018_v18 }
 0x199   : > { %v1641_v55 = vsel %vm1595_vm2, %v1548_v23, %v1550_v14  ;;  %v2100_v39 = vsel %vm2054_vm3, %v2007_v25, %v2009_v61  ;;  %v1551_v63 = vrot.slane %v1422_v32, 2  ;;  %v2010_v54 = vrot.slane %v1881_v3, 3  ;;  %2428 = vmatprep.mubr.bf16.mxu0 %v11128_v12 }
 0x19a   : > { %v8115_v34 = vadd.f32 %v2099_v19, %v1676_v33  ;;  %v1677_v43 = vadd.f32 %v1641_v55, %v7707_v9  ;;  %v1424_v59 = vpop.f32.mrf.mxu0  ;;  %v1883_v41 = vpop.f32.mrf.mxu1  ;;  %v1153_v25 = vadd.f32 %v7693_v57, %v7715_v21 }
 0x19b   : > { %v1638_v37 = vsel %vm1595_vm2, %v1549_v45, %v1551_v63  ;;  %v2097_v42 = vsel %vm2054_vm3, %v2008_v60, %v2010_v54  ;;  %v1552_v23 = vrot.slane %v1424_v59, 2  ;;  %v2011_v50 = vrot.slane %v1883_v41, 3 }
 0x19c   : > { %v8124_v32 = vadd.f32 %v2100_v39, %v1677_v43  ;;  %v1678_v19 = vadd.f32 %v1638_v37, %v7711_v16  ;;  %v1426_v33 = vpop.f32.mrf.mxu0  ;;  %v1885_v3 = vpop.f32.mrf.mxu1 }
 0x19d   : > { %v1639_v9 = vsel %vm1595_vm2, %v1550_v14, %v1552_v23  ;;  %v2098_v45 = vsel %vm2054_vm3, %v2009_v61, %v2011_v50  ;;  %v1553_v18 = vrot.slane %v1426_v33, 2  ;;  %v2012_v60 = vrot.slane %v1885_v3, 3  ;;  %v7019_v3 = vld [vmem:[%s7272_s27 + $0x70] sm:$0xff]  }
 0x19e   : > { %v8131_v55 = vadd.f32 %v2097_v42, %v1678_v19  ;;  %v1679_v59 = vadd.f32 %v1639_v9, %v1153_v25  ;;  %v1428_v41 = vpop.f32.mrf.mxu0  ;;  %v1887_v57 = vpop.f32.mrf.mxu1 }
 0x19f   : > { %v1636_v21 = vsel %vm1595_vm2, %v1551_v63, %v1553_v18  ;;  %v2095_v16 = vsel %vm2054_vm3, %v2010_v54, %v2012_v60  ;;  %v1554_v39 = vrot.slane %v1428_v41, 2  ;;  %v2013_v43 = vrot.slane %v1887_v57, 3 }
 0x1a0   : > { %v8137_v14 = vadd.f32 %v2098_v45, %v1679_v59  ;;  %v1680_v37 = vadd.f32 %v1636_v21, %v7721_v30  ;;  %v1432_v61 = vpop.f32.mrf.mxu0  ;;  %v1891_v33 = vpop.f32.mrf.mxu1  ;;  %5933 = vmatmul.mubr.msk.bf16.gmra.mxu0 %vm639_vm0, %v7019_v3 }
 0x1a1   : > { %v1637_v42 = vsel %vm1595_vm2, %v1552_v23, %v1554_v39  ;;  %v2096_v63 = vsel %vm2054_vm3, %v2011_v50, %v2013_v43  ;;  %v1555_v25 = vrot.slane %v1432_v61, 2  ;;  %v2014_v19 = vrot.slane %v1891_v33, 3  ;;  %2438 = vmatprep.mubr.bf16.mxu0 %v11128_v12 }
 0x1a2   : > { %v8147_v54 = vadd.f32 %v2095_v16, %v1680_v37  ;;  %v1681_v9 = vadd.f32 %v1637_v42, %v7731_v38  ;;  %v1434_v30 = vpop.f32.mrf.mxu0  ;;  %v1893_v45 = vpop.f32.mrf.mxu1  ;;  %v1163_v50 = vadd.f32 %v7717_v27, %v7739_v48 }
 0x1a3   : > { %v1634_v59 = vsel %vm1595_vm2, %v1553_v18, %v1555_v25  ;;  %v2093_v41 = vsel %vm2054_vm3, %v2012_v60, %v2014_v19  ;;  %v1556_v23 = vrot.slane %v1434_v30, 2  ;;  %v2015_v57 = vrot.slane %v1893_v45, 3 }
 0x1a4   : > { %v8156_v21 = vadd.f32 %v2096_v63, %v1681_v9  ;;  %v1682_v16 = vadd.f32 %v1634_v59, %v7735_v46  ;;  %v1436_v37 = vpop.f32.mrf.mxu0  ;;  %v1895_v61 = vpop.f32.mrf.mxu1 }
 0x1a5   : > { %v1635_v38 = vsel %vm1595_vm2, %v1554_v39, %v1556_v23  ;;  %v2094_v18 = vsel %vm2054_vm3, %v2013_v43, %v2015_v57  ;;  %v1557_v33 = vrot.slane %v1436_v37, 2  ;;  %v2016_v60 = vrot.slane %v1895_v61, 3  ;;  %v7020_v37 = vld [vmem:[%s7272_s27 + $0x78] sm:$0xff]   ;;  %s432_s27 = sand.u32 1, %s7074_s26  }
 0x1a6   : > { %v8163_v3 = vadd.f32 %v2093_v41, %v1682_v16  ;;  %v1683_v42 = vadd.f32 %v1635_v38, %v1163_v50  ;;  %v1438_v30 = vpop.f32.mrf.mxu0  ;;  %v1897_v27 = vpop.f32.mrf.mxu1  ;;  %s5728_s15 = sshll.u32 %s432_s27, 3  ;;  %s5652_s14 = scalar_lea.sflag [#allocation3], %s432_s27 }
 0x1a7   : > { %v1632_v48 = vsel %vm1595_vm2, %v1555_v25, %v1557_v33  ;;  %v2091_v46 = vsel %vm2054_vm3, %v2014_v19, %v2016_v60  ;;  %v1558_v63 = vrot.slane %v1438_v30, 2  ;;  %v2017_v9 = vrot.slane %v1897_v27, 3  ;;  %s434_s20 = scalar_lea.vmem [#allocation2], %s5728_s15  ;;  %s7026_s15 = sshll.u32 %s7087_s29, 4  ;;  %s7027_s15 = int_to_ptr.vmem [resolvable:$false] %s7026_s15 }
 0x1a8   : > { %v8169_v39 = vadd.f32 %v2094_v18, %v1683_v42  ;;  %v1684_v45 = vadd.f32 %v1632_v48, %v7745_v58  ;;  %v1442_v43 = vpop.f32.mrf.mxu0  ;;  %v1901_v59 = vpop.f32.mrf.mxu1  ;;  %5934 = vmatmul.mubr.msk.bf16.gmra.mxu0 %vm639_vm0, %v7020_v37  ;;  %s5665_s21 = sshll.u32 %s434_s20, 4  ;;  %s7028_s19 = scalar_lea.vmem %s7027_s15, 256  ;;  %s11017_s21 = int_to_ptr.vmem [resolvable:$true] %s5665_s21 }
 0x1a9   : > { %v1633_v41 = vsel %vm1595_vm2, %v1556_v23, %v1558_v63  ;;  %v2092_v25 = vsel %vm2054_vm3, %v2015_v57, %v2017_v9  ;;  %v1559_v50 = vrot.slane %v1442_v43, 2  ;;  %v2018_v16 = vrot.slane %v1901_v59, 3  ;;  %3621 = vmatprep.mubr.bf16.mxu0 %v11128_v12  ;;  %s7022_s17 = scalar_lea.vmem %s11017_s21, 128  ;;  %p7029_p0 = scmp.lt.s32.totalorder %s11017_s21, %s7027_s15 }
 0x1aa   : > { %v8179_v19 = vadd.f32 %v2091_v46, %v1684_v45  ;;  %v1685_v61 = vadd.f32 %v1633_v41, %v7754_v8  ;;  %v1444_v58 = vpop.f32.mrf.mxu0  ;;  %v1903_v38 = vpop.f32.mrf.mxu1  ;;  %v1173_v57 = vadd.f32 %v7741_v52, %v7762_v1  ;;  %p7023_p11 = scmp.ne.s32.totalorder %s11017_s21, %s7022_s17  ;;  %p7030_p1 = scmp.lt.s32.totalorder %s7028_s19, %s7022_s17 }
 0x1ab   : > { %v1630_v18 = vsel %vm1595_vm2, %v1557_v33, %v1559_v50  ;;  %v2089_v42 = vsel %vm2054_vm3, %v2016_v60, %v2018_v16  ;;  %v1560_v23 = vrot.slane %v1444_v58, 2  ;;  %v2019_v30 = vrot.slane %v1903_v38, 3 }
 0x1ac   : > { %v8188_v27 = vadd.f32 %v2092_v25, %v1685_v61  ;;  %v1686_v48 = vadd.f32 %v1630_v18, %v7758_v20  ;;  %v1446_v46 = vpop.f32.mrf.mxu0  ;;  %v1905_v45 = vpop.f32.mrf.mxu1  ;;  %p7024_p12 = pnand %p7023_p11, %p7196_p5  ;;  %p7031_p2 = por %p7030_p1, %p7029_p0 }
 0x1ad   : > { %v1631_v8 = vsel %vm1595_vm2, %v1558_v63, %v1560_v23  ;;  %v2090_v33 = vsel %vm2054_vm3, %v2017_v9, %v2019_v30  ;;  %v1561_v43 = vrot.slane %v1446_v46, 2  ;;  %v2020_v59 = vrot.slane %v1905_v45, 3 }
 0x1ae   : > { %v8195_v60 = vadd.f32 %v2089_v42, %v1686_v48  ;;  %v1687_v37 = vadd.f32 %v1631_v8, %v1173_v57  ;;  %v1448_v41 = vpop.f32.mrf.mxu0  ;;  %v8197_v58 = vpop.f32.mrf.mxu1  ;;  %p7025_p13 = pneg %p7024_p12 }
 0x1af   : > { %v1628_v52 = vsel %vm1595_vm2, %v1559_v50, %v1561_v43  ;;  %v2087_v20 = vsel %vm2054_vm3, %v2018_v16, %v2020_v59  ;;  %v1562_v1 = vrot.slane %v1448_v41, 2  ;;  %v11086_v63 = vrot.slane %v8197_v58, 3 }
 0x1b0   : > { %v8204_v25 = vadd.f32 %v2090_v33, %v1687_v37  ;;  %v1688_v9 = vadd.f32 %v1628_v52, %v7768_v35  ;;  %v1452_v61 = vpop.f32.mrf.mxu0  ;;  %v8207_v38 = vpop.f32.mrf.mxu1  ;;  %p7032_p3 = pnand %p7031_p2, %p7025_p13 }
 0x1b1   : > { %v1629_v18 = vsel %vm1595_vm2, %v1560_v23, %v1562_v1  ;;  %v2088_v50 = vsel %vm2054_vm3, %v2019_v30, %v11086_v63  ;;  %v1563_v42 = vrot.slane %v1452_v61, 2  ;;  %v11084_v16 = vrot.slane %v8207_v38, 3 }
 0x1b2   : > { %v8216_v57 = vadd.f32 %v2087_v20, %v1688_v9  ;;  %v1689_v48 = vadd.f32 %v1629_v18, %v7775_v47  ;;  %v1454_v46 = vpop.f32.mrf.mxu0  ;;  %v8219_v35 = vpop.f32.mrf.mxu1  ;;  %v1183_v30 = vadd.f32 %v7764_v28, %v7783_v5 }
 0x1b3   : > { %v1626_v45 = vsel %vm1595_vm2, %v1561_v43, %v1563_v42  ;;  %v2085_v23 = vsel %vm2054_vm3, %v2020_v59, %v11084_v16  ;;  %v1564_v8 = vrot.slane %v1454_v46, 2 }
 0x1b4   : > { %11165 = vst [vmem:[#allocation48_spill] sm:$0xff] %v8216_v57  ;;  %v8229_v33 = vadd.f32 %v2088_v50, %v1689_v48  ;;  %v1690_v37 = vadd.f32 %v1626_v45, %v7779_v56  ;;  %v1456_v47 = vpop.f32.mrf.mxu0  ;;  %v8232_v41 = vpop.f32.mrf.mxu1 }
 0x1b5   : > { %v1627_v52 = vsel %vm1595_vm2, %v1562_v1, %v1564_v8  ;;  %v1565_v43 = vrot.slane %v1456_v47, 2  ;;  %v11085_v48 = vrot.slane %v8232_v41, 3 }
 0x1b6   : > { %11166 = vst [vmem:[#allocation49_spill] sm:$0xff] %v8229_v33  ;;  %v8236_v20 = vadd.f32 %v2085_v23, %v1690_v37  ;;  %v8238_v9 = vadd.f32 %v1627_v52, %v1183_v30  ;;  %v1458_v59 = vpop.f32.mrf.mxu0  ;;  %v8240_v61 = vpop.f32.mrf.mxu1 }
 0x1b7   : > { %v1624_v28 = vsel %vm1595_vm2, %v1563_v42, %v1565_v43  ;;  %v1566_v5 = vrot.slane %v1458_v59, 2  ;;  %v11087_v30 = vrot.slane %v8240_v61, 3 }
 0x1b8   : > { %11167 = vst [vmem:[#allocation50_spill] sm:$0xff] %v8236_v20  ;;  %v8245_v56 = vadd.f32 %v1624_v28, %v7789_v62  ;;  %v1462_v18 = vpop.f32.mrf.mxu0  ;;  %v1921_v50 = vpop.f32.mrf.mxu1 }
 0x1b9   : > { %v1625_v1 = vsel %vm1595_vm2, %v1564_v8, %v1566_v5  ;;  %v1567_v46 = vrot.slane %v1462_v18, 2  ;;  %v2026_v45 = vrot.slane %v1921_v50, 3  ;;  %v1193_v8 = vadd.f32 %v7785_v13, %v7804_v10 }
 0x1ba   : > { %v8251_v23 = vadd.f32 %v1625_v1, %v7796_v36  ;;  %v1464_v37 = vpop.f32.mrf.mxu0  ;;  %v1923_v42 = vpop.f32.mrf.mxu1 }
 0x1bb   : > { %v1622_v62 = vsel %vm1595_vm2, %v1565_v43, %v1567_v46  ;;  %v2081_v47 = vsel %vm2054_vm3, %v11085_v48, %v2026_v45  ;;  %v1568_v52 = vrot.slane %v1464_v37, 2  ;;  %v2027_v59 = vrot.slane %v1923_v42, 3 }
 0x1bc   : > { %v1694_v36 = vadd.f32 %v1622_v62, %v7800_v0  ;;  %v1466_v28 = vpop.f32.mrf.mxu0  ;;  %v1925_v18 = vpop.f32.mrf.mxu1 }
 0x1bd   : > { %v1623_v50 = vsel %vm1595_vm2, %v1566_v5, %v1568_v52  ;;  %v2082_v43 = vsel %vm2054_vm3, %v11087_v30, %v2027_v59  ;;  %v1569_v1 = vrot.slane %v1466_v28, 2  ;;  %v2028_v16 = vrot.slane %v1925_v18, 3  ;;  %v11170_v30 = vld [vmem:[#allocation10_spill] sm:$0xff] }
 0x1be   : > { %v8269_v48 = vadd.f32 %v2081_v47, %v1694_v36  ;;  %v1695_v37 = vadd.f32 %v1623_v50, %v1193_v8  ;;  %v1468_v42 = vpop.f32.mrf.mxu0  ;;  %v8271_v63 = vpop.f32.mrf.mxu1 }
 0x1bf   : > { %v1620_v13 = vsel %vm1595_vm2, %v1567_v46, %v1569_v1  ;;  %v2079_v0 = vsel %vm2054_vm3, %v2026_v45, %v2028_v16  ;;  %v1570_v10 = vrot.slane %v1468_v42, 2  ;;  %v11089_v5 = vrot.slane %v8271_v63, 3  ;;  %v11172_v42 = vld [vmem:[#allocation11_spill] sm:$0xff] }
 0x1c0   : > { %11168 = vst [vmem:[#allocation51_spill] sm:$0xff] %v8269_v48  ;;  %v8278_v62 = vadd.f32 %v2082_v43, %v1695_v37  ;;  %v1696_v28 = vadd.f32 %v1620_v13, %v11170_v30  ;;  %v1472_v18 = vpop.f32.mrf.mxu0  ;;  %v1931_v47 = vpop.f32.mrf.mxu1  ;;  %v11174_v48 = vld [vmem:[#allocation9_spill] sm:$0xff] }
 0x1c1   : > { %v1621_v8 = vsel %vm1595_vm2, %v1568_v52, %v1570_v10  ;;  %v2080_v46 = vsel %vm2054_vm3, %v2027_v59, %v11089_v5  ;;  %v1571_v36 = vrot.slane %v1472_v18, 2  ;;  %v2030_v50 = vrot.slane %v1931_v47, 3  ;;  %v11176_v18 = vld [vmem:[#allocation12_spill] sm:$0xff] }
 0x1c2   : > { %11169 = vst [vmem:[#allocation52_spill] sm:$0xff] %v8278_v62  ;;  %v8287_v45 = vadd.f32 %v2079_v0, %v1696_v28  ;;  %v1697_v12 = vadd.f32 %v1621_v8, %v11172_v42  ;;  %v1474_v43 = vpop.f32.mrf.mxu0  ;;  %v8290_v37 = vpop.f32.mrf.mxu1  ;;  %v11173_v62 = vld [vmem:[#allocation13_spill] sm:$0xff] }
 0x1c3   : > { %v1618_v30 = vsel %vm1595_vm2, %v1569_v1, %v1571_v36  ;;  %v2077_v52 = vsel %vm2054_vm3, %v2028_v16, %v2030_v50  ;;  %v1572_v13 = vrot.slane %v1474_v43, 2  ;;  %v1203_v20 = vadd.f32 %v11174_v48, %v11173_v62 }
 0x1c4   : > { %11171 = vst [vmem:[#allocation10_spill] sm:$0xff] %v8287_v45  ;;  %v8298_v59 = vadd.f32 %v2080_v46, %v1697_v12  ;;  %v1698_v0 = vadd.f32 %v1618_v30, %v11176_v18  ;;  %v1476_v28 = vpop.f32.mrf.mxu0  ;;  %v8301_v47 = vpop.f32.mrf.mxu1 }
 0x1c5   : > { %v1619_v8 = vsel %vm1595_vm2, %v1570_v10, %v1572_v13  ;;  %v1573_v42 = vrot.slane %v1476_v28, 2  ;;  %v11090_v1 = vrot.slane %v8301_v47, 3  ;;  %v11178_v10 = vld [vmem:[#allocation15_spill] sm:$0xff]  ;;  %v11180_v28 = vld [vmem:[#allocation16_spill] sm:$0xff] }
 0x1c6   : > { %11175 = vst [vmem:[#allocation11_spill] sm:$0xff] %v8298_v59  ;;  %v8306_v5 = vadd.f32 %v2077_v52, %v1698_v0  ;;  %v8308_v16 = vadd.f32 %v1619_v8, %v1203_v20  ;;  %v1478_v43 = vpop.f32.mrf.mxu0  ;;  %v8310_v45 = vpop.f32.mrf.mxu1  ;;  %v11185_v59 = vld [vmem:[#allocation17_spill] sm:$0xff] }
 0x1c7   : > { %v1616_v12 = vsel %vm1595_vm2, %v1571_v36, %v1573_v42  ;;  %v2075_v48 = vsel %vm2054_vm3, %v2030_v50, %v11090_v1  ;;  %v1574_v62 = vrot.slane %v1478_v43, 2 }
 0x1c8   : > { %11177 = vst [vmem:[#allocation13_spill] sm:$0xff] %v8306_v5  ;;  %v1700_v46 = vadd.f32 %v1616_v12, %v11178_v10  ;;  %v1482_v30 = vpop.f32.mrf.mxu0  ;;  %v8319_v18 = vpop.f32.mrf.mxu1  ;;  %v11183_v12 = vld [vmem:[#allocation18_spill] sm:$0xff] }
 0x1c9   : > { %v1617_v20 = vsel %vm1595_vm2, %v1572_v13, %v1574_v62  ;;  %v1575_v52 = vrot.slane %v1482_v30, 2  ;;  %v11184_v10 = vld [vmem:[#allocation14_spill] sm:$0xff] }
 0x1ca   : > { %v8323_v0 = vadd.f32 %v2075_v48, %v1700_v46  ;;  %v8326_v8 = vadd.f32 %v1617_v20, %v11180_v28  ;;  %v1484_v36 = vpop.f32.mrf.mxu0  ;;  %v8328_v5 = vpop.f32.mrf.mxu1  ;;  %v1213_v1 = vadd.f32 %v11184_v10, %v11183_v12  ;;  %v11190_v12 = vld [vmem:[#allocation20_spill] sm:$0xff] }
 0x1cb   : > { %11182 = vst [vmem:[#allocation15_spill] sm:$0xff] %v8328_v5  ;;  %v1614_v50 = vsel %vm1595_vm2, %v1573_v42, %v1575_v52  ;;  %v1576_v43 = vrot.slane %v1484_v36, 2 }
 0x1cc   : > { %11179 = vst [vmem:[#allocation9_spill] sm:$0xff] %v8323_v0  ;;  %11181 = vst [vmem:[#allocation12_spill] sm:$0xff] %v8326_v8  ;;  %v8335_v33 = vadd.f32 %v1614_v50, %v11185_v59  ;;  %v1486_v13 = vpop.f32.mrf.mxu0  ;;  %v8337_v30 = vpop.f32.mrf.mxu1 }
 0x1cd   : > { %11187 = vst [vmem:[#allocation18_spill] sm:$0xff] %v8337_v30  ;;  %v1615_v48 = vsel %vm1595_vm2, %v1574_v62, %v1576_v43  ;;  %v1577_v46 = vrot.slane %v1486_v13, 2  ;;  %v11193_v13 = vld [vmem:[#allocation21_spill] sm:$0xff] }
 0x1ce   : > { %11186 = vst [vmem:[#allocation16_spill] sm:$0xff] %v8335_v33  ;;  %v8341_v20 = vadd.f32 %v1615_v48, %v1213_v1  ;;  %v1488_v28 = vpop.f32.mrf.mxu0  ;;  %v8343_v0 = vpop.f32.mrf.mxu1 }
 0x1cf   : > { %11189 = vst [vmem:[#allocation17_spill] sm:$0xff] %v8343_v0  ;;  %v1612_v42 = vsel %vm1595_vm2, %v1575_v52, %v1577_v46  ;;  %v1578_v36 = vrot.slane %v1488_v28, 2  ;;  %v11196_v0 = vld [vmem:[#allocation23_spill] sm:$0xff] }
 0x1d0   : > { %11188 = vst [vmem:[#allocation14_spill] sm:$0xff] %v8341_v20  ;;  %v8348_v10 = vadd.f32 %v1612_v42, %v11190_v12  ;;  %v1492_v59 = vpop.f32.mrf.mxu0  ;;  %v8350_v50 = vpop.f32.mrf.mxu1  ;;  %v11197_v42 = vld [vmem:[#allocation19_spill] sm:$0xff] }
 0x1d1   : > { %11192 = vst [vmem:[#allocation53_spill] sm:$0xff] %v8350_v50  ;;  %v1613_v33 = vsel %vm1595_vm2, %v1576_v43, %v1578_v36  ;;  %v1579_v62 = vrot.slane %v1492_v59, 2  ;;  %v1223_v12 = vadd.f32 %v11197_v42, %v11196_v0  ;;  %v11203_v0 = vld [vmem:[#allocation25_spill] sm:$0xff] }
 0x1d2   : > { %11191 = vst [vmem:[#allocation20_spill] sm:$0xff] %v8348_v10  ;;  %v8355_v1 = vadd.f32 %v1613_v33, %v11193_v13  ;;  %v1494_v48 = vpop.f32.mrf.mxu0  ;;  %v8357_v20 = vpop.f32.mrf.mxu1  ;;  %v11198_v10 = vld [vmem:[#allocation22_spill] sm:$0xff] }
 0x1d3   : > { %11195 = vst [vmem:[#allocation54_spill] sm:$0xff] %v8357_v20  ;;  %v1610_v52 = vsel %vm1595_vm2, %v1577_v46, %v1579_v62  ;;  %v1580_v28 = vrot.slane %v1494_v48, 2 }
 0x1d4   : > { %11194 = vst [vmem:[#allocation21_spill] sm:$0xff] %v8355_v1  ;;  %v8364_v30 = vadd.f32 %v1610_v52, %v11198_v10  ;;  %v1496_v50 = vpop.f32.mrf.mxu0  ;;  %v8366_v8 = vpop.f32.mrf.mxu1 }
 0x1d5   : > { %11200 = vst [vmem:[#allocation19_spill] sm:$0xff] %v8366_v8  ;;  %v1611_v33 = vsel %vm1595_vm2, %v1578_v36, %v1580_v28  ;;  %v1581_v43 = vrot.slane %v1496_v50, 2  ;;  %v11206_v50 = vld [vmem:[#allocation26_spill] sm:$0xff] }
 0x1d6   : > { %11199 = vst [vmem:[#allocation23_spill] sm:$0xff] %v8364_v30  ;;  %v8370_v59 = vadd.f32 %v1611_v33, %v1223_v12  ;;  %v1498_v13 = vpop.f32.mrf.mxu0  ;;  %v8372_v1 = vpop.f32.mrf.mxu1 }
 0x1d7   : > { %11202 = vst [vmem:[#allocation55_spill] sm:$0xff] %v8372_v1  ;;  %v1608_v46 = vsel %vm1595_vm2, %v1579_v62, %v1581_v43  ;;  %v1582_v48 = vrot.slane %v1498_v13, 2  ;;  %v11209_v1 = vld [vmem:[#allocation28_spill] sm:$0xff] }
 0x1d8   : > { %11201 = vst [vmem:[#allocation22_spill] sm:$0xff] %v8370_v59  ;;  %v8377_v42 = vadd.f32 %v1608_v46, %v11203_v0  ;;  %v1502_v10 = vpop.f32.mrf.mxu0  ;;  %v8379_v52 = vpop.f32.mrf.mxu1  ;;  %v11210_v46 = vld [vmem:[#allocation24_spill] sm:$0xff] }
 0x1d9   : > { %11205 = vst [vmem:[#allocation56_spill] sm:$0xff] %v8379_v52  ;;  %v1609_v30 = vsel %vm1595_vm2, %v1580_v28, %v1582_v48  ;;  %v1583_v36 = vrot.slane %v1502_v10, 2  ;;  %v1233_v0 = vadd.f32 %v11210_v46, %v11209_v1  ;;  %v11216_v1 = vld [vmem:[#allocation30_spill] sm:$0xff] }
 0x1da   : > { %11204 = vst [vmem:[#allocation25_spill] sm:$0xff] %v8377_v42  ;;  %v8384_v12 = vadd.f32 %v1609_v30, %v11206_v50  ;;  %v1504_v33 = vpop.f32.mrf.mxu0  ;;  %v8386_v59 = vpop.f32.mrf.mxu1  ;;  %v11211_v42 = vld [vmem:[#allocation27_spill] sm:$0xff] }
 0x1db   : > { %11208 = vst [vmem:[#allocation57_spill] sm:$0xff] %v8386_v59  ;;  %v1606_v62 = vsel %vm1595_vm2, %v1581_v43, %v1583_v36  ;;  %v1584_v13 = vrot.slane %v1504_v33, 2 }
 0x1dc   : > { %11207 = vst [vmem:[#allocation26_spill] sm:$0xff] %v8384_v12  ;;  %v8393_v8 = vadd.f32 %v1606_v62, %v11211_v42  ;;  %v1506_v52 = vpop.f32.mrf.mxu0  ;;  %v8395_v20 = vpop.f32.mrf.mxu1 }
 0x1dd   : > { %11213 = vst [vmem:[#allocation24_spill] sm:$0xff] %v8395_v20  ;;  %v1607_v30 = vsel %vm1595_vm2, %v1582_v48, %v1584_v13  ;;  %v1585_v28 = vrot.slane %v1506_v52, 2  ;;  %v11219_v52 = vld [vmem:[#allocation31_spill] sm:$0xff] }
 0x1de   : > { %11212 = vst [vmem:[#allocation28_spill] sm:$0xff] %v8393_v8  ;;  %v8399_v10 = vadd.f32 %v1607_v30, %v1233_v0  ;;  %v1508_v50 = vpop.f32.mrf.mxu0  ;;  %v8401_v12 = vpop.f32.mrf.mxu1 }
 0x1df   : > { %11215 = vst [vmem:[#allocation58_spill] sm:$0xff] %v8401_v12  ;;  %v1604_v43 = vsel %vm1595_vm2, %v1583_v36, %v1585_v28  ;;  %v1586_v33 = vrot.slane %v1508_v50, 2  ;;  %v11222_v12 = vld [vmem:[#allocation33_spill] sm:$0xff] }
 0x1e0   : > { %11214 = vst [vmem:[#allocation27_spill] sm:$0xff] %v8399_v10  ;;  %v8406_v46 = vadd.f32 %v1604_v43, %v11216_v1  ;;  %v1512_v42 = vpop.f32.mrf.mxu0  ;;  %v8408_v62 = vpop.f32.mrf.mxu1  ;;  %v11223_v43 = vld [vmem:[#allocation29_spill] sm:$0xff] }
 0x1e1   : > { %11218 = vst [vmem:[#allocation59_spill] sm:$0xff] %v8408_v62  ;;  %v1605_v8 = vsel %vm1595_vm2, %v1584_v13, %v1586_v33  ;;  %v1587_v48 = vrot.slane %v1512_v42, 2  ;;  %v1243_v1 = vadd.f32 %v11223_v43, %v11222_v12  ;;  %v11229_v12 = vld [vmem:[#allocation35_spill] sm:$0xff] }
 0x1e2   : > { %11217 = vst [vmem:[#allocation30_spill] sm:$0xff] %v8406_v46  ;;  %v8413_v0 = vadd.f32 %v1605_v8, %v11219_v52  ;;  %v1514_v30 = vpop.f32.mrf.mxu0  ;;  %v8415_v10 = vpop.f32.mrf.mxu1  ;;  %v11224_v46 = vld [vmem:[#allocation32_spill] sm:$0xff] }
 0x1e3   : > { %11221 = vst [vmem:[#allocation60_spill] sm:$0xff] %v8415_v10  ;;  %v1602_v36 = vsel %vm1595_vm2, %v1585_v28, %v1587_v48  ;;  %v1588_v50 = vrot.slane %v1514_v30, 2 }
 0x1e4   : > { %11220 = vst [vmem:[#allocation31_spill] sm:$0xff] %v8413_v0  ;;  %v8422_v20 = vadd.f32 %v1602_v36, %v11224_v46  ;;  %v1516_v62 = vpop.f32.mrf.mxu0  ;;  %v8424_v59 = vpop.f32.mrf.mxu1 }
 0x1e5   : > { %11226 = vst [vmem:[#allocation29_spill] sm:$0xff] %v8424_v59  ;;  %v1603_v8 = vsel %vm1595_vm2, %v1586_v33, %v1588_v50  ;;  %v1589_v13 = vrot.slane %v1516_v62, 2  ;;  %v11232_v62 = vld [vmem:[#allocation36_spill] sm:$0xff] }
 0x1e6   : > { %11225 = vst [vmem:[#allocation33_spill] sm:$0xff] %v8422_v20  ;;  %v8428_v42 = vadd.f32 %v1603_v8, %v1243_v1  ;;  %v1518_v52 = vpop.f32.mrf.mxu0  ;;  %v8430_v0 = vpop.f32.mrf.mxu1 }
 0x1e7   : > { %11228 = vst [vmem:[#allocation61_spill] sm:$0xff] %v8430_v0  ;;  %v1600_v28 = vsel %vm1595_vm2, %v1587_v48, %v1589_v13  ;;  %v1590_v30 = vrot.slane %v1518_v52, 2  ;;  %v11235_v0 = vld [vmem:[#allocation38_spill] sm:$0xff] }
 0x1e8   : > { %11227 = vst [vmem:[#allocation32_spill] sm:$0xff] %v8428_v42  ;;  %v8435_v43 = vadd.f32 %v1600_v28, %v11229_v12  ;;  %v1522_v46 = vpop.f32.mrf.mxu0  ;;  %v8437_v36 = vpop.f32.mrf.mxu1  ;;  %v11236_v28 = vld [vmem:[#allocation34_spill] sm:$0xff] }
 0x1e9   : > { %11231 = vst [vmem:[#allocation62_spill] sm:$0xff] %v8437_v36  ;;  %v1601_v20 = vsel %vm1595_vm2, %v1588_v50, %v1590_v30  ;;  %v1591_v33 = vrot.slane %v1522_v46, 2  ;;  %v1253_v12 = vadd.f32 %v11236_v28, %v11235_v0  ;;  %v11243_v28 = vld [vmem:[#allocation43_spill] sm:$0xff] }
 0x1ea   : > { %11230 = vst [vmem:[#allocation35_spill] sm:$0xff] %v8435_v43  ;;  %v8442_v1 = vadd.f32 %v1601_v20, %v11232_v62  ;;  %v1524_v8 = vpop.f32.mrf.mxu0  ;;  %v8444_v42 = vpop.f32.mrf.mxu1  ;;  %v11237_v43 = vld [vmem:[#allocation37_spill] sm:$0xff] }
 0x1eb   : > { %11234 = vst [vmem:[#allocation63_spill] sm:$0xff] %v8444_v42  ;;  %v1598_v48 = vsel %vm1595_vm2, %v1589_v13, %v1591_v33  ;;  %v1592_v52 = vrot.slane %v1524_v8, 2  ;;  %v11241_v8 = vld [vmem:[#allocation42_spill] sm:$0xff] }
 0x1ec   : > { %11233 = vst [vmem:[#allocation36_spill] sm:$0xff] %v8442_v1  ;;  %v8451_v59 = vadd.f32 %v1598_v48, %v11237_v43  ;;  %v1526_v36 = vpop.f32.mrf.mxu0  ;;  %v8453_v10 = vpop.f32.mrf.mxu1  ;;  %v11242_v43 = vrot.slane %v11241_v8, 2  ;;  %v11248_v8 = vld [vmem:[#allocation39_spill] sm:$0xff] }
 0x1ed   : > { %11239 = vst [vmem:[#allocation34_spill] sm:$0xff] %v8453_v10  ;;  %v1599_v20 = vsel %vm1595_vm2, %v1590_v30, %v1592_v52  ;;  %v1593_v50 = vrot.slane %v1526_v36, 2  ;;  %v11095_v46 = vrot.slane %v8453_v10, 3  ;;  %v11245_v36 = vld [vmem:[#allocation40_spill] sm:$0xff]  ;;  %v11250_v10 = vld [vmem:[#allocation46_spill] sm:$0xff] }
 0x1ee   : > { %11238 = vst [vmem:[#allocation38_spill] sm:$0xff] %v8451_v59  ;;  %v8458_v62 = vadd.f32 %v1599_v20, %v1253_v12  ;;  %v1528_v1 = vpop.f32.mrf.mxu0  ;;  %v8460_v13 = vpop.f32.mrf.mxu1  ;;  %v11244_v59 = vrot.slane %v11243_v28, 3  ;;  %v11246_v20 = vld [vmem:[#allocation41_spill] sm:$0xff] }
 0x1ef   : > { %v1596_v0 = vsel %vm1595_vm2, %v1591_v33, %v1593_v50  ;;  %v1658_v48 = vsel %vm1595_vm2, %v1593_v50, %v11242_v43  ;;  %v1594_v42 = vrot.slane %v1528_v1, 2  ;;  %v11247_v33 = vld [vmem:[#allocation44_spill] sm:$0xff]  ;;  %v11097_v50 = vrot.slane %v8460_v13, 3  ;;  %v11253_v1 = vld [vmem:[#allocation45_spill] sm:$0xff] }
 0x1f0   : > { %11240 = vst [vmem:[#allocation37_spill] sm:$0xff] %v8458_v62  ;;  %v2117_v30 = vsel %vm2054_vm3, %v11095_v46, %v11244_v59  ;;  %v8475_v12 = vadd.f32 %v1596_v0, %v11245_v36  ;;  %v1722_v62 = vadd.f32 %v1658_v48, %v11246_v20  ;;  %v8478_v57 = vpop.f32.mrf.mxu0  ;;  %v1263_v5 = vadd.f32 %v11248_v8, %v11247_v33  ;;  %v11255_v46 = vld [vmem:[#allocation47_spill] sm:$0xff] }
 0x1f1   : > { %v1597_v28 = vsel %vm1595_vm2, %v1592_v52, %v1594_v42  ;;  %v11251_v59 = vrot.slane %v11250_v10, 2  ;;  %v11256_v33 = vrot.slane %v11255_v46, 3 }
 0x1f2   : > { %v8483_v43 = vadd.f32 %v2117_v30, %v1722_v62  ;;  %v8491_v36 = vpop.f32.mrf.mxu0  ;;  %v8494_v48 = vadd.f32 %v1597_v28, %v11253_v1 }
 0x1f3   : > { %v1659_v0 = vsel %vm1595_vm2, %v1594_v42, %v11251_v59  ;;  %11252 = vst [vmem:[#allocation43_spill] sm:$0xff] %v8491_v36  ;;  %v2118_v62 = vsel %vm2054_vm3, %v11097_v50, %v11256_v33  ;;  %v11096_v42 = vrot.slane %v8478_v57, 4  ;;  %v11098_v28 = vrot.slane %v8491_v36, 4 }
 0x1f4   : > { %11249 = vst [vmem:[#allocation42_spill] sm:$0xff] %v8483_v43  ;;  %11254 = vst [vmem:[#allocation40_spill] sm:$0xff] %v8494_v48  ;;  %v1723_v20 = vadd.f32 %v1659_v0, %v1263_v5  ;;  %v2294_v30 = vpop.f32.mrf.mxu0 }
 0x1f5   : > { %v2451_v52 = vrot.slane %v2294_v30, 4  ;;  %v8520_v30 = vld [vmem:[%s11058_s2] ss:$0 sm:$0xff] }
 0x1f6   : > { %v8503_v10 = vadd.f32 %v2118_v62, %v1723_v20  ;;  %v2296_v8 = vpop.f32.mrf.mxu0 }
 0x1f7   : > { %v2574_v5 = vsel %vm2513_vm4, %v11096_v42, %v2451_v52  ;;  %v2452_v46 = vrot.slane %v2296_v8, 4 }
 0x1f8   : > { %11257 = vst [vmem:[#allocation41_spill] sm:$0xff] %v8503_v10  ;;  %v2578_v59 = vadd.f32 %v2574_v5, %v7991_v29  ;;  %v2300_v0 = vpop.f32.mrf.mxu0 }
 0x1f9   : > { %v2575_v1 = vsel %vm2513_vm4, %v11098_v28, %v2452_v46  ;;  %v2453_v20 = vrot.slane %v2300_v0, 4 }
 0x1fa   : > { %v2579_v33 = vadd.f32 %v2575_v1, %v7998_v7  ;;  %v2302_v62 = vpop.f32.mrf.mxu0 }
 0x1fb   : > { %v2572_v8 = vsel %vm2513_vm4, %v2451_v52, %v2453_v20  ;;  %v2454_v42 = vrot.slane %v2302_v62, 4 }
 0x1fc   : > { %v2642_v29 = vmax.f32 %v2578_v59, %v2579_v33  ;;  %v2580_v5 = vadd.f32 %v2572_v8, %v8005_v22  ;;  %v2304_v50 = vpop.f32.mrf.mxu0 }
 0x1fd   : > { %v2573_v28 = vsel %vm2513_vm4, %v2452_v46, %v2454_v42  ;;  %v2455_v0 = vrot.slane %v2304_v50, 4 }
 0x1fe   : > { %v2681_v7 = vadd.f32 %v8520_v30, %v2642_v29  ;;  %v2581_v1 = vadd.f32 %v2573_v28, %v8012_v40  ;;  %v2306_v10 = vpop.f32.mrf.mxu0 }
 0x1ff   : > { %v2570_v36 = vsel %vm2513_vm4, %v2453_v20, %v2455_v0  ;;  %v2456_v43 = vrot.slane %v2306_v10, 4 }
 0x200   : > { %v2643_v48 = vmax.f32 %v2580_v5, %v2581_v1  ;;  %v2582_v52 = vadd.f32 %v2570_v36, %v8022_v26  ;;  %v2310_v59 = vpop.f32.mrf.mxu0  ;;  %v2713_v62 = vmax.f32 %v2681_v7, 0.0 }
 0x201   : > { %v2571_v22 = vsel %vm2513_vm4, %v2454_v42, %v2456_v43  ;;  %v2457_v33 = vrot.slane %v2310_v59, 4 }
 0x202   : > { %v2682_v50 = vadd.f32 %v8520_v30, %v2643_v48  ;;  %v2583_v46 = vadd.f32 %v2571_v22, %v8029_v53  ;;  %v2312_v8 = vpop.f32.mrf.mxu0  ;;  %v8543_v1 = vrot.slane %v2713_v62, 1 }
 0x203   : > { %v2568_v40 = vsel %vm2513_vm4, %v2455_v0, %v2457_v33  ;;  %v2458_v28 = vrot.slane %v2312_v8, 4 }
 0x204   : > { %v2714_v20 = vmax.f32 %v2682_v50, 0.0  ;;  %v2644_v10 = vmax.f32 %v2582_v52, %v2583_v46  ;;  %v2584_v29 = vadd.f32 %v2568_v40, %v8036_v44  ;;  %v2314_v26 = vpop.f32.mrf.mxu0 }
 0x205   : > { %v2569_v36 = vsel %vm2513_vm4, %v2456_v43, %v2458_v28  ;;  %v2459_v42 = vrot.slane %v2314_v26, 4 }
 0x206   : > { %v2746_v5 = vrot.slane %v2714_v20, 1  ;;  %v2683_v7 = vadd.f32 %v8520_v30, %v2644_v10  ;;  %v2585_v48 = vadd.f32 %v2569_v36, %v8043_v15  ;;  %v2316_v53 = vpop.f32.mrf.mxu0 }
 0x207   : > { %v2566_v0 = vsel %vm2513_vm4, %v2457_v33, %v2459_v42  ;;  %v2460_v59 = vrot.slane %v2316_v53, 4 }
 0x208   : > { %v2645_v52 = vmax.f32 %v2584_v29, %v2585_v48  ;;  %v2586_v44 = vadd.f32 %v2566_v0, %v8053_v51  ;;  %v2320_v22 = vpop.f32.mrf.mxu0  ;;  %v2715_v50 = vmax.f32 %v2683_v7, 0.0  ;;  %v2807_v43 = vsel %vm947_vm1, %v8543_v1, %v2746_v5 }
 0x209   : > { %v2567_v46 = vsel %vm2513_vm4, %v2458_v28, %v2460_v59  ;;  %v2461_v15 = vrot.slane %v2320_v22, 4  ;;  %v8553_v8 = vmax.f32 %v2713_v62, %v2807_v43 }
 0x20a   : > { %v2684_v40 = vadd.f32 %v8520_v30, %v2645_v52  ;;  %v2587_v33 = vadd.f32 %v2567_v46, %v8060_v2  ;;  %v2322_v10 = vpop.f32.mrf.mxu0  ;;  %v2747_v29 = vrot.slane %v2715_v50, 1 }
 0x20b   : > { %v2564_v51 = vsel %vm2513_vm4, %v2459_v42, %v2461_v15  ;;  %v2462_v26 = vrot.slane %v2322_v10, 4 }
 0x20c   : > { %v2716_v36 = vmax.f32 %v2684_v40, 0.0  ;;  %v2646_v7 = vmax.f32 %v2586_v44, %v2587_v33  ;;  %v2588_v48 = vadd.f32 %v2564_v51, %v8067_v6  ;;  %v2324_v53 = vpop.f32.mrf.mxu0  ;;  %v2806_v28 = vsel %vm947_vm1, %v2746_v5, %v2747_v29 }
 0x20d   : > { %v2565_v62 = vsel %vm2513_vm4, %v2460_v59, %v2462_v26  ;;  %v2463_v0 = vrot.slane %v2324_v53, 4  ;;  %v8564_v52 = vmax.f32 %v2714_v20, %v2806_v28 }
 0x20e   : > { %v2748_v2 = vrot.slane %v2716_v36, 1  ;;  %v2685_v22 = vadd.f32 %v8520_v30, %v2646_v7  ;;  %v2589_v42 = vadd.f32 %v2565_v62, %v8074_v49  ;;  %v2326_v43 = vpop.f32.mrf.mxu0 }
 0x20f   : > { %v2562_v44 = vsel %vm2513_vm4, %v2461_v15, %v2463_v0  ;;  %v2464_v6 = vrot.slane %v2326_v43, 4 }
 0x210   : > { %v2647_v5 = vmax.f32 %v2588_v48, %v2589_v42  ;;  %v2590_v40 = vadd.f32 %v2562_v44, %v8084_v24  ;;  %v2330_v59 = vpop.f32.mrf.mxu0  ;;  %v2717_v33 = vmax.f32 %v2685_v22, 0.0  ;;  %v2805_v20 = vsel %vm947_vm1, %v2747_v29, %v2748_v2 }
 0x211   : > { %v2563_v10 = vsel %vm2513_vm4, %v2462_v26, %v2464_v6  ;;  %v2465_v49 = vrot.slane %v2330_v59, 4  ;;  %v8577_v51 = vmax.f32 %v2715_v50, %v2805_v20 }
 0x212   : > { %v2686_v15 = vadd.f32 %v8520_v30, %v2647_v5  ;;  %v2591_v7 = vadd.f32 %v2563_v10, %v8091_v4  ;;  %v2332_v53 = vpop.f32.mrf.mxu0  ;;  %v2749_v28 = vrot.slane %v2717_v33, 1 }
 0x213   : > { %v2560_v24 = vsel %vm2513_vm4, %v2463_v0, %v2465_v49  ;;  %v2466_v48 = vrot.slane %v2332_v53, 4 }
 0x214   : > { %v2718_v62 = vmax.f32 %v2686_v15, 0.0  ;;  %v2648_v22 = vmax.f32 %v2590_v40, %v2591_v7  ;;  %v2592_v29 = vadd.f32 %v2560_v24, %v8098_v31  ;;  %v2334_v42 = vpop.f32.mrf.mxu0  ;;  %v2804_v26 = vsel %vm947_vm1, %v2748_v2, %v2749_v28 }
 0x215   : > { %v2561_v50 = vsel %vm2513_vm4, %v2464_v6, %v2466_v48  ;;  %v2467_v43 = vrot.slane %v2334_v42, 4  ;;  %v8588_v44 = vmax.f32 %v2716_v36, %v2804_v26 }
 0x216   : > { %v2750_v4 = vrot.slane %v2718_v62, 1  ;;  %v2687_v5 = vadd.f32 %v8520_v30, %v2648_v22  ;;  %v2593_v0 = vadd.f32 %v2561_v50, %v8105_v11  ;;  %v2336_v59 = vpop.f32.mrf.mxu0 }
 0x217   : > { %v2558_v40 = vsel %vm2513_vm4, %v2465_v49, %v2467_v43  ;;  %v2468_v31 = vrot.slane %v2336_v59, 4 }
 0x218   : > { %v2649_v2 = vmax.f32 %v2592_v29, %v2593_v0  ;;  %v2594_v10 = vadd.f32 %v2558_v40, %v8115_v34  ;;  %v2340_v6 = vpop.f32.mrf.mxu0  ;;  %v2719_v15 = vmax.f32 %v2687_v5, 0.0  ;;  %v2803_v36 = vsel %vm947_vm1, %v2749_v28, %v2750_v4 }
 0x219   : > { %v2559_v7 = vsel %vm2513_vm4, %v2466_v48, %v2468_v31  ;;  %v2469_v11 = vrot.slane %v2340_v6, 4  ;;  %v8601_v53 = vmax.f32 %v2717_v33, %v2803_v36  ;;  %v2023_v29 = vrot.slane %v8219_v35, 3 }
 0x21a   : > { %v2688_v49 = vadd.f32 %v8520_v30, %v2649_v2  ;;  %v2595_v24 = vadd.f32 %v2559_v7, %v8124_v32  ;;  %v2342_v22 = vpop.f32.mrf.mxu0  ;;  %v2751_v42 = vrot.slane %v2719_v15, 1 }
 0x21b   : > { %v2556_v34 = vsel %vm2513_vm4, %v2467_v43, %v2469_v11  ;;  %v2470_v26 = vrot.slane %v2342_v22, 4 }
 0x21c   : > { %v2720_v50 = vmax.f32 %v2688_v49, 0.0  ;;  %v2650_v28 = vmax.f32 %v2594_v10, %v2595_v24  ;;  %v2596_v5 = vadd.f32 %v2556_v34, %v8131_v55  ;;  %v2344_v48 = vpop.f32.mrf.mxu0  ;;  %v2802_v33 = vsel %vm947_vm1, %v2750_v4, %v2751_v42  ;;  %v6810_v55 = vld [vmem:[%s11059_s3 + $0x4] ss:$8 sps:$4 sm:$0xff]  }
 0x21d   : > { %v2557_v0 = vsel %vm2513_vm4, %v2468_v31, %v2470_v26  ;;  %v2471_v32 = vrot.slane %v2344_v48, 4  ;;  %v8613_v59 = vmax.f32 %v2718_v62, %v2802_v33  ;;  %v11258_v10 = vrot.slane %v8197_v58, 3  ;;  %2973 = vmatprep.mubr.bf16.mxu1 %v6810_v55 }
 0x21e   : > { %v2752_v40 = vrot.slane %v2720_v50, 1  ;;  %v2689_v35 = vadd.f32 %v8520_v30, %v2650_v28  ;;  %v2597_v43 = vadd.f32 %v2557_v0, %v8137_v14  ;;  %v2346_v2 = vpop.f32.mrf.mxu0  ;;  %v11260_v28 = vrot.slane %v8207_v38, 3 }
 0x21f   : > { %v2086_v4 = vsel %vm2054_vm3, %v11258_v10, %v2023_v29  ;;  %v2554_v31 = vsel %vm2513_vm4, %v2469_v11, %v2471_v32  ;;  %v2472_v62 = vrot.slane %v2346_v2, 4  ;;  %v11259_v11 = vrot.slane %v8232_v41, 3 }
 0x220   : > { %v2651_v36 = vmax.f32 %v2596_v5, %v2597_v43  ;;  %v2598_v14 = vadd.f32 %v2554_v31, %v8147_v54  ;;  %v2350_v7 = vpop.f32.mrf.mxu0  ;;  %v2721_v49 = vmax.f32 %v2689_v35, 0.0  ;;  %v2801_v24 = vsel %vm947_vm1, %v2751_v42, %v2752_v40 }
 0x221   : > { %v2555_v58 = vsel %vm2513_vm4, %v2470_v26, %v2472_v62  ;;  %v2473_v22 = vrot.slane %v2350_v7, 4  ;;  %v8633_v34 = vmax.f32 %v2719_v15, %v2801_v24  ;;  %v2083_v5 = vsel %vm2054_vm3, %v11260_v28, %v11259_v11 }
 0x222   : > { %v2690_v54 = vadd.f32 %v8520_v30, %v2651_v36  ;;  %v2599_v48 = vadd.f32 %v2555_v58, %v8156_v21  ;;  %v2352_v33 = vpop.f32.mrf.mxu0  ;;  %v2753_v42 = vrot.slane %v2721_v49, 1  ;;  %v8644_v0 = vadd.f32 %v2086_v4, %v8238_v9 }
 0x223   : > { %v2031_v26 = vrot.slane %v8290_v37, 3  ;;  %v2552_v15 = vsel %vm2513_vm4, %v2471_v32, %v2473_v22  ;;  %v2474_v41 = vrot.slane %v2352_v33, 4  ;;  %v11261_v21 = vrot.slane %v8240_v61, 3 }
 0x224   : > { %v2722_v35 = vmax.f32 %v2690_v54, 0.0  ;;  %v2652_v38 = vmax.f32 %v2598_v14, %v2599_v48  ;;  %v2600_v43 = vadd.f32 %v2552_v15, %v8163_v3  ;;  %v2354_v2 = vpop.f32.mrf.mxu0  ;;  %v2800_v55 = vsel %vm947_vm1, %v2752_v40, %v2753_v42 }
 0x225   : > { %v2084_v9 = vsel %vm2054_vm3, %v2023_v29, %v11261_v21  ;;  %v2553_v37 = vsel %vm2513_vm4, %v2472_v62, %v2474_v41  ;;  %v2475_v10 = vrot.slane %v2354_v2, 4  ;;  %v8658_v4 = vmax.f32 %v2720_v50, %v2800_v55 }
 0x226   : > { %v8661_v32 = vadd.f32 %v2083_v5, %v8245_v56  ;;  %v2754_v31 = vrot.slane %v2722_v35, 1  ;;  %v2691_v3 = vadd.f32 %v8520_v30, %v2652_v38  ;;  %v2601_v36 = vadd.f32 %v2553_v37, %v8169_v39  ;;  %v2356_v40 = vpop.f32.mrf.mxu0 }
 0x227   : > { %v11262_v61 = vrot.slane %v8271_v63, 3  ;;  %v2550_v62 = vsel %vm2513_vm4, %v2473_v22, %v2475_v10  ;;  %v2476_v14 = vrot.slane %v2356_v40, 4  ;;  %v2033_v63 = vrot.slane %v8310_v45, 3 }
 0x228   : > { %v2653_v56 = vmax.f32 %v2600_v43, %v2601_v36  ;;  %v2602_v7 = vadd.f32 %v2550_v62, %v8179_v19  ;;  %v2360_v24 = vpop.f32.mrf.mxu0  ;;  %v2723_v58 = vmax.f32 %v2691_v3, 0.0  ;;  %v2799_v39 = vsel %vm947_vm1, %v2753_v42, %v2754_v31  ;;  %v11264_v3 = vld [vmem:[#allocation15_spill] sm:$0xff] }
 0x229   : > { %v2078_v29 = vsel %vm2054_vm3, %v11262_v61, %v2031_v26  ;;  %v2551_v11 = vsel %vm2513_vm4, %v2474_v41, %v2476_v14  ;;  %v2477_v28 = vrot.slane %v2360_v24, 4  ;;  %v8679_v5 = vmax.f32 %v2721_v49, %v2799_v39 }
 0x22a   : > { %v2034_v22 = vrot.slane %v8319_v18, 3  ;;  %v2692_v54 = vadd.f32 %v8520_v30, %v2653_v56  ;;  %v2603_v48 = vadd.f32 %v2551_v11, %v8188_v27  ;;  %v2362_v19 = vpop.f32.mrf.mxu0  ;;  %v2755_v33 = vrot.slane %v2723_v58, 1 }
 0x22b   : > { %v8685_v15 = vadd.f32 %v2084_v9, %v8251_v23  ;;  %v8688_v42 = vadd.f32 %v2078_v29, %v8308_v16  ;;  %v2548_v45 = vsel %vm2513_vm4, %v2475_v10, %v2477_v28  ;;  %v2478_v41 = vrot.slane %v2362_v19, 4  ;;  %v11268_v19 = vld [vmem:[#allocation49_spill] sm:$0xff] }
 0x22c   : > { %v2724_v49 = vmax.f32 %v2692_v54, 0.0  ;;  %v2654_v38 = vmax.f32 %v2602_v7, %v2603_v48  ;;  %v2604_v18 = vadd.f32 %v2548_v45, %v8195_v60  ;;  %v2364_v43 = vpop.f32.mrf.mxu0  ;;  %v2798_v27 = vsel %vm947_vm1, %v2754_v31, %v2755_v33  ;;  %v11266_v7 = vld [vmem:[#allocation12_spill] sm:$0xff] }
 0x22d   : > { %v2076_v2 = vsel %vm2054_vm3, %v2031_v26, %v2033_v63  ;;  %v2549_v23 = vsel %vm2513_vm4, %v2476_v14, %v2478_v41  ;;  %v2479_v16 = vrot.slane %v2364_v43, 4  ;;  %v8699_v55 = vmax.f32 %v2722_v35, %v2798_v27  ;;  %v11269_v43 = vld [vmem:[#allocation16_spill] sm:$0xff] }
 0x22e   : > { %v11263_v21 = vrot.slane %v8301_v47, 3  ;;  %v2756_v37 = vrot.slane %v2724_v49, 1  ;;  %v2693_v60 = vadd.f32 %v8520_v30, %v2654_v38  ;;  %v2605_v10 = vadd.f32 %v2549_v23, %v8204_v25  ;;  %v2366_v31 = vpop.f32.mrf.mxu0  ;;  %v11265_v47 = vld [vmem:[#allocation48_spill] sm:$0xff] }
 0x22f   : > { %v2035_v36 = vrot.slane %v11264_v3, 3  ;;  %v2546_v26 = vsel %vm2513_vm4, %v2477_v28, %v2479_v16  ;;  %v2480_v40 = vrot.slane %v2366_v31, 4  ;;  %v8716_v25 = vadd.f32 %v2076_v2, %v11266_v7  ;;  %v11267_v28 = vld [vmem:[#allocation18_spill] sm:$0xff]  ;;  %v11271_v3 = vld [vmem:[#allocation17_spill] sm:$0xff] }
 0x230   : > { %v2073_v9 = vsel %vm2054_vm3, %v11263_v21, %v2034_v22  ;;  %v2655_v61 = vmax.f32 %v2604_v18, %v2605_v10  ;;  %v2606_v29 = vadd.f32 %v2546_v26, %v11265_v47  ;;  %v2370_v62 = vpop.f32.mrf.mxu0  ;;  %v2725_v14 = vmax.f32 %v2693_v60, 0.0  ;;  %v11270_v21 = vld [vmem:[#allocation50_spill] sm:$0xff]  ;;  %v11272_v7 = vld [vmem:[#allocation53_spill] sm:$0xff] }
 0x231   : > { %v2797_v56 = vsel %vm947_vm1, %v2755_v33, %v2756_v37  ;;  %v2547_v24 = vsel %vm2513_vm4, %v2478_v41, %v2480_v40  ;;  %v2481_v39 = vrot.slane %v2370_v62, 4  ;;  %v2036_v54 = vrot.slane %v11267_v28, 3 }
 0x232   : > { %v8720_v11 = vmax.f32 %v2723_v58, %v2797_v56  ;;  %v2694_v48 = vadd.f32 %v8520_v30, %v2655_v61  ;;  %v2607_v45 = vadd.f32 %v2547_v24, %v11268_v19  ;;  %v2372_v38 = vpop.f32.mrf.mxu0  ;;  %v2757_v18 = vrot.slane %v2725_v14, 1 }
 0x233   : > { %v8726_v27 = vadd.f32 %v2073_v9, %v11269_v43  ;;  %v2074_v33 = vsel %vm2054_vm3, %v2033_v63, %v2035_v36  ;;  %v2544_v41 = vsel %vm2513_vm4, %v2479_v16, %v2481_v39  ;;  %v2482_v2 = vrot.slane %v2372_v38, 4 }
 0x234   : > { %v2726_v58 = vmax.f32 %v2694_v48, 0.0  ;;  %v2656_v23 = vmax.f32 %v2606_v29, %v2607_v45  ;;  %v2608_v60 = vadd.f32 %v2544_v41, %v11270_v21  ;;  %v2374_v10 = vpop.f32.mrf.mxu0  ;;  %v2796_v31 = vsel %vm947_vm1, %v2756_v37, %v2757_v18 }
 0x235   : > { %v2037_v26 = vrot.slane %v11271_v3, 3  ;;  %v2545_v9 = vsel %vm2513_vm4, %v2480_v40, %v2482_v2  ;;  %v2483_v61 = vrot.slane %v2374_v10, 4  ;;  %v8738_v47 = vmax.f32 %v2724_v49, %v2796_v31  ;;  %v11273_v49 = vld [vmem:[#allocation14_spill] sm:$0xff]  ;;  %v11274_v31 = vld [vmem:[#allocation20_spill] sm:$0xff] }
 0x236   : > { %v2071_v63 = vsel %vm2054_vm3, %v2034_v22, %v2036_v54  ;;  %v2758_v16 = vrot.slane %v2726_v58, 1  ;;  %v2695_v29 = vadd.f32 %v8520_v30, %v2656_v23  ;;  %v2609_v62 = vadd.f32 %v2545_v9, %v8644_v0  ;;  %v2376_v56 = vpop.f32.mrf.mxu0 }
 0x237   : > { %v2038_v24 = vrot.slane %v11272_v7, 3  ;;  %v2542_v37 = vsel %vm2513_vm4, %v2481_v39, %v2483_v61  ;;  %v2484_v28 = vrot.slane %v2376_v56, 4  ;;  %v8750_v48 = vadd.f32 %v2074_v33, %v11273_v49 }
 0x238   : > { %v2657_v19 = vmax.f32 %v2608_v60, %v2609_v62  ;;  %v2380_v22 = vpop.f32.mrf.mxu0  ;;  %v2727_v45 = vmax.f32 %v2695_v29, 0.0  ;;  %v2795_v38 = vsel %vm947_vm1, %v2757_v18, %v2758_v16  ;;  %v2072_v0 = vsel %vm2054_vm3, %v2035_v36, %v2037_v26  ;;  %v11275_v29 = vld [vmem:[#allocation51_spill] sm:$0xff] }
 0x239   : > { %v2543_v43 = vsel %vm2513_vm4, %v2482_v2, %v2484_v28  ;;  %v2485_v39 = vrot.slane %v2380_v22, 4  ;;  %v8758_v41 = vmax.f32 %v2725_v14, %v2795_v38  ;;  %v2610_v33 = vadd.f32 %v2542_v37, %v8661_v32  ;;  %v11278_v38 = vld [vmem:[#allocation52_spill] sm:$0xff] }
 0x23a   : > { %v2696_v23 = vadd.f32 %v8520_v30, %v2657_v19  ;;  %v2611_v21 = vadd.f32 %v2543_v43, %v8685_v15  ;;  %v2382_v60 = vpop.f32.mrf.mxu0  ;;  %v2759_v10 = vrot.slane %v2727_v45, 1  ;;  %v8764_v3 = vadd.f32 %v2071_v63, %v11274_v31  ;;  %v11276_v15 = vld [vmem:[#allocation54_spill] sm:$0xff] }
 0x23b   : > { %v2069_v36 = vsel %vm2054_vm3, %v2036_v54, %v2038_v24  ;;  %v2540_v18 = vsel %vm2513_vm4, %v2483_v61, %v2485_v39  ;;  %v2486_v2 = vrot.slane %v2382_v60, 4  ;;  %v2039_v7 = vrot.slane %v11276_v15, 3  ;;  %v11277_v54 = vld [vmem:[#allocation21_spill] sm:$0xff] }
 0x23c   : > { %v2728_v14 = vmax.f32 %v2696_v23, 0.0  ;;  %v2658_v9 = vmax.f32 %v2610_v33, %v2611_v21  ;;  %v2612_v62 = vadd.f32 %v2540_v18, %v11275_v29  ;;  %v2384_v56 = vpop.f32.mrf.mxu0  ;;  %v2794_v32 = vsel %vm947_vm1, %v2758_v16, %v2759_v10  ;;  %v11279_v33 = vld [vmem:[#allocation19_spill] sm:$0xff]  ;;  %v11280_v18 = vld [vmem:[#allocation10_spill] sm:$0xff] }
 0x23d   : > { %v2541_v63 = vsel %vm2513_vm4, %v2484_v28, %v2486_v2  ;;  %v2487_v37 = vrot.slane %v2384_v56, 4  ;;  %v8776_v49 = vmax.f32 %v2726_v58, %v2794_v32  ;;  %v8779_v19 = vadd.f32 %v2072_v0, %v11277_v54  ;;  %v11281_v56 = vld [vmem:[#allocation55_spill] sm:$0xff] }
 0x23e   : > { %v2760_v61 = vrot.slane %v2728_v14, 1  ;;  %v2697_v22 = vadd.f32 %v8520_v30, %v2658_v9  ;;  %v2613_v43 = vadd.f32 %v2541_v63, %v11278_v38  ;;  %v2386_v23 = vpop.f32.mrf.mxu0  ;;  %v2040_v21 = vrot.slane %v11279_v33, 3  ;;  %v11283_v33 = vld [vmem:[#allocation23_spill] sm:$0xff] }
 0x23f   : > { %v2538_v16 = vsel %vm2513_vm4, %v2485_v39, %v2487_v37  ;;  %v2488_v60 = vrot.slane %v2386_v23, 4  ;;  %v2041_v32 = vrot.slane %v11281_v56, 3  ;;  %v2070_v39 = vsel %vm2054_vm3, %v2037_v26, %v2039_v7 }
 0x240   : > { %v2729_v58 = vmax.f32 %v2697_v22, 0.0  ;;  %v2659_v31 = vmax.f32 %v2612_v62, %v2613_v43  ;;  %v2614_v0 = vadd.f32 %v2538_v16, %v11280_v18  ;;  %v2390_v29 = vpop.f32.mrf.mxu0  ;;  %v2793_v9 = vsel %vm947_vm1, %v2759_v10, %v2760_v61  ;;  %v11282_v22 = vld [vmem:[#allocation11_spill] sm:$0xff] }
 0x241   : > { %v2539_v15 = vsel %vm2513_vm4, %v2486_v2, %v2488_v60  ;;  %v2489_v63 = vrot.slane %v2390_v29, 4  ;;  %v8794_v54 = vmax.f32 %v2727_v45, %v2793_v9  ;;  %v8801_v16 = vadd.f32 %v2069_v36, %v11283_v33  ;;  %v11284_v29 = vld [vmem:[#allocation13_spill] sm:$0xff]  ;;  %v11285_v33 = vld [vmem:[#allocation56_spill] sm:$0xff] }
 0x242   : > { %v2761_v38 = vrot.slane %v2729_v58, 1  ;;  %v2615_v62 = vadd.f32 %v2539_v15, %v11282_v22  ;;  %v2392_v43 = vpop.f32.mrf.mxu0  ;;  %v2698_v23 = vadd.f32 %v8520_v30, %v2659_v31  ;;  %v2067_v10 = vsel %vm2054_vm3, %v2038_v24, %v2040_v21 }
 0x243   : > { %v2536_v2 = vsel %vm2513_vm4, %v2487_v37, %v2489_v63  ;;  %v2490_v45 = vrot.slane %v2392_v43, 4  ;;  %v2068_v31 = vsel %vm2054_vm3, %v2039_v7, %v2041_v32  ;;  %v2042_v37 = vrot.slane %v11285_v33, 3 }
 0x244   : > { %v2660_v18 = vmax.f32 %v2614_v0, %v2615_v62  ;;  %v2616_v9 = vadd.f32 %v2536_v2, %v11284_v29  ;;  %v2394_v26 = vpop.f32.mrf.mxu0  ;;  %v2792_v56 = vsel %vm947_vm1, %v2760_v61, %v2761_v38  ;;  %v2730_v15 = vmax.f32 %v2698_v23, 0.0  ;;  %v11286_v29 = vld [vmem:[#allocation57_spill] sm:$0xff] }
 0x245   : > { %v2537_v36 = vsel %vm2513_vm4, %v2488_v60, %v2490_v45  ;;  %v2491_v22 = vrot.slane %v2394_v26, 4  ;;  %v8814_v24 = vmax.f32 %v2728_v14, %v2792_v56  ;;  %v2043_v61 = vrot.slane %v11286_v29, 3  ;;  %v11287_v14 = vld [vmem:[#allocation9_spill] sm:$0xff] }
 0x246   : > { %v2617_v0 = vadd.f32 %v2537_v36, %v8688_v42  ;;  %v2396_v62 = vpop.f32.mrf.mxu0  ;;  %v2699_v43 = vadd.f32 %v8520_v30, %v2660_v18  ;;  %v2762_v2 = vrot.slane %v2730_v15, 1  ;;  %v11288_v36 = vld [vmem:[#allocation22_spill] sm:$0xff] }
 0x247   : > { %v2534_v23 = vsel %vm2513_vm4, %v2489_v63, %v2491_v22  ;;  %v2492_v7 = vrot.slane %v2396_v62, 4  ;;  %v8828_v18 = vadd.f32 %v2070_v39, %v11288_v36  ;;  %v11289_v62 = vld [vmem:[#allocation25_spill] sm:$0xff]  ;;  %v2065_v39 = vsel %vm2054_vm3, %v2040_v21, %v2042_v37  ;;  %v11291_v36 = vld [vmem:[#allocation24_spill] sm:$0xff] }
 0x248   : > { %v2661_v26 = vmax.f32 %v2616_v9, %v2617_v0  ;;  %v2618_v56 = vadd.f32 %v2534_v23, %v11287_v14  ;;  %v2400_v46 = vpop.f32.mrf.mxu0  ;;  %v2731_v33 = vmax.f32 %v2699_v43, 0.0  ;;  %v2791_v42 = vsel %vm947_vm1, %v2761_v38, %v2762_v2  ;;  %v11290_v14 = vld [vmem:[#allocation26_spill] sm:$0xff] }
 0x249   : > { %v2535_v29 = vsel %vm2513_vm4, %v2490_v45, %v2492_v7  ;;  %v2493_v20 = vrot.slane %v2400_v46, 4  ;;  %v8832_v63 = vmax.f32 %v2729_v58, %v2791_v42  ;;  %v8835_v6 = vadd.f32 %v2067_v10, %v11289_v62 }
 0x24a   : > { %v2619_v9 = vadd.f32 %v2535_v29, %v8716_v25  ;;  %v2402_v0 = vpop.f32.mrf.mxu0  ;;  %v2700_v43 = vadd.f32 %v8520_v30, %v2661_v26  ;;  %v2763_v23 = vrot.slane %v2731_v33, 1  ;;  %v8840_v38 = vadd.f32 %v2068_v31, %v11290_v14 }
 0x24b   : > { %v2532_v46 = vsel %vm2513_vm4, %v2491_v22, %v2493_v20  ;;  %v2494_v58 = vrot.slane %v2402_v0, 4  ;;  %v2066_v10 = vsel %vm2054_vm3, %v2041_v32, %v2043_v61  ;;  %v2044_v29 = vrot.slane %v11291_v36, 3 }
 0x24c   : > { %v2662_v45 = vmax.f32 %v2618_v56, %v2619_v9  ;;  %v2404_v42 = vpop.f32.mrf.mxu0  ;;  %v2732_v25 = vmax.f32 %v2700_v43, 0.0  ;;  %v2790_v26 = vsel %vm947_vm1, %v2762_v2, %v2763_v23  ;;  %v2620_v22 = vadd.f32 %v2532_v46, %v8726_v27  ;;  %v11292_v9 = vld [vmem:[#allocation58_spill] sm:$0xff] }
 0x24d   : > { %v2533_v31 = vsel %vm2513_vm4, %v2492_v7, %v2494_v58  ;;  %v2495_v62 = vrot.slane %v2404_v42, 4  ;;  %v8853_v21 = vmax.f32 %v2730_v15, %v2790_v26  ;;  %v2045_v43 = vrot.slane %v11292_v9, 3  ;;  %v11293_v42 = vld [vmem:[#allocation28_spill] sm:$0xff] }
 0x24e   : > { %v2621_v0 = vadd.f32 %v2533_v31, %v8750_v48  ;;  %v2406_v14 = vpop.f32.mrf.mxu0  ;;  %v2701_v32 = vadd.f32 %v8520_v30, %v2662_v45  ;;  %v2764_v56 = vrot.slane %v2732_v25, 1  ;;  %v8864_v15 = vadd.f32 %v2065_v39, %v11293_v42 }
 0x24f   : > { %v2530_v2 = vsel %vm2513_vm4, %v2493_v20, %v2495_v62  ;;  %v2496_v36 = vrot.slane %v2406_v14, 4  ;;  %v2063_v45 = vsel %vm2054_vm3, %v2042_v37, %v2044_v29  ;;  %v6834_v37 = vld [vmem:[%s11060_s4 + $0x174] ss:$8 sps:$4 sm:$0xff]  }
 0x250   : > { %v2663_v26 = vmax.f32 %v2620_v22, %v2621_v0  ;;  %v2410_v27 = vpop.f32.mrf.mxu0  ;;  %v2733_v46 = vmax.f32 %v2701_v32, 0.0  ;;  %v2789_v48 = vsel %vm947_vm1, %v2763_v23, %v2764_v56  ;;  %v2622_v7 = vadd.f32 %v2530_v2, %v8764_v3  ;;  %v6832_v23 = vld [vmem:[%s11060_s4 + $0x170] ss:$8 sps:$4 sm:$0xff]   ;;  %v11295_v2 = vld [vmem:[#allocation59_spill] sm:$0xff]  ;;  %3589 = vmatprep.subr.bf16.mxu0 %v6834_v37 }
 0x251   : > { %v2531_v31 = vsel %vm2513_vm4, %v2494_v58, %v2496_v36  ;;  %v2497_v20 = vrot.slane %v2410_v27, 4  ;;  %v8872_v14 = vmax.f32 %v2731_v33, %v2789_v48  ;;  %v11294_v58 = vld [vmem:[#allocation27_spill] sm:$0xff]  ;;  %v2064_v3 = vsel %vm2054_vm3, %v2043_v61, %v2045_v43  ;;  %3590 = vmatpush1.bf16.msra.mxu0 %v6832_v23 }
 0x252   : > { %v2623_v39 = vadd.f32 %v2531_v31, %v8779_v19  ;;  %v2412_v42 = vpop.f32.mrf.mxu0  ;;  %v8877_v22 = vadd.f32 %v8520_v30, %v2663_v26  ;;  %v2765_v0 = vrot.slane %v2733_v46, 1  ;;  %v2170_v33 = vadd.f32 %v2066_v10, %v11294_v58  ;;  %v6840_v10 = vld [vmem:[%s11060_s4 + $0x164] ss:$8 sps:$4 sm:$0xff]   ;;  %v11296_v58 = vld [vmem:[#allocation30_spill] sm:$0xff] }
 0x253   : > { %v2528_v19 = vsel %vm2513_vm4, %v2495_v62, %v2497_v20  ;;  %v2498_v32 = vrot.slane %v2412_v42, 4  ;;  %v2046_v26 = vrot.slane %v11295_v2, 3  ;;  %v8900_v61 = vadd.f32 %v2063_v45, %v11296_v58  ;;  %3591 = vmatprep.subr.bf16.mxu0 %v6840_v10 }
 0x254   : > { %v2664_v27 = vmax.f32 %v2622_v7, %v2623_v39  ;;  %v2414_v48 = vpop.f32.mrf.mxu0  ;;  %v2734_v31 = vmax.f32 %v8877_v22, 0.0  ;;  %v2788_v50 = vsel %vm947_vm1, %v2764_v56, %v2765_v0  ;;  %v6838_v7 = vld [vmem:[%s11060_s4 + $0x160] ss:$8 sps:$4 sm:$0xff]   ;;  %v2624_v56 = vadd.f32 %v2528_v19, %v8801_v16 }
 0x255   : > { %v2529_v62 = vsel %vm2513_vm4, %v2496_v36, %v2498_v32  ;;  %v2499_v42 = vrot.slane %v2414_v48, 4  ;;  %v8904_v2 = vmax.f32 %v2732_v25, %v2788_v50  ;;  %v6846_v36 = vld [vmem:[%s11060_s4 + $0x154] ss:$8 sps:$4 sm:$0xff]   ;;  %v11297_v50 = vld [vmem:[#allocation60_spill] sm:$0xff]  ;;  %3592 = vmatpush1.bf16.msra.mxu0 %v6838_v7 }
 0x256   : > { %v2625_v39 = vadd.f32 %v2529_v62, %v8828_v18  ;;  %v2416_v22 = vpop.f32.mrf.mxu0  ;;  %v2703_v37 = vadd.f32 %v8520_v30, %v2664_v27  ;;  %v2766_v45 = vrot.slane %v2734_v31, 1  ;;  %v2047_v25 = vrot.slane %v11297_v50, 3  ;;  %v11298_v62 = vld [vmem:[#allocation29_spill] sm:$0xff]  ;;  %3593 = vmatprep.subr.bf16.mxu0 %v6846_v36 }
 0x257   : > { %v2526_v23 = vsel %vm2513_vm4, %v2497_v20, %v2499_v42  ;;  %v2500_v48 = vrot.slane %v2416_v22, 4  ;;  %v2061_v18 = vsel %vm2054_vm3, %v2044_v29, %v2046_v26  ;;  %v11100_v35 = vrot.slane %v11298_v62, 3  ;;  %v6844_v22 = vld [vmem:[%s11060_s4 + $0x150] ss:$8 sps:$4 sm:$0xff]  }
 0x258   : > { %v2665_v19 = vmax.f32 %v2624_v56, %v2625_v39  ;;  %v2420_v27 = vpop.f32.mrf.mxu0  ;;  %v2735_v58 = vmax.f32 %v2703_v37, 0.0  ;;  %v2787_v10 = vsel %vm947_vm1, %v2765_v0, %v2766_v45  ;;  %v2626_v29 = vadd.f32 %v2526_v23, %v8835_v6  ;;  %v11300_v7 = vld [vmem:[#allocation33_spill] sm:$0xff] }
 0x259   : > { %v2527_v40 = vsel %vm2513_vm4, %v2498_v32, %v2500_v48  ;;  %v2501_v28 = vrot.slane %v2420_v27, 4  ;;  %v8927_v20 = vmax.f32 %v2733_v46, %v2787_v10  ;;  %v6852_v32 = vld [vmem:[%s11060_s4 + $0x144] ss:$8 sps:$4 sm:$0xff]   ;;  %v2062_v6 = vsel %vm2054_vm3, %v2045_v43, %v2047_v25  ;;  %3594 = vmatpush1.bf16.msra.mxu0 %v6844_v22 }
 0x25a   : > { %v2627_v56 = vadd.f32 %v2527_v40, %v8840_v38  ;;  %v2422_v39 = vpop.f32.mrf.mxu0  ;;  %v2704_v0 = vadd.f32 %v8520_v30, %v2665_v19  ;;  %v2767_v37 = vrot.slane %v2735_v58, 1  ;;  %v11299_v46 = vld [vmem:[#allocation31_spill] sm:$0xff]  ;;  %v2173_v23 = vadd.f32 %v2061_v18, %v11300_v7  ;;  %3595 = vmatprep.subr.bf16.mxu0 %v6852_v32 }
 0x25b   : > { %v2172_v27 = vadd.f32 %v2064_v3, %v11299_v46  ;;  %v2524_v40 = vsel %vm2513_vm4, %v2499_v42, %v2501_v28  ;;  %v2502_v38 = vrot.slane %v2422_v39, 4  ;;  %v2059_v9 = vsel %vm2054_vm3, %v2046_v26, %v11100_v35  ;;  %v6850_v42 = vld [vmem:[%s11060_s4 + $0x140] ss:$8 sps:$4 sm:$0xff]   ;;  %v6858_v26 = vld [vmem:[%s11060_s4 + $0x134] ss:$8 sps:$4 sm:$0xff]  }
 0x25c   : > { %v2666_v36 = vmax.f32 %v2626_v29, %v2627_v56  ;;  %v2424_v19 = vpop.f32.mrf.mxu0  ;;  %v2736_v10 = vmax.f32 %v2704_v0, 0.0  ;;  %v2786_v16 = vsel %vm947_vm1, %v2766_v45, %v2767_v37  ;;  %v2628_v18 = vadd.f32 %v2524_v40, %v8864_v15  ;;  %v11302_v15 = vld [vmem:[#allocation32_spill] sm:$0xff] }
 0x25d   : > { %v2525_v43 = vsel %vm2513_vm4, %v2500_v48, %v2502_v38  ;;  %v2503_v3 = vrot.slane %v2424_v19, 4  ;;  %v8956_v46 = vmax.f32 %v2734_v31, %v2786_v16  ;;  %v11301_v48 = vld [vmem:[#allocation61_spill] sm:$0xff]  ;;  %v11303_v19 = vld [vmem:[#allocation62_spill] sm:$0xff]  ;;  %3596 = vmatpush1.bf16.msra.mxu0 %v6850_v42 }
 0x25e   : > { %v2629_v29 = vadd.f32 %v2525_v43, %v2170_v33  ;;  %v2426_v45 = vpop.f32.mrf.mxu0  ;;  %v2705_v56 = vadd.f32 %v8520_v30, %v2666_v36  ;;  %v2768_v39 = vrot.slane %v2736_v10, 1  ;;  %v2049_v31 = vrot.slane %v11301_v48, 3  ;;  %3597 = vmatprep.subr.bf16.mxu0 %v6858_v26 }
 0x25f   : > { %v2522_v16 = vsel %vm2513_vm4, %v2501_v28, %v2503_v3  ;;  %v2504_v22 = vrot.slane %v2426_v45, 4  ;;  %v2851_v0 = vpack.c.bf16 %v8956_v46, %v8927_v20  ;;  %v2174_v33 = vadd.f32 %v2062_v6, %v11302_v15  ;;  %v6856_v28 = vld [vmem:[%s11060_s4 + $0x130] ss:$8 sps:$4 sm:$0xff]   ;;  %v6861_v46 = vld [vmem:[%s11060_s4 + $0xa4] ss:$8 sps:$4 sm:$0xff]  }
 0x260   : > { %v2667_v40 = vmax.f32 %v2628_v18, %v2629_v29  ;;  %v2430_v7 = vpop.f32.mrf.mxu0  ;;  %v2737_v36 = vmax.f32 %v2705_v56, 0.0  ;;  %v2785_v32 = vsel %vm947_vm1, %v2767_v37, %v2768_v39  ;;  %v2050_v43 = vrot.slane %v11303_v19, 3  ;;  %v11304_v56 = vld [vmem:[#allocation35_spill] sm:$0xff]  ;;  %v6853_v20 = vld [vmem:[%s11060_s4 + $0xb0] ss:$8 sps:$4 sm:$0xff]  }
 0x261   : > { %v2523_v48 = vsel %vm2513_vm4, %v2502_v38, %v2504_v22  ;;  %v2505_v60 = vrot.slane %v2430_v7, 4  ;;  %v8977_v35 = vmax.f32 %v2735_v58, %v2785_v32  ;;  %v2630_v6 = vadd.f32 %v2522_v16, %v8900_v61  ;;  %v6864_v38 = vld [vmem:[%s11060_s4 + $0x124] ss:$8 sps:$4 sm:$0xff]   ;;  %3598 = vmatpush1.bf16.msra.mxu0 %v6856_v28 }
 0x262   : > { %v2631_v18 = vadd.f32 %v2523_v48, %v2172_v27  ;;  %v2432_v29 = vpop.f32.mrf.mxu0  ;;  %v2706_v45 = vadd.f32 %v8520_v30, %v2667_v40  ;;  %v2769_v37 = vrot.slane %v2737_v36, 1  ;;  %v2175_v58 = vadd.f32 %v2059_v9, %v11304_v56  ;;  %v11305_v16 = vld [vmem:[#allocation63_spill] sm:$0xff]  ;;  %3599 = vmatprep.subr.bf16.mxu0 %v6864_v38 }
 0x263   : > { %v2060_v42 = vsel %vm2054_vm3, %v2047_v25, %v2049_v31  ;;  %v2520_v61 = vsel %vm2513_vm4, %v2503_v3, %v2505_v60  ;;  %v2506_v27 = vrot.slane %v2432_v29, 4  ;;  %v2051_v15 = vrot.slane %v11305_v16, 3  ;;  %v6862_v3 = vld [vmem:[%s11060_s4 + $0x120] ss:$8 sps:$4 sm:$0xff]  }
 0x264   : > { %v2668_v40 = vmax.f32 %v2630_v6, %v2631_v18  ;;  %v2434_v7 = vpop.f32.mrf.mxu0  ;;  %v2738_v26 = vmax.f32 %v2706_v45, 0.0  ;;  %v2784_v32 = vsel %vm947_vm1, %v2768_v39, %v2769_v37  ;;  %v11306_v19 = vrot.slane %v11298_v62, 3  ;;  %v11307_v45 = vld [vmem:[#allocation36_spill] sm:$0xff] }
 0x265   : > { %v2521_v25 = vsel %vm2513_vm4, %v2504_v22, %v2506_v27  ;;  %v2507_v9 = vrot.slane %v2434_v7, 4  ;;  %v9003_v48 = vmax.f32 %v2736_v10, %v2784_v32  ;;  %v2632_v6 = vadd.f32 %v2520_v61, %v2173_v23  ;;  %3600 = vmatpush1.bf16.msra.mxu0 %v6862_v3 }
 0x266   : > { %v2057_v50 = vsel %vm2054_vm3, %v11306_v19, %v2050_v43  ;;  %v2633_v18 = vadd.f32 %v2521_v25, %v2174_v33  ;;  %v2436_v29 = vpop.f32.mrf.mxu0  ;;  %v2707_v39 = vadd.f32 %v8520_v30, %v2668_v40  ;;  %v2770_v62 = vrot.slane %v2738_v26, 1  ;;  %v11308_v40 = vld [vmem:[#allocation34_spill] sm:$0xff] }
 0x267   : > { %v2176_v56 = vadd.f32 %v2060_v42, %v11307_v45  ;;  %v2518_v22 = vsel %vm2513_vm4, %v2505_v60, %v2507_v9  ;;  %v2508_v16 = vrot.slane %v2436_v29, 4  ;;  %v2852_v10 = vpack.c.bf16 %v9003_v48, %v8977_v35  ;;  %v11311_v45 = vld [vmem:[#allocation37_spill] sm:$0xff]  ;;  %v6837_v35 = vld [vmem:[%s11060_s4 + $0xe4] ss:$8 sps:$4 sm:$0xff]  }
 0x268   : > { %v2058_v28 = vsel %vm2054_vm3, %v2049_v31, %v2051_v15  ;;  %v2669_v7 = vmax.f32 %v2632_v6, %v2633_v18  ;;  %v2440_v23 = vpop.f32.mrf.mxu0  ;;  %v2739_v33 = vmax.f32 %v2707_v39, 0.0  ;;  %v2783_v61 = vsel %vm947_vm1, %v2769_v37, %v2770_v62  ;;  %v11310_v39 = vld [vmem:[#allocation38_spill] sm:$0xff] }
 0x269   : > { %v11309_v38 = vrot.slane %v11308_v40, 3  ;;  %v2519_v60 = vsel %vm2513_vm4, %v2506_v27, %v2508_v16  ;;  %v2509_v32 = vrot.slane %v2440_v23, 4  ;;  %v9024_v19 = vmax.f32 %v2737_v36, %v2783_v61  ;;  %v6817_v48 = vld [vmem:[%s11059_s3 + $0x30] ss:$8 sps:$4 sm:$0xff]  }
 0x26a   : > { %v2634_v25 = vadd.f32 %v2518_v22, %v2175_v58  ;;  %v2635_v31 = vadd.f32 %v2519_v60, %v2176_v56  ;;  %v2442_v6 = vpop.f32.mrf.mxu0  ;;  %v2708_v18 = vadd.f32 %v8520_v30, %v2669_v7  ;;  %v2771_v29 = vrot.slane %v2739_v33, 1 }
 0x26b   : > { %v2055_v42 = vsel %vm2054_vm3, %v2050_v43, %v11309_v38  ;;  %v2177_v37 = vadd.f32 %v2057_v50, %v11310_v39  ;;  %v2178_v40 = vadd.f32 %v2058_v28, %v11311_v45  ;;  %v2516_v43 = vsel %vm2513_vm4, %v2507_v9, %v2509_v32 }
 0x26c   : > { %v2510_v38 = vrot.slane %v2442_v6, 4  ;;  %v2179_v27 = vadd.f32 %v2055_v42, %v8475_v12  ;;  %v2670_v23 = vmax.f32 %v2634_v25, %v2635_v31  ;;  %v2444_v36 = vpop.f32.mrf.mxu0  ;;  %v2740_v61 = vmax.f32 %v2708_v18, 0.0  ;;  %v11315_v18 = vld [vmem:[#allocation42_spill] sm:$0xff] }
 0x26d   : > { %v2782_v58 = vsel %vm947_vm1, %v2770_v62, %v2771_v29  ;;  %v11312_v3 = vrot.slane %v8460_v13, 3  ;;  %v2511_v22 = vrot.slane %v2444_v36, 4  ;;  %v2636_v9 = vadd.f32 %v2516_v43, %v2177_v37 }
 0x26e   : > { %v2517_v50 = vsel %vm2513_vm4, %v2508_v16, %v2510_v38  ;;  %v2834_v28 = vmax.f32 %v2738_v26, %v2782_v58  ;;  %v2446_v60 = vpop.f32.mrf.mxu0  ;;  %v2709_v12 = vadd.f32 %v8520_v30, %v2670_v23  ;;  %v2772_v42 = vrot.slane %v2740_v61, 1  ;;  %v11314_v16 = vld [vmem:[#allocation40_spill] sm:$0xff]  ;;  %v7021_v58 = vld [vmem:[%s11058_s2] ss:$0 sm:$0xff] }
 0x26f   : > { %v2056_v56 = vsel %vm2054_vm3, %v2051_v15, %v11312_v3  ;;  %v2637_v7 = vadd.f32 %v2517_v50, %v2178_v40  ;;  %v2514_v25 = vsel %vm2513_vm4, %v2509_v32, %v2511_v22  ;;  %v11313_v62 = vrot.slane %v8478_v57, 4  ;;  %v11316_v40 = vld [vmem:[#allocation43_spill] sm:$0xff] }
 0x270   : > { %v2512_v15 = vrot.slane %v2446_v60, 4  ;;  %v2853_v31 = vpack.c.bf16 %v2834_v28, %v9024_v19  ;;  %v2180_v6 = vadd.f32 %v2056_v56, %v11314_v16  ;;  %v2741_v37 = vmax.f32 %v2709_v12, 0.0  ;;  %v11318_v19 = vld [vmem:[#allocation41_spill] sm:$0xff] }
 0x271   : > { %v2576_v13 = vsel %vm2513_vm4, %v2511_v22, %v11313_v62  ;;  %v2671_v26 = vmax.f32 %v2636_v9, %v2637_v7  ;;  %v2638_v45 = vadd.f32 %v2514_v25, %v2179_v27  ;;  %v11317_v32 = vrot.slane %v11316_v40, 4 }
 0x272   : > { %v2640_v39 = vadd.f32 %v2576_v13, %v11315_v18  ;;  %v2515_v30 = vsel %vm2513_vm4, %v2510_v38, %v2512_v15  ;;  %v2781_v43 = vsel %vm947_vm1, %v2771_v29, %v2772_v42  ;;  %v2773_v27 = vrot.slane %v2741_v37, 1 }
 0x273   : > { %v2577_v57 = vsel %vm2513_vm4, %v2512_v15, %v11317_v32  ;;  %v2639_v23 = vadd.f32 %v2515_v30, %v2180_v6  ;;  %v2710_v3 = vadd.f32 %v7021_v58, %v2671_v26  ;;  %v2835_v56 = vmax.f32 %v2739_v33, %v2781_v43  ;;  %v6823_v43 = vld [vmem:[%s11059_s3 + $0x50] ss:$8 sps:$4 sm:$0xff]  }
 0x274   : > { %v2641_v36 = vadd.f32 %v2577_v57, %v11318_v19  ;;  %v2780_v28 = vsel %vm947_vm1, %v2772_v42, %v2773_v27  ;;  %v11320_v40 = vpack.c.bf16 %v8776_v49, %v8758_v41  ;;  %v11322_v32 = vpack.c.bf16 %v8699_v55, %v8679_v5  ;;  %v6816_v41 = vld [vmem:[%s11059_s3 + $0x24] ss:$8 sps:$4 sm:$0xff]   ;;  %v6841_v49 = vld [vmem:[%s11060_s4 + $0xd0] ss:$8 sps:$4 sm:$0xff]   ;;  %v6825_v57 = vld [vmem:[%s11059_s3 + $0x54] ss:$8 sps:$4 sm:$0xff]  }
 0x275   : > { %v2672_v50 = vmax.f32 %v2638_v45, %v2639_v23  ;;  %v2742_v22 = vmax.f32 %v2710_v3, 0.0  ;;  %v2836_v9 = vmax.f32 %v2740_v61, %v2780_v28  ;;  %v11325_v5 = vpack.c.bf16 %v8904_v2, %v8872_v14  ;;  %v6814_v14 = vld [vmem:[%s11059_s3 + $0x20] ss:$8 sps:$4 sm:$0xff]   ;;  %v6819_v2 = vld [vmem:[%s11059_s3 + $0x34] ss:$8 sps:$4 sm:$0xff]  }
 0x276   : > { %v2673_v38 = vmax.f32 %v2640_v39, %v2641_v36  ;;  %v11326_v55 = vpack.c.bf16 %v8588_v44, %v8577_v51  ;;  %v6813_v51 = vld [vmem:[%s11059_s3 + $0x14] ss:$8 sps:$4 sm:$0xff]   ;;  %v6829_v44 = vld [vmem:[%s11060_s4 + $0xf0] ss:$8 sps:$4 sm:$0xff]   ;;  %v6828_v23 = vld [vmem:[%s11059_s3 + $0x64] ss:$8 sps:$4 sm:$0xff]  }
 0x277   : > { %v2711_v7 = vadd.f32 %v7021_v58, %v2672_v50  ;;  %v2774_v29 = vrot.slane %v2742_v22, 1  ;;  %v2854_v12 = vpack.c.bf16 %v2836_v9, %v2835_v56  ;;  %v6826_v19 = vld [vmem:[%s11059_s3 + $0x60] ss:$8 sps:$4 sm:$0xff]   ;;  %v11329_v36 = vmov 0   ;;  %v6867_v3 = vld [vmem:[%s11060_s4 + $0x94] ss:$8 sps:$4 sm:$0xff]  }
 0x278   : > { %v2712_v60 = vadd.f32 %v7021_v58, %v2673_v38  ;;  %v6865_v58 = vld [vmem:[%s11060_s4 + $0x90] ss:$8 sps:$4 sm:$0xff]   ;;  %v6870_v56 = vld [vmem:[%s11060_s4 + $0x114] ss:$8 sps:$4 sm:$0xff]   ;;  %v6873_v50 = vld [vmem:[%s11060_s4 + $0x84] ss:$8 sps:$4 sm:$0xff]  }
 0x279   : > { %v2743_v25 = vmax.f32 %v2711_v7, 0.0  ;;  %v2779_v13 = vsel %vm947_vm1, %v2773_v27, %v2774_v29  ;;  %v6868_v27 = vld [vmem:[%s11060_s4 + $0x110] ss:$8 sps:$4 sm:$0xff]   ;;  %3601 = vmatprep.subr.bf16.mxu0 %v6870_v56  ;;  %v6876_v38 = vld [vmem:[%s11060_s4 + $0x104] ss:$8 sps:$4 sm:$0xff]  }
 0x27a   : > { %v2744_v62 = vmax.f32 %v2712_v60, 0.0  ;;  %v2837_v15 = vmax.f32 %v2741_v37, %v2779_v13  ;;  %v11319_v37 = vpack.c.bf16 %v8814_v24, %v8794_v54  ;;  %v11323_v54 = vpack.c.bf16 %v8658_v4, %v8633_v34  ;;  %v6831_v4 = vld [vmem:[%s11060_s4 + $0xf4] ss:$8 sps:$4 sm:$0xff]   ;;  %v6849_v24 = vld [vmem:[%s11060_s4 + $0xc4] ss:$8 sps:$4 sm:$0xff]   ;;  %3602 = vmatpush1.bf16.msra.mxu0 %v6868_v27 }
 0x27b   : > { %v2775_v16 = vrot.slane %v2743_v25, 1  ;;  %v11327_v34 = vpack.c.bf16 %v8853_v21, %v8832_v63  ;;  %v6847_v63 = vld [vmem:[%s11060_s4 + $0xc0] ss:$8 sps:$4 sm:$0xff]   ;;  %v6855_v21 = vld [vmem:[%s11060_s4 + $0xb4] ss:$8 sps:$4 sm:$0xff]   ;;  %3603 = vmatprep.subr.bf16.mxu0 %v6876_v38 }
 0x27c   : > { %v2776_v6 = vrot.slane %v2744_v62, 1  ;;  %v6874_v28 = vld [vmem:[%s11060_s4 + $0x100] ss:$8 sps:$4 sm:$0xff]   ;;  %v6879_v9 = vld [vmem:[%s11060_s4 + $0x74] ss:$8 sps:$4 sm:$0xff]  }
 0x27d   : > { %v2778_v61 = vsel %vm947_vm1, %v2774_v29, %v2775_v16  ;;  %v6882_v7 = vld [vmem:[%s11060_s4 + $0x274] ss:$8 sps:$4 sm:$0xff]   ;;  %v6916_v27 = vld [vmem:[%s11060_s4 + $0x210] ss:$8 sps:$4 sm:$0xff]   ;;  %v6924_v38 = vld [vmem:[%s11060_s4 + $0x204] ss:$8 sps:$4 sm:$0xff]  }
 0x27e   : > { %v2777_v33 = vsel %vm947_vm1, %v2775_v16, %v2776_v6  ;;  %v2808_v42 = vsel %vm947_vm1, %v2776_v6, %v8543_v1  ;;  %v2838_v39 = vmax.f32 %v2742_v22, %v2778_v61  ;;  %v11321_v1 = vpack.c.bf16 %v8738_v47, %v8720_v11  ;;  %v6811_v47 = vld [vmem:[%s11059_s3 + $0x10] ss:$8 sps:$4 sm:$0xff]   ;;  %v6871_v22 = vld [vmem:[%s11060_s4 + $0x80] ss:$8 sps:$4 sm:$0xff]   ;;  %3604 = vmatpush1.bf16.msra.mxu0 %v6874_v28  ;;  %v6885_v61 = vld [vmem:[%s11060_s4 + $0x64] ss:$8 sps:$4 sm:$0xff]  }
 0x27f   : > { %v2839_v26 = vmax.f32 %v2743_v25, %v2777_v33  ;;  %v2840_v18 = vmax.f32 %v2744_v62, %v2808_v42  ;;  %v11324_v11 = vpack.c.bf16 %v8613_v59, %v8601_v53  ;;  %v6808_v53 = vld [vmem:[%s11059_s3] ss:$8 sps:$4 sm:$0xff]   ;;  %v11328_v59 = vpack.c.bf16 %v8564_v52, %v8553_v8  ;;  %v6843_v52 = vld [vmem:[%s11060_s4 + $0xd4] ss:$8 sps:$4 sm:$0xff]   ;;  %4157 = vmatprep.subr.bf16.mxu0 %v6882_v7  ;;  %v6877_v6 = vld [vmem:[%s11060_s4 + $0x70] ss:$8 sps:$4 sm:$0xff]  }
 0x280   : > { %v2855_v30 = vpack.c.bf16 %v2838_v39, %v2837_v15  ;;  %v6835_v8 = vld [vmem:[%s11060_s4 + $0xe0] ss:$8 sps:$4 sm:$0xff]   ;;  %v6880_v33 = vld [vmem:[%s11060_s4 + $0x270] ss:$8 sps:$4 sm:$0xff]  }
 0x281   : > { %v2856_v45 = vpack.c.bf16 %v2840_v18, %v2839_v26  ;;  %v6888_v26 = vld [vmem:[%s11060_s4 + $0x264] ss:$8 sps:$4 sm:$0xff]   ;;  %v6883_v39 = vld [vmem:[%s11060_s4 + $0x60] ss:$8 sps:$4 sm:$0xff]  }
 0x282   : > { %v6919_v28 = vld [vmem:[%s11060_s4] ss:$8 sps:$4 sm:$0xff]  }
 0x283   : > { %6223 = vmatprep.subr.bf16.mxu1 %v2856_v45  ;;  %v6886_v45 = vld [vmem:[%s11060_s4 + $0x260] ss:$8 sps:$4 sm:$0xff]  }
 0x284   : > { %6224 = vmatpush3.bf16.msra.mxu1 %v11319_v37  ;;  %v6891_v37 = vld [vmem:[%s11060_s4 + $0x54] ss:$8 sps:$4 sm:$0xff]  }
 0x285   : > { %6225 = vmatprep.subr.bf16.mxu1 %v2855_v30 }
 0x288   : > { %6226 = vmatpush3.bf16.msra.mxu1 %v11320_v40  ;;  %v6894_v40 = vld [vmem:[%s11060_s4 + $0x254] ss:$8 sps:$4 sm:$0xff]  }
 0x289   : > { %6227 = vmatprep.subr.bf16.mxu1 %v2854_v12 }
 0x28c   : > { %6228 = vmatpush3.bf16.msra.mxu1 %v11321_v1 }
 0x28d   : > { %6229 = vmatprep.subr.bf16.mxu1 %v2853_v31  ;;  %v6820_v31 = vld [vmem:[%s11059_s3 + $0x40] ss:$8 sps:$4 sm:$0xff]  }
 0x290   : > { %6230 = vmatpush3.bf16.msra.mxu1 %v11322_v32 }
 0x291   : > { %6231 = vmatprep.subr.bf16.mxu1 %v2852_v10  ;;  %v6822_v10 = vld [vmem:[%s11059_s3 + $0x44] ss:$8 sps:$4 sm:$0xff]  }
 0x294   : > { %6232 = vmatpush3.bf16.msra.mxu1 %v11323_v54 }
 0x295   : > { %6233 = vmatprep.subr.bf16.mxu1 %v2851_v0  ;;  %v6859_v0 = vld [vmem:[%s11060_s4 + $0xa0] ss:$8 sps:$4 sm:$0xff]  }
 0x298   : > { %6234 = vmatpush3.bf16.msra.mxu1 %v11324_v11 }
 0x299   : > { %6235 = vmatprep.subr.bf16.mxu1 %v11325_v5  ;;  %v6889_v5 = vld [vmem:[%s11060_s4 + $0x50] ss:$8 sps:$4 sm:$0xff]  }
 0x29c   : > { %6236 = vmatpush3.bf16.msra.mxu1 %v11326_v55  ;;  %v6892_v55 = vld [vmem:[%s11060_s4 + $0x250] ss:$8 sps:$4 sm:$0xff]  }
 0x29d   : > { %6237 = vmatprep.subr.bf16.mxu1 %v11327_v34 }
 0x2a0   : > { %6238 = vmatpush3.bf16.msra.mxu1 %v11328_v59 }
 0x2a1   : > { %3150 = vmatprep.subr.bf16.mxu1 %v6831_v4  ;;  %v6897_v4 = vld [vmem:[%s11060_s4 + $0x44] ss:$8 sps:$4 sm:$0xff]  }
 0x2a3   : > { %2974 = vmatmul.mubr.bf16.vlgmr.msra.gmra.mxu1 %v6808_v53  ;;  %v6900_v53 = vld [vmem:[%s11060_s4 + $0x244] ss:$8 sps:$4 sm:$0xff]  }
 0x2a4   : > { %2981 = vmatprep.mubr.bf16.mxu1 %v6813_v51  ;;  %3151 = vmatpush1.bf16.msra.mxu1 %v6829_v44  ;;  %v6895_v51 = vld [vmem:[%s11060_s4 + $0x40] ss:$8 sps:$4 sm:$0xff]  }
 0x2a5   : > { %3152 = vmatprep.subr.bf16.mxu1 %v6837_v35  ;;  %v6898_v44 = vld [vmem:[%s11060_s4 + $0x240] ss:$8 sps:$4 sm:$0xff]  }
 0x2a8   : > { %3153 = vmatpush1.bf16.msra.mxu1 %v6835_v8  ;;  %v6903_v8 = vld [vmem:[%s11060_s4 + $0x34] ss:$8 sps:$4 sm:$0xff]  }
 0x2a9   : > { %3154 = vmatprep.subr.bf16.mxu1 %v6843_v52  ;;  %v6906_v52 = vld [vmem:[%s11060_s4 + $0x234] ss:$8 sps:$4 sm:$0xff]  }
 0x2ab   : > { %2982 = vmatmul.mubr.bf16.gmra.mxu1 %v6811_v47 }
 0x2ac   : > { %2989 = vmatprep.mubr.bf16.mxu1 %v6816_v41  ;;  %3155 = vmatpush1.bf16.msra.mxu1 %v6841_v49 }
 0x2ad   : > { %3156 = vmatprep.subr.bf16.mxu1 %v6849_v24 }
 0x2b0   : > { %3157 = vmatpush1.bf16.msra.mxu1 %v6847_v63  ;;  %v6901_v63 = vld [vmem:[%s11060_s4 + $0x30] ss:$8 sps:$4 sm:$0xff]  }
 0x2b1   : > { %3158 = vmatprep.subr.bf16.mxu1 %v6855_v21  ;;  %v6904_v21 = vld [vmem:[%s11060_s4 + $0x230] ss:$8 sps:$4 sm:$0xff]  }
 0x2b3   : > { %2990 = vmatmul.mubr.bf16.gmra.mxu1 %v6814_v14 }
 0x2b4   : > { %2997 = vmatprep.mubr.bf16.mxu1 %v6819_v2  ;;  %3159 = vmatpush1.bf16.msra.mxu1 %v6853_v20  ;;  %v6909_v2 = vld [vmem:[%s11060_s4 + $0x24] ss:$8 sps:$4 sm:$0xff]  }
 0x2b5   : > { %3160 = vmatprep.subr.bf16.mxu1 %v6861_v46  ;;  %v6912_v20 = vld [vmem:[%s11060_s4 + $0x224] ss:$8 sps:$4 sm:$0xff]  }
 0x2b8   : > { %3161 = vmatpush1.bf16.msra.mxu1 %v6859_v0  ;;  %v6907_v0 = vld [vmem:[%s11060_s4 + $0x20] ss:$8 sps:$4 sm:$0xff]  }
 0x2b9   : > { %3162 = vmatprep.subr.bf16.mxu1 %v6867_v3  ;;  %v6913_v3 = vld [vmem:[%s11060_s4 + $0x10] ss:$8 sps:$4 sm:$0xff]  }
 0x2bb   : > { %2998 = vmatmul.mubr.bf16.gmra.mxu1 %v6817_v48  ;;  %v6910_v48 = vld [vmem:[%s11060_s4 + $0x220] ss:$8 sps:$4 sm:$0xff]  }
 0x2bc   : > { %3005 = vmatprep.mubr.bf16.mxu1 %v6822_v10  ;;  %3163 = vmatpush1.bf16.msra.mxu1 %v6865_v58 }
 0x2bd   : > { %3164 = vmatprep.subr.bf16.mxu1 %v6873_v50  ;;  %v6921_v50 = vld [vmem:[%s11060_s4 + $0x4] ss:$8 sps:$4 sm:$0xff]  }
 0x2c0   : > { %3165 = vmatpush1.bf16.msra.mxu1 %v6871_v22 }
 0x2c1   : > { %3389 = vmatprep.subr.bf16.mxu1 %v6879_v9  ;;  %v6922_v9 = vld [vmem:[%s11060_s4 + $0x200] ss:$8 sps:$4 sm:$0xff]  }
 0x2c3   : > { %3006 = vmatmul.mubr.bf16.gmra.mxu1 %v6820_v31  ;;  %v6915_v31 = vld [vmem:[%s11060_s4 + $0x14] ss:$8 sps:$4 sm:$0xff]  }
 0x2c4   : > { %3013 = vmatprep.mubr.bf16.mxu1 %v6825_v57  ;;  %v6918_v57 = vld [vmem:[%s11060_s4 + $0x214] ss:$8 sps:$4 sm:$0xff]  }
 0x2cb   : > { %3014 = vmatmul.mubr.bf16.gmra.mxu1 %v6823_v43 }
 0x2cc   : > { %3021 = vmatprep.mubr.bf16.mxu1 %v6828_v23 }
 0x2d3   : > { %3022 = vmatmul.mubr.bf16.gmra.mxu1 %v6826_v19 }
 0x2d4   : > { %3182 = vmatprep.mubr.bf16.mxu1 %v11329_v36 }
 0x363   : > { %v6239_v60 = vpop.f32.mrf.mxu1 }
 0x365   : > { %v6240_v29 = vpop.f32.mrf.mxu1 }
 0x366   : > { %v6241_v62 = vadd.f32 %v6240_v29, %v6239_v60  ;;  %v6927_v60 = vld [vmem:[%s11060_s4 + $0x1f4] ss:$8 sps:$4 sm:$0xff]  }
 0x367   : > { %v6242_v12 = vpop.f32.mrf.mxu1 }
 0x369   : > { %v6243_v25 = vpop.f32.mrf.mxu1 }
 0x36a   : > { %v6244_v13 = vadd.f32 %v6243_v25, %v6242_v12 }
 0x36b   : > { %v6245_v15 = vpop.f32.mrf.mxu1 }
 0x36c   : > { %v9215_v16 = vpack.c.bf16 %v6244_v13, %v6241_v62 }
 0x36d   : > { %v6246_v42 = vpop.f32.mrf.mxu1 }
 0x36e   : > { %3183 = vmatmul.mubr.bf16.vlgmr.msra.gmra.mxu1 %v9215_v16  ;;  %3622 = vmatmul.mubr.bf16.vlgmr.msra.gmra.mxu0 %v9215_v16  ;;  %v6247_v1 = vadd.f32 %v6246_v42, %v6245_v15 }
 0x36f   : > { %v6248_v18 = vpop.f32.mrf.mxu1  ;;  %3192 = vmatprep.mubr.bf16.mxu1 %v11329_v36  ;;  %3631 = vmatprep.mubr.bf16.mxu0 %v11329_v36 }
 0x370   : > { %3390 = vmatpush1.bf16.msra.mxu1 %v6877_v6  ;;  %4158 = vmatpush1.bf16.msra.mxu0 %v6880_v33 }
 0x371   : > { %v6249_v30 = vpop.f32.mrf.mxu1  ;;  %3391 = vmatprep.subr.bf16.mxu1 %v6885_v61  ;;  %4159 = vmatprep.subr.bf16.mxu0 %v6888_v26 }
 0x372   : > { %v6250_v32 = vadd.f32 %v6249_v30, %v6248_v18 }
 0x373   : > { %v6251_v54 = vpop.f32.mrf.mxu1 }
 0x374   : > { %v9245_v11 = vpack.c.bf16 %v6250_v32, %v6247_v1  ;;  %3392 = vmatpush1.bf16.msra.mxu1 %v6883_v39  ;;  %4160 = vmatpush1.bf16.msra.mxu0 %v6886_v45  ;;  %v6925_v1 = vld [vmem:[%s11060_s4 + $0x1f0] ss:$8 sps:$4 sm:$0xff]   ;;  %v6930_v32 = vld [vmem:[%s11060_s4 + $0x1e4] ss:$8 sps:$4 sm:$0xff]  }
 0x375   : > { %v6252_v34 = vpop.f32.mrf.mxu1  ;;  %3393 = vmatprep.subr.bf16.mxu1 %v6891_v37  ;;  %4161 = vmatprep.subr.bf16.mxu0 %v6894_v40 }
 0x376   : > { %3193 = vmatmul.mubr.bf16.gmra.mxu1 %v9245_v11  ;;  %3632 = vmatmul.mubr.bf16.gmra.mxu0 %v9245_v11  ;;  %v6253_v47 = vadd.f32 %v6252_v34, %v6251_v54  ;;  %v6928_v54 = vld [vmem:[%s11060_s4 + $0x1e0] ss:$8 sps:$4 sm:$0xff]   ;;  %v6936_v34 = vld [vmem:[%s11060_s4 + $0x1c4] ss:$8 sps:$4 sm:$0xff]  }
 0x377   : > { %v6254_v59 = vpop.f32.mrf.mxu1  ;;  %3202 = vmatprep.mubr.bf16.mxu1 %v11329_v36  ;;  %3641 = vmatprep.mubr.bf16.mxu0 %v11329_v36 }
 0x378   : > { %3394 = vmatpush1.bf16.msra.mxu1 %v6889_v5  ;;  %4162 = vmatpush1.bf16.msra.mxu0 %v6892_v55  ;;  %v6933_v5 = vld [vmem:[%s11060_s4 + $0x1d4] ss:$8 sps:$4 sm:$0xff]   ;;  %v6931_v55 = vld [vmem:[%s11060_s4 + $0x1d0] ss:$8 sps:$4 sm:$0xff]  }
 0x379   : > { %v6255_v35 = vpop.f32.mrf.mxu1  ;;  %3395 = vmatprep.subr.bf16.mxu1 %v6897_v4  ;;  %4163 = vmatprep.subr.bf16.mxu0 %v6900_v53  ;;  %v6934_v4 = vld [vmem:[%s11060_s4 + $0x1c0] ss:$8 sps:$4 sm:$0xff]   ;;  %v6939_v53 = vld [vmem:[%s11060_s4 + $0x1b4] ss:$8 sps:$4 sm:$0xff]  }
 0x37a   : > { %v6256_v41 = vadd.f32 %v6255_v35, %v6254_v59  ;;  %v6937_v59 = vld [vmem:[%s11060_s4 + $0x1b0] ss:$8 sps:$4 sm:$0xff]   ;;  %v6945_v35 = vld [vmem:[%s11060_s4 + $0x194] ss:$8 sps:$4 sm:$0xff]  }
 0x37b   : > { %v6257_v49 = vpop.f32.mrf.mxu1 }
 0x37c   : > { %v9275_v24 = vpack.c.bf16 %v6256_v41, %v6253_v47  ;;  %3396 = vmatpush1.bf16.msra.mxu1 %v6895_v51  ;;  %4164 = vmatpush1.bf16.msra.mxu0 %v6898_v44  ;;  %v6942_v51 = vld [vmem:[%s11060_s4 + $0x1a4] ss:$8 sps:$4 sm:$0xff]   ;;  %v6940_v44 = vld [vmem:[%s11060_s4 + $0x1a0] ss:$8 sps:$4 sm:$0xff]   ;;  %v6950_v41 = vld [vmem:[%s11062_s6 + $0x38] sm:$0xff]  }
 0x37d   : > { %v6258_v14 = vpop.f32.mrf.mxu1  ;;  %3397 = vmatprep.subr.bf16.mxu1 %v6903_v8  ;;  %4165 = vmatprep.subr.bf16.mxu0 %v6906_v52  ;;  %v6943_v8 = vld [vmem:[%s11060_s4 + $0x190] ss:$8 sps:$4 sm:$0xff]   ;;  %v6948_v52 = vld [vmem:[%s11060_s4 + $0x184] ss:$8 sps:$4 sm:$0xff]   ;;  %v6946_v47 = vld [vmem:[%s11060_s4 + $0x180] ss:$8 sps:$4 sm:$0xff]  }
 0x37e   : > { %3203 = vmatmul.mubr.bf16.gmra.mxu1 %v9275_v24  ;;  %3642 = vmatmul.mubr.bf16.gmra.mxu0 %v9275_v24  ;;  %v6259_v43 = vadd.f32 %v6258_v14, %v6257_v49  ;;  %v6952_v49 = vld [vmem:[%s11062_s6 + $0x30] sm:$0xff]  }
 0x37f   : > { %v6260_v46 = vpop.f32.mrf.mxu1  ;;  %3212 = vmatprep.mubr.bf16.mxu1 %v11329_v36  ;;  %3651 = vmatprep.mubr.bf16.mxu0 %v11329_v36 }
 0x380   : > { %3398 = vmatpush1.bf16.msra.mxu1 %v6901_v63  ;;  %4166 = vmatpush1.bf16.msra.mxu0 %v6904_v21  ;;  %v6954_v63 = vld [vmem:[%s11062_s6 + $0x28] sm:$0xff]  }
 0x381   : > { %v6261_v10 = vpop.f32.mrf.mxu1  ;;  %3399 = vmatprep.subr.bf16.mxu1 %v6909_v2  ;;  %4167 = vmatprep.subr.bf16.mxu0 %v6912_v20  ;;  %v6955_v2 = vld [vmem:[%s11062_s6 + $0x60] sm:$0xff]  }
 0x382   : > { %v6262_v23 = vadd.f32 %v6261_v10, %v6260_v46  ;;  %v6956_v20 = vld [vmem:[%s11062_s6 + $0x20] sm:$0xff]  }
 0x383   : > { %v6263_v19 = vpop.f32.mrf.mxu1 }
 0x384   : > { %v9305_v58 = vpack.c.bf16 %v6262_v23, %v6259_v43  ;;  %3400 = vmatpush1.bf16.msra.mxu1 %v6907_v0  ;;  %4168 = vmatpush1.bf16.msra.mxu0 %v6910_v48 }
 0x385   : > { %v6264_v56 = vpop.f32.mrf.mxu1  ;;  %3401 = vmatprep.subr.bf16.mxu1 %v6915_v31  ;;  %4169 = vmatprep.subr.bf16.mxu0 %v6918_v57  ;;  %v6957_v31 = vld [vmem:[%s11062_s6 + $0x58] sm:$0xff]  }
 0x386   : > { %3213 = vmatmul.mubr.bf16.gmra.mxu1 %v9305_v58  ;;  %3652 = vmatmul.mubr.bf16.gmra.mxu0 %v9305_v58  ;;  %v6265_v29 = vadd.f32 %v6264_v56, %v6263_v19  ;;  %v6958_v57 = vld [vmem:[%s11062_s6 + $0x18] sm:$0xff]  }
 0x387   : > { %v6266_v22 = vpop.f32.mrf.mxu1  ;;  %3222 = vmatprep.mubr.bf16.mxu1 %v11329_v36  ;;  %3661 = vmatprep.mubr.bf16.mxu0 %v11329_v36 }
 0x388   : > { %3402 = vmatpush1.bf16.msra.mxu1 %v6913_v3  ;;  %4170 = vmatpush1.bf16.msra.mxu0 %v6916_v27 }
 0x389   : > { %v6267_v7 = vpop.f32.mrf.mxu1  ;;  %3403 = vmatprep.subr.bf16.mxu1 %v6921_v50  ;;  %4171 = vmatprep.subr.bf16.mxu0 %v6924_v38  ;;  %v6959_v50 = vld [vmem:[%s11062_s6 + $0x50] sm:$0xff]  }
 0x38a   : > { %v6268_v12 = vadd.f32 %v6267_v7, %v6266_v22  ;;  %v6960_v38 = vld [vmem:[%s11062_s6 + $0x10] sm:$0xff]  }
 0x38b   : > { %v6269_v25 = vpop.f32.mrf.mxu1 }
 0x38c   : > { %v9332_v62 = vpack.c.bf16 %v6268_v12, %v6265_v29  ;;  %3404 = vmatpush1.bf16.msra.mxu1 %v6919_v28  ;;  %4172 = vmatpush1.bf16.msra.mxu0 %v6922_v9  ;;  %v6961_v12 = vld [vmem:[%s11062_s6 + $0x48] sm:$0xff]  }
 0x38d   : > { %v6270_v13 = vpop.f32.mrf.mxu1  ;;  %3873 = vmatprep.subr.bf16.mxu1 %v6927_v60 }
 0x38e   : > { %3223 = vmatmul.mubr.bf16.gmra.mxu1 %v9332_v62  ;;  %3662 = vmatmul.mubr.bf16.gmra.mxu0 %v9332_v62  ;;  %v6271_v33 = vadd.f32 %v6270_v13, %v6269_v25  ;;  %v6962_v25 = vld [vmem:[%s11062_s6 + $0x8] sm:$0xff]  }
 0x38f   : > { %v6272_v15 = vpop.f32.mrf.mxu1  ;;  %3232 = vmatprep.mubr.bf16.mxu1 %v11329_v36  ;;  %3671 = vmatprep.mubr.bf16.mxu0 %v11329_v36 }
 0x391   : > { %v6273_v6 = vpop.f32.mrf.mxu1 }
 0x392   : > { %v6274_v42 = vadd.f32 %v6273_v6, %v6272_v15 }
 0x393   : > { %v6275_v61 = vpop.f32.mrf.mxu1 }
 0x394   : > { %v9338_v26 = vpack.c.bf16 %v6274_v42, %v6271_v33 }
 0x395   : > { %v6276_v18 = vpop.f32.mrf.mxu1 }
 0x396   : > { %3233 = vmatmul.mubr.bf16.gmra.mxu1 %v9338_v26  ;;  %3672 = vmatmul.mubr.bf16.gmra.mxu0 %v9338_v26  ;;  %v6277_v30 = vadd.f32 %v6276_v18, %v6275_v61  ;;  %v6963_v61 = vld [vmem:[%s11062_s6 + $0x40] sm:$0xff]  }
 0x397   : > { %v6278_v39 = vpop.f32.mrf.mxu1  ;;  %3242 = vmatprep.mubr.bf16.mxu1 %v11329_v36  ;;  %3681 = vmatprep.mubr.bf16.mxu0 %v11329_v36 }
 0x399   : > { %v6279_v45 = vpop.f32.mrf.mxu1 }
 0x39a   : > { %v6280_v37 = vadd.f32 %v6279_v45, %v6278_v39 }
 0x39c   : > { %v9344_v40 = vpack.c.bf16 %v6280_v37, %v6277_v30 }
 0x39e   : > { %3243 = vmatmul.mubr.bf16.gmra.mxu1 %v9344_v40  ;;  %3682 = vmatmul.mubr.bf16.gmra.mxu0 %v9344_v40 }
 0x39f   : > { %3421 = vmatprep.mubr.bf16.mxu1 %v11329_v36  ;;  %4189 = vmatprep.mubr.bf16.mxu0 %v11329_v36 }
 0x3a6   : > { %3422 = vmatmul.mubr.bf16.vlgmr.msra.gmra.mxu1 %v9215_v16  ;;  %4190 = vmatmul.mubr.bf16.vlgmr.msra.gmra.mxu0 %v9215_v16 }
 0x3a7   : > { %3431 = vmatprep.mubr.bf16.mxu1 %v11329_v36  ;;  %4199 = vmatprep.mubr.bf16.mxu0 %v11329_v36 }
 0x3a8   : > { %3874 = vmatpush1.bf16.msra.mxu1 %v6925_v1 }
 0x3a9   : > { %3875 = vmatprep.subr.bf16.mxu1 %v6930_v32 }
 0x3ac   : > { %3876 = vmatpush1.bf16.msra.mxu1 %v6928_v54 }
 0x3ad   : > { %3877 = vmatprep.subr.bf16.mxu1 %v6933_v5 }
 0x3ae   : > { %3432 = vmatmul.mubr.bf16.gmra.mxu1 %v9245_v11  ;;  %4200 = vmatmul.mubr.bf16.gmra.mxu0 %v9245_v11 }
 0x3af   : > { %3441 = vmatprep.mubr.bf16.mxu1 %v11329_v36  ;;  %4209 = vmatprep.mubr.bf16.mxu0 %v11329_v36 }
 0x3b0   : > { %3878 = vmatpush1.bf16.msra.mxu1 %v6931_v55 }
 0x3b1   : > { %3879 = vmatprep.subr.bf16.mxu1 %v6936_v34 }
 0x3b4   : > { %3880 = vmatpush1.bf16.msra.mxu1 %v6934_v4 }
 0x3b5   : > { %3881 = vmatprep.subr.bf16.mxu1 %v6939_v53 }
 0x3b6   : > { %3442 = vmatmul.mubr.bf16.gmra.mxu1 %v9275_v24  ;;  %4210 = vmatmul.mubr.bf16.gmra.mxu0 %v9275_v24 }
 0x3b7   : > { %3451 = vmatprep.mubr.bf16.mxu1 %v11329_v36  ;;  %4219 = vmatprep.mubr.bf16.mxu0 %v11329_v36 }
 0x3b8   : > { %3882 = vmatpush1.bf16.msra.mxu1 %v6937_v59 }
 0x3b9   : > { %3883 = vmatprep.subr.bf16.mxu1 %v6942_v51 }
 0x3bc   : > { %3884 = vmatpush1.bf16.msra.mxu1 %v6940_v44 }
 0x3bd   : > { %3885 = vmatprep.subr.bf16.mxu1 %v6945_v35 }
 0x3be   : > { %3452 = vmatmul.mubr.bf16.gmra.mxu1 %v9305_v58  ;;  %4220 = vmatmul.mubr.bf16.gmra.mxu0 %v9305_v58 }
 0x3bf   : > { %3461 = vmatprep.mubr.bf16.mxu1 %v11329_v36  ;;  %4229 = vmatprep.mubr.bf16.mxu0 %v11329_v36 }
 0x3c0   : > { %3886 = vmatpush1.bf16.msra.mxu1 %v6943_v8 }
 0x3c1   : > { %3887 = vmatprep.subr.bf16.mxu1 %v6948_v52 }
 0x3c4   : > { %3888 = vmatpush1.bf16.msra.mxu1 %v6946_v47 }
 0x3c6   : > { %3462 = vmatmul.mubr.bf16.gmra.mxu1 %v9332_v62  ;;  %4230 = vmatmul.mubr.bf16.gmra.mxu0 %v9332_v62 }
 0x3c7   : > { %3471 = vmatprep.mubr.bf16.mxu1 %v11329_v36  ;;  %4239 = vmatprep.mubr.bf16.mxu0 %v11329_v36 }
 0x3ce   : > { %3472 = vmatmul.mubr.bf16.gmra.mxu1 %v9338_v26  ;;  %4240 = vmatmul.mubr.bf16.gmra.mxu0 %v9338_v26 }
 0x3cf   : > { %3481 = vmatprep.mubr.bf16.mxu1 %v11329_v36  ;;  %4249 = vmatprep.mubr.bf16.mxu0 %v11329_v36 }
 0x3d6   : > { %3482 = vmatmul.mubr.bf16.gmra.mxu1 %v9344_v40  ;;  %4250 = vmatmul.mubr.bf16.gmra.mxu0 %v9344_v40 }
 0x3d7   : > { %3905 = vmatprep.mubr.bf16.mxu1 %v11329_v36 }
 0x3de   : > { %3906 = vmatmul.mubr.bf16.vlgmr.msra.gmra.mxu1 %v9215_v16  ;;  %v11101_v16 = vmov 0.0  }
 0x3df   : > { %3915 = vmatprep.mubr.bf16.mxu1 %v11329_v36  ;;  %6382 = vmatprep.subr.bf16.mxu1 %v11101_v16 }
 0x3e0   : > { %6426 = vmatprep.subr.bf16.mxu0 %v11101_v16  ;;  %6442 = vmatprep.mubr.msk.bf16.mxu0 %vm7086_vm5, %v11101_v16 }
 0x3e1   : > { %6427 = vmatpush3.bf16.msra.mxu0 %v6950_v41 }
 0x3e2   : > { %6428 = vmatprep.subr.bf16.mxu0 %v11101_v16 }
 0x3e5   : > { %6429 = vmatpush3.bf16.msra.mxu0 %v6952_v49 }
 0x3e6   : > { %3916 = vmatmul.mubr.bf16.gmra.mxu1 %v9245_v11  ;;  %v6949_v11 = vld [vmem:[%s11062_s6 + $0x78] sm:$0xff]   ;;  %6430 = vmatprep.subr.bf16.mxu0 %v11101_v16 }
 0x3e7   : > { %3925 = vmatprep.mubr.bf16.mxu1 %v11329_v36  ;;  %6383 = vmatpush3.bf16.msra.mxu1 %v6949_v11 }
 0x3e8   : > { %6384 = vmatprep.subr.bf16.mxu1 %v11101_v16 }
 0x3e9   : > { %6431 = vmatpush3.bf16.msra.mxu0 %v6954_v63 }
 0x3ea   : > { %6432 = vmatprep.subr.bf16.mxu0 %v11101_v16 }
 0x3ed   : > { %6433 = vmatpush3.bf16.msra.mxu0 %v6956_v20 }
 0x3ee   : > { %3926 = vmatmul.mubr.bf16.gmra.mxu1 %v9275_v24  ;;  %v6953_v24 = vld [vmem:[%s11062_s6 + $0x68] sm:$0xff]   ;;  %6434 = vmatprep.subr.bf16.mxu0 %v11101_v16 }
 0x3ef   : > { %3935 = vmatprep.mubr.bf16.mxu1 %v11329_v36 }
 0x3f1   : > { %6435 = vmatpush3.bf16.msra.mxu0 %v6958_v57 }
 0x3f2   : > { %6436 = vmatprep.subr.bf16.mxu0 %v11101_v16 }
 0x3f5   : > { %6437 = vmatpush3.bf16.msra.mxu0 %v6960_v38 }
 0x3f6   : > { %3936 = vmatmul.mubr.bf16.gmra.mxu1 %v9305_v58  ;;  %6438 = vmatprep.subr.bf16.mxu0 %v11101_v16 }
 0x3f7   : > { %3945 = vmatprep.mubr.bf16.mxu1 %v11329_v36 }
 0x3f9   : > { %6439 = vmatpush3.bf16.msra.mxu0 %v6962_v25 }
 0x3fa   : > { %6440 = vmatprep.subr.bf16.mxu0 %v11101_v16 }
 0x3fe   : > { %3946 = vmatmul.mubr.bf16.gmra.mxu1 %v9332_v62 }
 0x3ff   : > { %3955 = vmatprep.mubr.bf16.mxu1 %v11329_v36 }
 0x406   : > { %3956 = vmatmul.mubr.bf16.gmra.mxu1 %v9338_v26  ;;  %v6964_v26 = vld [vmem:[%s11062_s6] sm:$0xff]  }
 0x407   : > { %3965 = vmatprep.mubr.bf16.mxu1 %v11329_v36  ;;  %v6951_v36 = vld [vmem:[%s11062_s6 + $0x70] sm:$0xff]   ;;  %6441 = vmatpush3.bf16.msra.mxu0 %v6964_v26 }
 0x408   : > { %6385 = vmatpush3.bf16.msra.mxu1 %v6951_v36  ;;  %6514 = vmatprep.subr.bf16.mxu0 %v11101_v16 }
 0x409   : > { %6386 = vmatprep.subr.bf16.mxu1 %v11101_v16 }
 0x40c   : > { %6387 = vmatpush3.bf16.msra.mxu1 %v6953_v24 }
 0x40d   : > { %6388 = vmatprep.subr.bf16.mxu1 %v11101_v16 }
 0x40e   : > { %3966 = vmatmul.mubr.bf16.gmra.mxu1 %v9344_v40 }
 0x40f   : > { %6398 = vmatprep.mubr.msk.bf16.mxu1 %vm7086_vm5, %v11101_v16 }
 0x410   : > { %6389 = vmatpush3.bf16.msra.mxu1 %v6955_v2 }
 0x411   : > { %6390 = vmatprep.subr.bf16.mxu1 %v11101_v16 }
 0x414   : > { %6391 = vmatpush3.bf16.msra.mxu1 %v6957_v31 }
 0x415   : > { %6392 = vmatprep.subr.bf16.mxu1 %v11101_v16 }
 0x418   : > { %6393 = vmatpush3.bf16.msra.mxu1 %v6959_v50 }
 0x419   : > { %6394 = vmatprep.subr.bf16.mxu1 %v11101_v16 }
 0x41c   : > { %6395 = vmatpush3.bf16.msra.mxu1 %v6961_v12 }
 0x41d   : > { %6396 = vmatprep.subr.bf16.mxu1 %v11101_v16 }
 0x420   : > { %6397 = vmatpush3.bf16.msra.mxu1 %v6963_v61 }
 0x421   : > { %6470 = vmatprep.subr.bf16.mxu1 %v11101_v16 }
 0x42e   : > { %v9461_v21 = vpop.f32.mrf.mxu1  ;;  %v9463_v14 = vpop.f32.mrf.mxu0 }
 0x42f   : > { %v11103_v43 = vrot.slane %v9461_v21, 1 }
 0x430   : > { %v9471_v46 = vpop.f32.mrf.mxu1  ;;  %v9473_v0 = vpop.f32.mrf.mxu0 }
 0x431   : > { %11330 = vst [vmem:[#allocation44_spill] sm:$0xff] %v9471_v46  ;;  %11331 = vst [vmem:[#allocation39_spill] sm:$0xff] %v9473_v0 }
 0x432   : > { %v3188_v48 = vpop.f32.mrf.mxu1  ;;  %v9477_v10 = vpop.f32.mrf.mxu0 }
 0x433   : > { %v3255_v23 = vrot.slane %v3188_v48, 1 }
 0x434   : > { %v9486_v19 = vpop.f32.mrf.mxu1  ;;  %v9488_v58 = vpop.f32.mrf.mxu0 }
 0x435   : > { %v9494_v3 = vsel %vm947_vm1, %v11103_v43, %v3255_v23  ;;  %v11104_v43 = vrot.slane %v9463_v14, 2 }
 0x436   : > { %v3194_v27 = vpop.f32.mrf.mxu1  ;;  %v9498_v56 = vpop.f32.mrf.mxu0 }
 0x437   : > { %v3257_v22 = vrot.slane %v3194_v27, 1 }
 0x438   : > { %v9506_v28 = vpop.f32.mrf.mxu1  ;;  %v9508_v9 = vpop.f32.mrf.mxu0 }
 0x439   : > { %v9512_v7 = vsel %vm947_vm1, %v3255_v23, %v3257_v22 }
 0x43a   : > { %v3198_v60 = vpop.f32.mrf.mxu1  ;;  %v9516_v29 = vpop.f32.mrf.mxu0 }
 0x43b   : > { %v3259_v62 = vrot.slane %v3198_v60, 1 }
 0x43c   : > { %v9524_v13 = vpop.f32.mrf.mxu1  ;;  %v9526_v15 = vpop.f32.mrf.mxu0 }
 0x43d   : > { %v9530_v6 = vsel %vm947_vm1, %v3257_v22, %v3259_v62 }
 0x43e   : > { %11332 = vst [vmem:[#allocation46_spill] sm:$0xff] %v9530_v6  ;;  %v3204_v33 = vpop.f32.mrf.mxu1  ;;  %v9534_v42 = vpop.f32.mrf.mxu0 }
 0x43f   : > { %v3261_v18 = vrot.slane %v3204_v33, 1 }
 0x440   : > { %v9542_v39 = vpop.f32.mrf.mxu1  ;;  %v9544_v45 = vpop.f32.mrf.mxu0 }
 0x441   : > { %v9548_v30 = vsel %vm947_vm1, %v3259_v62, %v3261_v18 }
 0x442   : > { %v3208_v37 = vpop.f32.mrf.mxu1  ;;  %v9552_v40 = vpop.f32.mrf.mxu0 }
 0x443   : > { %v3263_v1 = vrot.slane %v3208_v37, 1 }
 0x444   : > { %v9558_v32 = vpop.f32.mrf.mxu1  ;;  %v9560_v54 = vpop.f32.mrf.mxu0 }
 0x445   : > { %v9564_v5 = vsel %vm947_vm1, %v3261_v18, %v3263_v1 }
 0x446   : > { %11333 = vst [vmem:[#allocation45_spill] sm:$0xff] %v9564_v5  ;;  %v3214_v55 = vpop.f32.mrf.mxu1  ;;  %v9566_v34 = vpop.f32.mrf.mxu0 }
 0x447   : > { %v3265_v4 = vrot.slane %v3214_v55, 1 }
 0x448   : > { %v9568_v53 = vpop.f32.mrf.mxu1  ;;  %v9570_v59 = vpop.f32.mrf.mxu0 }
 0x449   : > { %v9574_v51 = vsel %vm947_vm1, %v3263_v1, %v3265_v4 }
 0x44a   : > { %v3218_v44 = vpop.f32.mrf.mxu1  ;;  %v9576_v35 = vpop.f32.mrf.mxu0 }
 0x44b   : > { %v3267_v8 = vrot.slane %v3218_v44, 1 }
 0x44c   : > { %v9578_v52 = vpop.f32.mrf.mxu1  ;;  %v9580_v47 = vpop.f32.mrf.mxu0 }
 0x44d   : > { %v9584_v11 = vsel %vm947_vm1, %v3265_v4, %v3267_v8 }
 0x44e   : > { %11334 = vst [vmem:[#allocation47_spill] sm:$0xff] %v9584_v11  ;;  %v3224_v41 = vpop.f32.mrf.mxu1  ;;  %v9586_v36 = vpop.f32.mrf.mxu0 }
 0x44f   : > { %v3269_v49 = vrot.slane %v3224_v41, 1 }
 0x450   : > { %v9588_v24 = vpop.f32.mrf.mxu1  ;;  %v9590_v63 = vpop.f32.mrf.mxu0 }
 0x451   : > { %v9594_v2 = vsel %vm947_vm1, %v3267_v8, %v3269_v49 }
 0x452   : > { %v3228_v20 = vpop.f32.mrf.mxu1  ;;  %v9596_v48 = vpop.f32.mrf.mxu0 }
 0x453   : > { %v3271_v31 = vrot.slane %v3228_v20, 1 }
 0x454   : > { %v9598_v57 = vpop.f32.mrf.mxu1  ;;  %v9600_v23 = vpop.f32.mrf.mxu0 }
 0x455   : > { %v9604_v27 = vsel %vm947_vm1, %v3269_v49, %v3271_v31 }
 0x456   : > { %11335 = vst [vmem:[#allocation15_spill] sm:$0xff] %v9604_v27  ;;  %v3234_v50 = vpop.f32.mrf.mxu1  ;;  %v9606_v38 = vpop.f32.mrf.mxu0 }
 0x457   : > { %v3273_v22 = vrot.slane %v3234_v50, 1  ;;  %v3694_v50 = vrot.slane %v9477_v10, 2  ;;  %v11339_v10 = vrot.slane %v9461_v21, 1 }
 0x458   : > { %v9608_v60 = vpop.f32.mrf.mxu1  ;;  %v9610_v12 = vpop.f32.mrf.mxu0 }
 0x459   : > { %v9614_v25 = vsel %vm947_vm1, %v3271_v31, %v3273_v22 }
 0x45a   : > { %v3238_v62 = vpop.f32.mrf.mxu1  ;;  %v9616_v33 = vpop.f32.mrf.mxu0 }
 0x45b   : > { %v3275_v61 = vrot.slane %v3238_v62, 1 }
 0x45c   : > { %v9618_v26 = vpop.f32.mrf.mxu1  ;;  %v9620_v18 = vpop.f32.mrf.mxu0 }
 0x45d   : > { %v9624_v37 = vsel %vm947_vm1, %v3273_v22, %v3275_v61  ;;  %v3256_v22 = vrot.slane %v9486_v19, 1 }
 0x45e   : > { %11336 = vst [vmem:[#allocation48_spill] sm:$0xff] %v9624_v37  ;;  %v3244_v1 = vpop.f32.mrf.mxu1  ;;  %v9626_v55 = vpop.f32.mrf.mxu0  ;;  %v3695_v37 = vrot.slane %v9488_v58, 2  ;;  %v11341_v58 = vrot.slane %v9471_v46, 1 }
 0x45f   : > { %v3277_v4 = vrot.slane %v3244_v1, 1 }
 0x460   : > { %v9628_v44 = vpop.f32.mrf.mxu1  ;;  %v9630_v8 = vpop.f32.mrf.mxu0 }
 0x461   : > { %v9634_v41 = vsel %vm947_vm1, %v3275_v61, %v3277_v4  ;;  %v3744_v61 = vsel %vm1595_vm2, %v11104_v43, %v3694_v50 }
 0x462   : > { %v3248_v49 = vpop.f32.mrf.mxu1  ;;  %v9636_v20 = vpop.f32.mrf.mxu0 }
 0x463   : > { %v3279_v31 = vrot.slane %v3248_v49, 1 }
 0x464   : > { %v9640_v62 = vpop.f32.mrf.mxu1  ;;  %v9642_v16 = vpop.f32.mrf.mxu0 }
 0x465   : > { %v9646_v1 = vsel %vm947_vm1, %v3277_v4, %v3279_v31  ;;  %v9657_v19 = vsel %vm947_vm1, %v3279_v31, %v11339_v10  ;;  %v11106_v4 = vrot.slane %v9473_v0, 2 }
 0x466   : > { %11337 = vst [vmem:[#allocation12_spill] sm:$0xff] %v9646_v1  ;;  %v3423_v27 = vpop.f32.mrf.mxu1  ;;  %v9651_v49 = vpop.f32.mrf.mxu0  ;;  %11340 = vst [vmem:[#allocation49_spill] sm:$0xff] %v9657_v19  ;;  %v3306_v1 = vsel %vm947_vm1, %v11341_v58, %v3256_v22 }
 0x467   : > { %11338 = vst [vmem:[#allocation18_spill] sm:$0xff] %v9651_v49  ;;  %v3424_v11 = vadd.f32 %v3423_v27, %v9494_v3  ;;  %v3745_v3 = vsel %vm1595_vm2, %v11106_v4, %v3695_v37 }
 0x468   : > { %v3425_v5 = vpop.f32.mrf.mxu1  ;;  %v9669_v21 = vpop.f32.mrf.mxu0 }
 0x469   : > { %11342 = vst [vmem:[#allocation16_spill] sm:$0xff] %v9669_v21  ;;  %v9671_v6 = vadd.f32 %v3744_v61, %v3424_v11  ;;  %v3426_v31 = vadd.f32 %v3425_v5, %v3306_v1 }
 0x46a   : > { %v3427_v27 = vpop.f32.mrf.mxu1  ;;  %v9677_v10 = vpop.f32.mrf.mxu0 }
 0x46b   : > { %11343 = vst [vmem:[#allocation50_spill] sm:$0xff] %v9671_v6  ;;  %v9679_v43 = vadd.f32 %v3745_v3, %v3426_v31  ;;  %v9682_v19 = vadd.f32 %v3427_v27, %v9512_v7 }
 0x46c   : > { %v9684_v58 = vpop.f32.mrf.mxu1  ;;  %v9686_v46 = vpop.f32.mrf.mxu0 }
 0x46d   : > { %11344 = vst [vmem:[#allocation17_spill] sm:$0xff] %v9679_v43  ;;  %11345 = vst [vmem:[#allocation53_spill] sm:$0xff] %v9682_v19 }
 0x46e   : > { %v9688_v11 = vpop.f32.mrf.mxu1  ;;  %v9690_v5 = vpop.f32.mrf.mxu0 }
 0x470   : > { %v9692_v1 = vpop.f32.mrf.mxu1  ;;  %v9694_v61 = vpop.f32.mrf.mxu0 }
 0x471   : > { %11346 = vst [vmem:[#allocation14_spill] sm:$0xff] %v9694_v61 }
 0x472   : > { %v3437_v4 = vpop.f32.mrf.mxu1  ;;  %v9696_v6 = vpop.f32.mrf.mxu0 }
 0x473   : > { %11347 = vst [vmem:[#allocation20_spill] sm:$0xff] %v9696_v6  ;;  %v9699_v31 = vadd.f32 %v3437_v4, %v9548_v30 }
 0x474   : > { %v9701_v7 = vpop.f32.mrf.mxu1  ;;  %v9703_v3 = vpop.f32.mrf.mxu0 }
 0x475   : > { %11348 = vst [vmem:[#allocation51_spill] sm:$0xff] %v9699_v31  ;;  %11349 = vst [vmem:[#allocation54_spill] sm:$0xff] %v9703_v3  ;;  %v3696_v31 = vrot.slane %v9498_v56, 2 }
 0x476   : > { %v9705_v27 = vpop.f32.mrf.mxu1  ;;  %v9707_v43 = vpop.f32.mrf.mxu0 }
 0x477   : > { %11350 = vst [vmem:[#allocation21_spill] sm:$0xff] %v9705_v27  ;;  %11351 = vst [vmem:[#allocation52_spill] sm:$0xff] %v9707_v43  ;;  %v3258_v27 = vrot.slane %v9506_v28, 1 }
 0x478   : > { %v9709_v0 = vpop.f32.mrf.mxu1  ;;  %v9711_v19 = vpop.f32.mrf.mxu0 }
 0x479   : > { %11352 = vst [vmem:[#allocation19_spill] sm:$0xff] %v9709_v0  ;;  %11353 = vst [vmem:[#allocation10_spill] sm:$0xff] %v9711_v19  ;;  %v3697_v0 = vrot.slane %v9508_v9, 2  ;;  %v9739_v56 = vsel %vm947_vm1, %v3256_v22, %v3258_v27  ;;  %v3700_v9 = vrot.slane %v9534_v42, 2  ;;  %v3704_v42 = vrot.slane %v9566_v34, 2 }
 0x47a   : > { %v3447_v21 = vpop.f32.mrf.mxu1  ;;  %v9713_v61 = vpop.f32.mrf.mxu0 }
 0x47b   : > { %11354 = vst [vmem:[#allocation55_spill] sm:$0xff] %v9713_v61  ;;  %v9716_v6 = vadd.f32 %v3447_v21, %v9574_v51  ;;  %v3698_v61 = vrot.slane %v9516_v29, 2  ;;  %v3260_v51 = vrot.slane %v9524_v13, 1  ;;  %v9735_v21 = vsel %vm1595_vm2, %v3694_v50, %v3696_v31 }
 0x47c   : > { %v9718_v30 = vpop.f32.mrf.mxu1  ;;  %v9720_v4 = vpop.f32.mrf.mxu0  ;;  %v3701_v29 = vrot.slane %v9544_v45, 2  ;;  %v3702_v13 = vrot.slane %v9552_v40, 2  ;;  %v3264_v50 = vrot.slane %v9558_v32, 1  ;;  %v9752_v22 = vsel %vm1595_vm2, %v3695_v37, %v3697_v0 }
 0x47d   : > { %11355 = vst [vmem:[#allocation11_spill] sm:$0xff] %v9716_v6  ;;  %v3699_v6 = vrot.slane %v9526_v15, 2  ;;  %v3703_v15 = vrot.slane %v9560_v54, 2  ;;  %v3706_v45 = vrot.slane %v9576_v35, 2  ;;  %v3268_v40 = vrot.slane %v9578_v52, 1 }
 0x47e   : > { %v9724_v3 = vpop.f32.mrf.mxu1  ;;  %v9729_v19 = vpop.f32.mrf.mxu0  ;;  %v3707_v32 = vrot.slane %v9580_v47, 2  ;;  %v9767_v37 = vsel %vm1595_vm2, %v3696_v31, %v3698_v61  ;;  %v9773_v54 = vsel %vm947_vm1, %v3258_v27, %v3260_v51  ;;  %v3708_v35 = vrot.slane %v9586_v36, 2 }
 0x47f   : > { %11356 = vst [vmem:[#allocation23_spill] sm:$0xff] %v9724_v3  ;;  %11358 = vst [vmem:[#allocation56_spill] sm:$0xff] %v9729_v19  ;;  %v9777_v34 = vsel %vm1595_vm2, %v3697_v0, %v3699_v6  ;;  %v9790_v52 = vsel %vm1595_vm2, %v3699_v6, %v3701_v29  ;;  %v9794_v47 = vsel %vm1595_vm2, %v3700_v9, %v3702_v13 }
 0x480   : > { %v9727_v43 = vpop.f32.mrf.mxu1  ;;  %v9804_v31 = vsel %vm1595_vm2, %v3701_v29, %v3703_v15  ;;  %v9808_v36 = vsel %vm1595_vm2, %v3702_v13, %v3704_v42 }
 0x481   : > { %11357 = vst [vmem:[#allocation13_spill] sm:$0xff] %v9727_v43  ;;  %v3262_v43 = vrot.slane %v9542_v39, 1  ;;  %v3266_v39 = vrot.slane %v9568_v53, 1  ;;  %v9781_v53 = vsel %vm1595_vm2, %v3698_v61, %v3700_v9  ;;  %v9823_v9 = vsel %vm1595_vm2, %v3704_v42, %v3706_v45 }
 0x482   : > { %v3457_v28 = vpop.f32.mrf.mxu1  ;;  %11362 = vst [vmem:[#allocation25_spill] sm:$0xff] %v9823_v9  ;;  %v3711_v42 = vrot.slane %v9600_v23, 2  ;;  %v3712_v9 = vrot.slane %v9606_v38, 2  ;;  %v3716_v23 = vrot.slane %v9626_v55, 2  ;;  %v3278_v38 = vrot.slane %v9628_v44, 1 }
 0x483   : > { %v9745_v19 = vadd.f32 %v3457_v28, %v9594_v2  ;;  %v3705_v2 = vrot.slane %v9570_v59, 2  ;;  %v9760_v28 = vpop.f32.mrf.mxu0  ;;  %v9785_v59 = vsel %vm947_vm1, %v3260_v51, %v3262_v43  ;;  %v9798_v0 = vsel %vm947_vm1, %v3262_v43, %v3264_v50 }
 0x484   : > { %v9754_v3 = vpop.f32.mrf.mxu1  ;;  %v9812_v6 = vsel %vm947_vm1, %v3264_v50, %v3266_v39  ;;  %v3270_v51 = vrot.slane %v9588_v24, 1  ;;  %v9827_v29 = vsel %vm947_vm1, %v3266_v39, %v3268_v40  ;;  %v3274_v39 = vrot.slane %v9608_v60, 1 }
 0x485   : > { %11359 = vst [vmem:[#allocation57_spill] sm:$0xff] %v9745_v19  ;;  %v9816_v27 = vsel %vm1595_vm2, %v3703_v15, %v3705_v2  ;;  %v9818_v43 = vpop.f32.mrf.mxu0  ;;  %v9831_v13 = vsel %vm1595_vm2, %v3705_v2, %v3707_v32  ;;  %v3709_v15 = vrot.slane %v9590_v63, 2  ;;  %v9844_v2 = vsel %vm1595_vm2, %v3706_v45, %v3708_v35 }
 0x486   : > { %v9769_v19 = vpop.f32.mrf.mxu1  ;;  %11363 = vst [vmem:[#allocation26_spill] sm:$0xff] %v9831_v13  ;;  %v3713_v63 = vrot.slane %v9610_v12, 2  ;;  %v3717_v60 = vrot.slane %v9630_v8, 2  ;;  %v9859_v45 = vsel %vm947_vm1, %v3268_v40, %v3270_v51  ;;  %v3718_v12 = vrot.slane %v9636_v20, 2 }
 0x487   : > { %11360 = vst [vmem:[#allocation9_spill] sm:$0xff] %v9769_v19  ;;  %v3272_v19 = vrot.slane %v9598_v57, 1  ;;  %v3276_v57 = vrot.slane %v9618_v26, 1  ;;  %v3280_v55 = vrot.slane %v9640_v62, 1  ;;  %v9879_v44 = vsel %vm1595_vm2, %v3709_v15, %v3711_v42 }
 0x488   : > { %v9800_v61 = vpop.f32.mrf.mxu1 }
 0x489   : > { %11361 = vst [vmem:[#allocation22_spill] sm:$0xff] %v9800_v61  ;;  %v3710_v61 = vrot.slane %v9596_v48, 2  ;;  %v3714_v48 = vrot.slane %v9616_v33, 2  ;;  %v9866_v33 = vsel %vm1595_vm2, %v3707_v32, %v3709_v15  ;;  %v9887_v20 = vsel %vm947_vm1, %v3272_v19, %v3274_v39 }
 0x48a   : > { %v3467_v50 = vpop.f32.mrf.mxu1 }
 0x48b   : > { %v9837_v24 = vadd.f32 %v3467_v50, %v9614_v25  ;;  %v3715_v25 = vrot.slane %v9620_v18, 2  ;;  %v9852_v50 = vpop.f32.mrf.mxu0  ;;  %v9870_v26 = vsel %vm1595_vm2, %v3708_v35, %v3710_v61  ;;  %v9874_v18 = vsel %vm947_vm1, %v3270_v51, %v3272_v19 }
 0x48c   : > { %v9846_v13 = vpop.f32.mrf.mxu1  ;;  %v9883_v8 = vsel %vm1595_vm2, %v3710_v61, %v3712_v9  ;;  %v9895_v35 = vsel %vm1595_vm2, %v3711_v42, %v3713_v63  ;;  %v9899_v62 = vsel %vm1595_vm2, %v3712_v9, %v3714_v48  ;;  %v9903_v61 = vsel %vm947_vm1, %v3274_v39, %v3276_v57 }
 0x48d   : > { %11364 = vst [vmem:[#allocation24_spill] sm:$0xff] %v9837_v24  ;;  %v9891_v32 = vpop.f32.mrf.mxu0  ;;  %v9907_v19 = vsel %vm1595_vm2, %v3713_v63, %v3715_v25  ;;  %v3719_v51 = vrot.slane %v9642_v16, 2  ;;  %v9916_v42 = vsel %vm947_vm1, %v3276_v57, %v3278_v38  ;;  %v9920_v9 = vsel %vm1595_vm2, %v3715_v25, %v3717_v60 }
 0x48e   : > { %v9861_v24 = vpop.f32.mrf.mxu1  ;;  %11367 = vst [vmem:[#allocation27_spill] sm:$0xff] %v9920_v9  ;;  %v4262_v39 = vrot.slane %v9677_v10, 4  ;;  %v9928_v16 = vsel %vm1595_vm2, %v3716_v23, %v3718_v12  ;;  %v3430_v25 = vadd.f32 %v9684_v58, %v9739_v56  ;;  %v4263_v9 = vrot.slane %v9686_v46, 4  ;;  %v11375_v58 = vld [vmem:[#allocation16_spill] sm:$0xff] }
 0x48f   : > { %11369 = vst [vmem:[#allocation30_spill] sm:$0xff] %v9928_v16  ;;  %v9950_v16 = vpop.f32.mrf.mxu0  ;;  %v11376_v56 = vld [vmem:[#allocation20_spill] sm:$0xff]  ;;  %v3440_v46 = vadd.f32 %v9701_v7, %v9785_v59 }
 0x490   : > { %v9889_v40 = vpop.f32.mrf.mxu1 }
 0x491   : > { %11365 = vst [vmem:[#allocation58_spill] sm:$0xff] %v9889_v40  ;;  %v9912_v40 = vsel %vm1595_vm2, %v3714_v48, %v3716_v23  ;;  %v11370_v48 = vrot.slane %v9463_v14, 2  ;;  %v11373_v23 = vld [vmem:[#allocation46_spill] sm:$0xff]  ;;  %v4264_v14 = vrot.slane %v9690_v5, 4 }
 0x492   : > { %v3477_v15 = vpop.f32.mrf.mxu1  ;;  %11366 = vst [vmem:[#allocation28_spill] sm:$0xff] %v9912_v40 }
 0x493   : > { %v9924_v63 = vadd.f32 %v3477_v15, %v9634_v41  ;;  %v3746_v40 = vsel %vm1595_vm2, %v3718_v12, %v11370_v48  ;;  %v9942_v41 = vsel %vm947_vm1, %v3278_v38, %v3280_v55  ;;  %v3434_v15 = vadd.f32 %v9688_v11, %v11373_v23  ;;  %v11374_v48 = vld [vmem:[#allocation14_spill] sm:$0xff]  ;;  %v11379_v11 = vld [vmem:[#allocation44_spill] sm:$0xff] }
 0x494   : > { %v9938_v10 = vpop.f32.mrf.mxu1  ;;  %11372 = vst [vmem:[#allocation29_spill] sm:$0xff] %v9942_v41  ;;  %v3436_v12 = vadd.f32 %v9692_v1, %v9773_v54  ;;  %v4265_v57 = vrot.slane %v11374_v48, 4  ;;  %v9958_v38 = vsel %vm1595_vm2, %v3717_v60, %v3719_v51  ;;  %v11380_v23 = vrot.slane %v11379_v11, 1  ;;  %v11381_v1 = vld [vmem:[#allocation53_spill] sm:$0xff]  ;;  %v11383_v60 = vld [vmem:[#allocation39_spill] sm:$0xff] }
 0x495   : > { %11368 = vst [vmem:[#allocation59_spill] sm:$0xff] %v9924_v63  ;;  %11371 = vst [vmem:[#allocation60_spill] sm:$0xff] %v9938_v10  ;;  %v4266_v63 = vrot.slane %v11376_v56, 4  ;;  %v9966_v54 = vadd.f32 %v9735_v21, %v11381_v1  ;;  %v11382_v48 = vrot.slane %v9651_v49, 4  ;;  %v11385_v21 = vrot.slane %v11375_v58, 4  ;;  %v11386_v1 = vld [vmem:[#allocation54_spill] sm:$0xff] }
 0x496   : > { %v9954_v10 = vpop.f32.mrf.mxu1  ;;  %11378 = vst [vmem:[#allocation33_spill] sm:$0xff] %v9958_v38  ;;  %v3308_v5 = vsel %vm947_vm1, %v3280_v55, %v11380_v23  ;;  %v11384_v38 = vrot.slane %v11383_v60, 2  ;;  %v9981_v55 = vadd.f32 %v9752_v22, %v3430_v25  ;;  %v11387_v49 = vld [vmem:[#allocation45_spill] sm:$0xff]  ;;  %v9995_v59 = vadd.f32 %v9767_v37, %v3434_v15  ;;  %v11391_v60 = vld [vmem:[#allocation51_spill] sm:$0xff] }
 0x497   : > { %11377 = vst [vmem:[#allocation31_spill] sm:$0xff] %v9954_v10  ;;  %v9972_v56 = vsel %vm2513_vm4, %v11382_v48, %v4262_v39  ;;  %v9987_v23 = vsel %vm2513_vm4, %v11385_v21, %v4263_v9  ;;  %v4267_v48 = vrot.slane %v11386_v1, 4  ;;  %v11388_v41 = vld [vmem:[#allocation21_spill] sm:$0xff]  ;;  %v9999_v22 = vsel %vm2513_vm4, %v4262_v39, %v4264_v14  ;;  %v11394_v15 = vld [vmem:[#allocation19_spill] sm:$0xff] }
 0x498   : > { %v3747_v11 = vsel %vm1595_vm2, %v3719_v51, %v11384_v38  ;;  %v3444_v10 = vadd.f32 %v11388_v41, %v11387_v49  ;;  %v9992_v7 = vpop.f32.mrf.mxu1  ;;  %v10002_v51 = vadd.f32 %v9777_v34, %v3436_v12  ;;  %v10006_v25 = vsel %vm2513_vm4, %v4263_v9, %v4265_v57  ;;  %v10008_v38 = vpop.f32.mrf.mxu0  ;;  %v11393_v41 = vld [vmem:[#allocation52_spill] sm:$0xff]  ;;  %v11396_v9 = vld [vmem:[#allocation10_spill] sm:$0xff]  ;;  %v11397_v58 = vld [vmem:[#allocation55_spill] sm:$0xff] }
 0x499   : > { %11389 = vst [vmem:[#allocation61_spill] sm:$0xff] %v9992_v7  ;;  %v10012_v49 = vadd.f32 %v9781_v53, %v11391_v60  ;;  %v10016_v37 = vsel %vm2513_vm4, %v4264_v14, %v4266_v63  ;;  %v4268_v39 = vrot.slane %v11393_v41, 4  ;;  %v3446_v34 = vadd.f32 %v11394_v15, %v9798_v0  ;;  %v11400_v15 = vld [vmem:[#allocation23_spill] sm:$0xff] }
 0x49a   : > { %11390 = vst [vmem:[#allocation32_spill] sm:$0xff] %v10002_v51  ;;  %v3487_v12 = vpop.f32.mrf.mxu1  ;;  %v10022_v21 = vadd.f32 %v9790_v52, %v3440_v46  ;;  %v4269_v1 = vrot.slane %v11396_v9, 4  ;;  %v4270_v7 = vrot.slane %v11397_v58, 4  ;;  %v11398_v51 = vld [vmem:[#allocation49_spill] sm:$0xff]  ;;  %v10029_v60 = vsel %vm2513_vm4, %v4265_v57, %v4267_v48  ;;  %v11399_v46 = vld [vmem:[#allocation47_spill] sm:$0xff] }
 0x49b   : > { %11392 = vst [vmem:[#allocation62_spill] sm:$0xff] %v10012_v49  ;;  %v3488_v53 = vadd.f32 %v3487_v12, %v11398_v51  ;;  %v10032_v14 = vadd.f32 %v9794_v47, %v3444_v10  ;;  %v3450_v0 = vadd.f32 %v9718_v30, %v9812_v6  ;;  %v4271_v41 = vrot.slane %v9720_v4, 4  ;;  %v10040_v49 = vpop.f32.mrf.mxu0  ;;  %v11402_v30 = vld [vmem:[#allocation13_spill] sm:$0xff] }
 0x49c   : > { %11395 = vst [vmem:[#allocation35_spill] sm:$0xff] %v10022_v21  ;;  %v3489_v52 = vpop.f32.mrf.mxu1  ;;  %v3454_v9 = vadd.f32 %v11400_v15, %v11399_v46  ;;  %v11401_v21 = vld [vmem:[#allocation56_spill] sm:$0xff]  ;;  %v10046_v47 = vsel %vm2513_vm4, %v4266_v63, %v4268_v39  ;;  %v10049_v10 = vadd.f32 %v9804_v31, %v3446_v34  ;;  %v3456_v4 = vadd.f32 %v11402_v30, %v9827_v29  ;;  %v11410_v15 = vld [vmem:[#allocation22_spill] sm:$0xff] }
 0x49d   : > { %v4272_v58 = vrot.slane %v11401_v21, 4  ;;  %v10042_v51 = vadd.f32 %v3746_v40, %v3488_v53  ;;  %v3490_v57 = vadd.f32 %v3489_v52, %v3308_v5  ;;  %v4273_v6 = vrot.slane %v9760_v28, 4  ;;  %v11403_v40 = vld [vmem:[#allocation11_spill] sm:$0xff]  ;;  %v10092_v46 = vpop.f32.mrf.mxu0 }
 0x49e   : > { %v10054_v12 = vpop.f32.mrf.mxu1  ;;  %v10058_v21 = vsel %vm2513_vm4, %v4267_v48, %v4269_v1  ;;  %v10062_v5 = vadd.f32 %v9808_v36, %v11403_v40  ;;  %v10066_v63 = vsel %vm2513_vm4, %v4268_v39, %v4270_v7  ;;  %v10071_v29 = vadd.f32 %v9816_v27, %v3450_v0  ;;  %v11406_v39 = vld [vmem:[#allocation25_spill] sm:$0xff] }
 0x49f   : > { %v10068_v31 = vadd.f32 %v3747_v11, %v3490_v57  ;;  %v4274_v28 = vrot.slane %v9818_v43, 4  ;;  %v3460_v34 = vadd.f32 %v9754_v3, %v9859_v45  ;;  %v4275_v48 = vrot.slane %v9852_v50, 4  ;;  %v11407_v11 = vld [vmem:[#allocation15_spill] sm:$0xff]  ;;  %v11408_v43 = vld [vmem:[#allocation9_spill] sm:$0xff]  ;;  %v11409_v3 = vld [vmem:[#allocation26_spill] sm:$0xff] }
 0x4a0   : > { %v10077_v53 = vpop.f32.mrf.mxu1  ;;  %v10081_v36 = vsel %vm2513_vm4, %v4269_v1, %v4271_v41  ;;  %v10084_v52 = vadd.f32 %v11406_v39, %v3454_v9  ;;  %v10088_v27 = vsel %vm2513_vm4, %v4270_v7, %v4272_v58  ;;  %v3464_v0 = vadd.f32 %v11408_v43, %v11407_v11  ;;  %v11411_v7 = vld [vmem:[#allocation57_spill] sm:$0xff] }
 0x4a1   : > { %11404 = vst [vmem:[#allocation63_spill] sm:$0xff] %v10068_v31  ;;  %11405 = vst [vmem:[#allocation36_spill] sm:$0xff] %v10077_v53  ;;  %v10095_v50 = vadd.f32 %v11409_v3, %v3456_v4  ;;  %v10099_v45 = vsel %vm2513_vm4, %v4271_v41, %v4273_v6  ;;  %v4276_v1 = vrot.slane %v9891_v32, 4  ;;  %v3466_v9 = vadd.f32 %v11410_v15, %v9874_v18  ;;  %v11416_v31 = vld [vmem:[#allocation58_spill] sm:$0xff] }
 0x4a2   : > { %v3911_v57 = vpop.f32.mrf.mxu1  ;;  %v10106_v30 = vadd.f32 %v9844_v2, %v11411_v7  ;;  %v4277_v40 = vrot.slane %v9950_v16, 4  ;;  %v11111_v39 = vrot.slane %v10054_v12, 3  ;;  %v10112_v11 = vsel %vm2513_vm4, %v4272_v58, %v4274_v28  ;;  %v10125_v16 = vpop.f32.mrf.mxu0 }
 0x4a3   : > { %v3978_v4 = vrot.slane %v3911_v57, 3  ;;  %v10115_v41 = vadd.f32 %v9866_v33, %v3460_v34  ;;  %v10119_v18 = vsel %vm2513_vm4, %v4273_v6, %v4275_v48  ;;  %v4278_v32 = vrot.slane %v10008_v38, 4  ;;  %v11412_v34 = vld [vmem:[#allocation50_spill] sm:$0xff] }
 0x4a4   : > { %v3913_v2 = vpop.f32.mrf.mxu1  ;;  %v10123_v43 = vadd.f32 %v9870_v26, %v3464_v0  ;;  %v11112_v3 = vrot.slane %v10077_v53, 3  ;;  %v10134_v6 = vsel %vm2513_vm4, %v4274_v28, %v4276_v1  ;;  %v10137_v38 = vadd.f32 %v9879_v44, %v3466_v9  ;;  %v11413_v44 = vld [vmem:[#allocation24_spill] sm:$0xff] }
 0x4a5   : > { %v4028_v33 = vsel %vm2054_vm3, %v11111_v39, %v3978_v4  ;;  %v3979_v58 = vrot.slane %v3913_v2, 3  ;;  %v3470_v26 = vadd.f32 %v9846_v13, %v9887_v20  ;;  %v10144_v57 = vsel %vm2513_vm4, %v4275_v48, %v4277_v40  ;;  %v11414_v20 = vld [vmem:[#allocation48_spill] sm:$0xff] }
 0x4a6   : > { %v4032_v0 = vadd.f32 %v4028_v33, %v11412_v34  ;;  %v3917_v15 = vpop.f32.mrf.mxu1  ;;  %v4279_v7 = vrot.slane %v10040_v49, 4  ;;  %v10153_v9 = vadd.f32 %v9883_v8, %v11413_v44  ;;  %v10157_v13 = vsel %vm2513_vm4, %v4276_v1, %v4278_v32  ;;  %v11415_v33 = vld [vmem:[#allocation17_spill] sm:$0xff] }
 0x4a7   : > { %v4029_v28 = vsel %vm2054_vm3, %v11112_v3, %v3979_v58  ;;  %v3980_v2 = vrot.slane %v3917_v15, 3  ;;  %v3474_v48 = vadd.f32 %v9861_v24, %v11414_v20  ;;  %v4280_v39 = vrot.slane %v10092_v46, 4  ;;  %v10165_v15 = vpop.f32.mrf.mxu0 }
 0x4a8   : > { %v4033_v34 = vadd.f32 %v4029_v28, %v11415_v33  ;;  %v3919_v49 = vpop.f32.mrf.mxu1  ;;  %v3476_v3 = vadd.f32 %v11416_v31, %v9903_v61  ;;  %v10170_v1 = vadd.f32 %v9895_v35, %v3470_v26  ;;  %v4316_v53 = vadd.f32 %v9972_v56, %v4032_v0  ;;  %v10183_v31 = vld [vmem:[%s11061_s5] ss:$0 sm:$0xff] }
 0x4a9   : > { %v4026_v8 = vsel %vm2054_vm3, %v3978_v4, %v3980_v2  ;;  %v3981_v44 = vrot.slane %v3919_v49, 3  ;;  %v10177_v46 = vsel %vm2513_vm4, %v4277_v40, %v4279_v7  ;;  %v4281_v61 = vrot.slane %v10125_v16, 4  ;;  %v10199_v33 = vpop.f32.mrf.mxu0 }
 0x4aa   : > { %v4317_v24 = vadd.f32 %v9987_v23, %v4033_v34  ;;  %v4034_v28 = vadd.f32 %v4026_v8, %v9966_v54  ;;  %v3921_v20 = vpop.f32.mrf.mxu1  ;;  %v10188_v23 = vadd.f32 %v9899_v62, %v3474_v48  ;;  %v4282_v54 = vrot.slane %v10165_v15, 4  ;;  %v11418_v8 = vld [vmem:[#allocation59_spill] sm:$0xff] }
 0x4ab   : > { %v4027_v35 = vsel %vm2054_vm3, %v3979_v58, %v3981_v44  ;;  %v3982_v56 = vrot.slane %v3921_v20, 3  ;;  %v10194_v16 = vsel %vm2513_vm4, %v4278_v32, %v4280_v39  ;;  %v10197_v0 = vadd.f32 %v9907_v19, %v3476_v3  ;;  %v11417_v19 = vld [vmem:[#allocation60_spill] sm:$0xff] }
 0x4ac   : > { %v4344_v4 = vmax.f32 %v4316_v53, %v4317_v24  ;;  %v4035_v40 = vadd.f32 %v4027_v35, %v9981_v55  ;;  %v3923_v26 = vpop.f32.mrf.mxu1  ;;  %v4318_v53 = vadd.f32 %v9999_v22, %v4034_v28  ;;  %v10209_v32 = vsel %vm2513_vm4, %v4279_v7, %v4281_v61  ;;  %v11419_v24 = vld [vmem:[#allocation28_spill] sm:$0xff] }
 0x4ad   : > { %v4024_v58 = vsel %vm2054_vm3, %v3980_v2, %v3982_v56  ;;  %v3983_v62 = vrot.slane %v3923_v26, 3  ;;  %v3480_v3 = vadd.f32 %v11417_v19, %v9916_v42  ;;  %v10217_v20 = vadd.f32 %v11419_v24, %v11418_v8  ;;  %v11422_v19 = vld [vmem:[#allocation27_spill] sm:$0xff]  ;;  %v11423_v8 = vld [vmem:[#allocation12_spill] sm:$0xff] }
 0x4ae   : > { %v4365_v48 = vadd.f32 %v10183_v31, %v4344_v4  ;;  %v4319_v55 = vadd.f32 %v10006_v25, %v4035_v40  ;;  %v4036_v34 = vadd.f32 %v4024_v58, %v9995_v59  ;;  %v3927_v49 = vpop.f32.mrf.mxu1  ;;  %v10221_v22 = vsel %vm2513_vm4, %v4280_v39, %v4282_v54  ;;  %v11420_v25 = vld [vmem:[#allocation32_spill] sm:$0xff]  ;;  %v10225_v4 = vpop.f32.mrf.mxu0  ;;  %v11424_v24 = vld [vmem:[#allocation31_spill] sm:$0xff] }
 0x4af   : > { %v4025_v2 = vsel %vm2054_vm3, %v3981_v44, %v3983_v62  ;;  %v3984_v15 = vrot.slane %v3927_v49, 3  ;;  %v11421_v49 = vld [vmem:[#allocation62_spill] sm:$0xff] }
 0x4b0   : > { %v4345_v59 = vmax.f32 %v4318_v53, %v4319_v55  ;;  %v4037_v28 = vadd.f32 %v4025_v2, %v11420_v25  ;;  %v3929_v7 = vpop.f32.mrf.mxu1  ;;  %v4379_v42 = vmax.f32 %v4365_v48, 0.0  ;;  %v4320_v58 = vadd.f32 %v10016_v37, %v4036_v34  ;;  %v11425_v37 = vld [vmem:[#allocation35_spill] sm:$0xff] }
 0x4b1   : > { %v4022_v44 = vsel %vm2054_vm3, %v3982_v56, %v3984_v15  ;;  %v3985_v40 = vrot.slane %v3929_v7, 3  ;;  %v10234_v2 = vadd.f32 %v11422_v19, %v3480_v3  ;;  %v3484_v25 = vadd.f32 %v11424_v24, %v11423_v8  ;;  %v11427_v8 = vld [vmem:[#allocation30_spill] sm:$0xff] }
 0x4b2   : > { %v4366_v26 = vadd.f32 %v10183_v31, %v4345_v59  ;;  %v4321_v39 = vadd.f32 %v10029_v60, %v4037_v28  ;;  %v4038_v53 = vadd.f32 %v4022_v44, %v11421_v49  ;;  %v3931_v55 = vpop.f32.mrf.mxu1  ;;  %v11114_v7 = vrot.slane %v10225_v4, 4 }
 0x4b3   : > { %v4023_v48 = vsel %vm2054_vm3, %v3983_v62, %v3985_v40  ;;  %v3986_v56 = vrot.slane %v3931_v55, 3  ;;  %v11426_v28 = vrot.slane %v10199_v33, 4  ;;  %v10248_v44 = vrot.slane %v4379_v42, 1 }
 0x4b4   : > { %v4380_v59 = vmax.f32 %v4366_v26, 0.0  ;;  %v4346_v35 = vmax.f32 %v4320_v58, %v4321_v39  ;;  %v4039_v34 = vadd.f32 %v4023_v48, %v11425_v37  ;;  %v3933_v60 = vpop.f32.mrf.mxu1  ;;  %v4322_v26 = vadd.f32 %v10046_v47, %v4038_v53 }
 0x4b5   : > { %v10246_v3 = vsel %vm2513_vm4, %v4281_v61, %v11426_v28  ;;  %v4020_v49 = vsel %vm2054_vm3, %v3984_v15, %v3986_v56  ;;  %v3987_v62 = vrot.slane %v3933_v60, 3  ;;  %v10256_v24 = vadd.f32 %v11427_v8, %v3484_v25  ;;  %v10270_v25 = vpop.f32.mrf.mxu0  ;;  %v11428_v28 = vld [vmem:[#allocation29_spill] sm:$0xff] }
 0x4b6   : > { %v4394_v55 = vrot.slane %v4380_v59, 1  ;;  %v4367_v19 = vadd.f32 %v10183_v31, %v4346_v35  ;;  %v4323_v58 = vadd.f32 %v10058_v21, %v4039_v34  ;;  %v3937_v39 = vpop.f32.mrf.mxu1  ;;  %v4040_v61 = vadd.f32 %v4020_v49, %v10032_v14  ;;  %v11429_v49 = vld [vmem:[#allocation61_spill] sm:$0xff] }
 0x4b7   : > { %v4021_v48 = vsel %vm2054_vm3, %v3985_v40, %v3987_v62  ;;  %v3988_v37 = vrot.slane %v3937_v39, 3  ;;  %v10265_v15 = vsel %vm2513_vm4, %v4282_v54, %v11114_v7  ;;  %v3486_v54 = vadd.f32 %v11429_v49, %v11428_v28 }
 0x4b8   : > { %v4419_v47 = vsel %vm947_vm1, %v10248_v44, %v4394_v55  ;;  %v4381_v21 = vmax.f32 %v4367_v19, 0.0  ;;  %v4347_v35 = vmax.f32 %v4322_v26, %v4323_v58  ;;  %v3939_v53 = vpop.f32.mrf.mxu1  ;;  %v4041_v14 = vadd.f32 %v4021_v48, %v10049_v10 }
 0x4b9   : > { %v4018_v40 = vsel %vm2054_vm3, %v3986_v56, %v3988_v37  ;;  %v3989_v34 = vrot.slane %v3939_v53, 3  ;;  %v4421_v60 = vmax.f32 %v4379_v42, %v4419_v47  ;;  %v4324_v58 = vadd.f32 %v10066_v63, %v4040_v61 }
 0x4ba   : > { %v4395_v39 = vrot.slane %v4381_v21, 1  ;;  %v10278_v8 = vadd.f32 %v10183_v31, %v4347_v35  ;;  %v4042_v19 = vadd.f32 %v4018_v40, %v10062_v5  ;;  %v3941_v26 = vpop.f32.mrf.mxu1  ;;  %v4325_v7 = vadd.f32 %v10081_v36, %v4041_v14 }
 0x4bb   : > { %v4019_v10 = vsel %vm2054_vm3, %v3987_v62, %v3989_v34  ;;  %v3990_v56 = vrot.slane %v3941_v26, 3  ;;  %v4285_v42 = vrot.slane %v10270_v25, 4 }
 0x4bc   : > { %v4418_v48 = vsel %vm947_vm1, %v4394_v55, %v4395_v39  ;;  %v4382_v47 = vmax.f32 %v10278_v8, 0.0  ;;  %v4043_v35 = vadd.f32 %v4019_v10, %v10071_v29  ;;  %v3943_v53 = vpop.f32.mrf.mxu1  ;;  %v4348_v5 = vmax.f32 %v4324_v58, %v4325_v7 }
 0x4bd   : > { %v4016_v63 = vsel %vm2054_vm3, %v3988_v37, %v3990_v56  ;;  %v3991_v61 = vrot.slane %v3943_v53, 3  ;;  %v4422_v36 = vmax.f32 %v4380_v59, %v4418_v48  ;;  %v4326_v14 = vadd.f32 %v10088_v27, %v4042_v19  ;;  %v6965_v59 = vld [vmem:[%s11062_s6 + $0xb8] sm:$0xff]  }
 0x4be   : > { %v4396_v62 = vrot.slane %v4382_v47, 1  ;;  %v4327_v40 = vadd.f32 %v10099_v45, %v4043_v35  ;;  %v4044_v55 = vadd.f32 %v4016_v63, %v10084_v52  ;;  %v3947_v28 = vpop.f32.mrf.mxu1  ;;  %v10298_v49 = vadd.f32 %v10183_v31, %v4348_v5  ;;  %v6966_v27 = vld [vmem:[%s11062_s6 + $0xf8] sm:$0xff]  }
 0x4bf   : > { %v4017_v29 = vsel %vm2054_vm3, %v3989_v34, %v3991_v61  ;;  %v3992_v7 = vrot.slane %v3947_v28, 3  ;;  %v10302_v37 = vpack.c.bf16 %v4422_v36, %v4421_v60 }
 0x4c0   : > { %v4349_v45 = vmax.f32 %v4326_v14, %v4327_v40  ;;  %v4328_v52 = vadd.f32 %v10112_v11, %v4044_v55  ;;  %v4045_v19 = vadd.f32 %v4017_v29, %v10095_v50  ;;  %v3949_v26 = vpop.f32.mrf.mxu1  ;;  %v4417_v34 = vsel %vm947_vm1, %v4395_v39, %v4396_v62 }
 0x4c1   : > { %v4383_v60 = vmax.f32 %v10298_v49, 0.0  ;;  %v4014_v58 = vsel %vm2054_vm3, %v3990_v56, %v3992_v7  ;;  %v3993_v10 = vrot.slane %v3949_v26, 3  ;;  %6399 = vmatmul.mubr.bf16.vlgmr.msra.gmra.mxu1 %v10302_v37  ;;  %6443 = vmatmul.mubr.bf16.vlgmr.msra.gmra.mxu0 %v10302_v37  ;;  %v4423_v48 = vmax.f32 %v4381_v21, %v4417_v34  ;;  %v11431_v56 = vld [vmem:[#allocation33_spill] sm:$0xff] }
 0x4c2   : > { %v10320_v35 = vadd.f32 %v10183_v31, %v4349_v45  ;;  %v4329_v50 = vadd.f32 %v10119_v18, %v4045_v19  ;;  %v4046_v11 = vadd.f32 %v4014_v58, %v10106_v30  ;;  %v3951_v53 = vpop.f32.mrf.mxu1  ;;  %v11430_v39 = vmov 0.0   ;;  %6471 = vmatpush3.bf16.msra.mxu1 %v6965_v59  ;;  %6515 = vmatpush3.bf16.msra.mxu0 %v6966_v27  ;;  %v6967_v30 = vld [vmem:[%s11062_s6 + $0xb0] sm:$0xff]  }
 0x4c3   : > { %6402 = vmatprep.mubr.msk.bf16.mxu1 %vm7086_vm5, %v11430_v39  ;;  %6446 = vmatprep.mubr.msk.bf16.mxu0 %vm7086_vm5, %v11430_v39  ;;  %v10329_v5 = vadd.f32 %v11431_v56, %v3486_v54  ;;  %v4397_v21 = vrot.slane %v4383_v60, 1  ;;  %v4015_v63 = vsel %vm2054_vm3, %v3991_v61, %v3993_v10  ;;  %v3994_v36 = vrot.slane %v3951_v53, 3  ;;  %v6968_v18 = vld [vmem:[%s11062_s6 + $0xf0] sm:$0xff]   ;;  %v4255_v61 = vpop.f32.mrf.mxu0 }
 0x4c4   : > { %v11432_v54 = vrot.slane %v10199_v33, 4  ;;  %v4384_v40 = vmax.f32 %v10320_v35, 0.0  ;;  %v4350_v55 = vmax.f32 %v4328_v52, %v4329_v50  ;;  %v4047_v28 = vadd.f32 %v4015_v63, %v10115_v41  ;;  %v3953_v29 = vpop.f32.mrf.mxu1  ;;  %6472 = vmatprep.subr.bf16.mxu1 %v11430_v39  ;;  %6516 = vmatprep.subr.bf16.mxu0 %v11430_v39  ;;  %v6973_v35 = vld [vmem:[%s11062_s6 + $0x98] sm:$0xff]  }
 0x4c5   : > { %v4330_v59 = vadd.f32 %v10134_v6, %v4046_v11  ;;  %v4012_v33 = vsel %vm2054_vm3, %v3992_v7, %v3994_v36  ;;  %v3995_v27 = vrot.slane %v3953_v29, 3  ;;  %v4416_v45 = vsel %vm947_vm1, %v4396_v62, %v4397_v21  ;;  %v10411_v29 = vpop.f32.mrf.mxu0 }
 0x4c6   : > { %v10347_v14 = vsel %vm2513_vm4, %v11432_v54, %v4285_v42  ;;  %v4398_v19 = vrot.slane %v4384_v40, 1  ;;  %v10361_v52 = vadd.f32 %v10183_v31, %v4350_v55  ;;  %v4331_v41 = vadd.f32 %v10144_v57, %v4047_v28  ;;  %v3957_v34 = vpop.f32.mrf.mxu1  ;;  %6473 = vmatpush3.bf16.msra.mxu1 %v6967_v30  ;;  %6517 = vmatpush3.bf16.msra.mxu0 %v6968_v18  ;;  %v11434_v28 = vld [vmem:[#allocation18_spill] sm:$0xff] }
 0x4c7   : > { %v4048_v26 = vadd.f32 %v4012_v33, %v10123_v43  ;;  %v4286_v58 = vrot.slane %v4255_v61, 4  ;;  %v4013_v6 = vsel %vm2054_vm3, %v3993_v10, %v3995_v27  ;;  %v3996_v7 = vrot.slane %v3957_v34, 3  ;;  %6474 = vmatprep.subr.bf16.mxu1 %v11430_v39  ;;  %6518 = vmatprep.subr.bf16.mxu0 %v11430_v39  ;;  %v6972_v34 = vld [vmem:[%s11062_s6 + $0xe0] sm:$0xff]  }
 0x4c8   : > { %v4424_v50 = vmax.f32 %v4382_v47, %v4416_v45  ;;  %v4385_v62 = vmax.f32 %v10361_v52, 0.0  ;;  %v4351_v11 = vmax.f32 %v4330_v59, %v4331_v41  ;;  %v4049_v57 = vadd.f32 %v4013_v6, %v10137_v38  ;;  %v3959_v56 = vpop.f32.mrf.mxu1  ;;  %v6970_v38 = vld [vmem:[%s11062_s6 + $0xe8] sm:$0xff]  }
 0x4c9   : > { %v4332_v53 = vadd.f32 %v10157_v13, %v4048_v26  ;;  %v4010_v43 = vsel %vm2054_vm3, %v3994_v36, %v3996_v7  ;;  %v3997_v10 = vrot.slane %v3959_v56, 3  ;;  %v4415_v47 = vsel %vm947_vm1, %v4397_v21, %v4398_v19  ;;  %v6969_v13 = vld [vmem:[%s11062_s6 + $0xa8] sm:$0xff]  }
 0x4ca   : > { %v10376_v8 = vpack.c.bf16 %v4424_v50, %v4423_v48  ;;  %v4399_v63 = vrot.slane %v4385_v62, 1  ;;  %v10389_v30 = vadd.f32 %v10183_v31, %v4351_v11  ;;  %v4333_v48 = vadd.f32 %v10177_v46, %v4049_v57  ;;  %v3961_v18 = vpop.f32.mrf.mxu1  ;;  %6475 = vmatpush3.bf16.msra.mxu1 %v6969_v13  ;;  %6519 = vmatpush3.bf16.msra.mxu0 %v6970_v38 }
 0x4cb   : > { %v4050_v36 = vadd.f32 %v4010_v43, %v10153_v9  ;;  %v11433_v21 = vrot.slane %v10225_v4, 4  ;;  %v4011_v61 = vsel %vm2054_vm3, %v3995_v27, %v3997_v10  ;;  %v3998_v55 = vrot.slane %v3961_v18, 3  ;;  %6476 = vmatprep.subr.bf16.mxu1 %v11430_v39  ;;  %6520 = vmatprep.subr.bf16.mxu0 %v11430_v39 }
 0x4cc   : > { %6403 = vmatmul.mubr.bf16.gmra.mxu1 %v10376_v8  ;;  %6447 = vmatmul.mubr.bf16.gmra.mxu0 %v10376_v8  ;;  %v4425_v46 = vmax.f32 %v4383_v60, %v4415_v47  ;;  %v11435_v9 = vrot.slane %v11434_v28, 4  ;;  %v4386_v59 = vmax.f32 %v10389_v30, 0.0  ;;  %v4352_v33 = vmax.f32 %v4332_v53, %v4333_v48  ;;  %v3963_v45 = vpop.f32.mrf.mxu1  ;;  %v6977_v30 = vld [vmem:[%s11062_s6 + $0x88] sm:$0xff]  }
 0x4cd   : > { %v10397_v54 = vsel %vm2513_vm4, %v11433_v21, %v4286_v58  ;;  %v4051_v27 = vadd.f32 %v4011_v61, %v10170_v1  ;;  %6406 = vmatprep.mubr.msk.bf16.mxu1 %vm7086_vm5, %v11430_v39  ;;  %6450 = vmatprep.mubr.msk.bf16.mxu0 %vm7086_vm5, %v11430_v39  ;;  %v4334_v49 = vadd.f32 %v10194_v16, %v4050_v36  ;;  %v3999_v41 = vrot.slane %v3963_v45, 3  ;;  %v6971_v1 = vld [vmem:[%s11062_s6 + $0xa0] sm:$0xff]  }
 0x4ce   : > { %v10409_v4 = vsel %vm2513_vm4, %v4286_v58, %v11435_v9  ;;  %v4008_v60 = vsel %vm2054_vm3, %v3996_v7, %v3998_v55  ;;  %v4414_v26 = vsel %vm947_vm1, %v4398_v19, %v4399_v63  ;;  %v4400_v16 = vrot.slane %v4386_v59, 1  ;;  %v3967_v7 = vpop.f32.mrf.mxu1  ;;  %6477 = vmatpush3.bf16.msra.mxu1 %v6971_v1  ;;  %6521 = vmatpush3.bf16.msra.mxu0 %v6972_v34  ;;  %v11439_v34 = vld [vmem:[#allocation16_spill] sm:$0xff] }
 0x4cf   : > { %v10433_v58 = vadd.f32 %v10183_v31, %v4352_v33  ;;  %v4335_v6 = vadd.f32 %v10209_v32, %v4051_v27  ;;  %v4052_v19 = vadd.f32 %v4008_v60, %v10188_v23  ;;  %v4287_v50 = vrot.slane %v10411_v29, 4  ;;  %6478 = vmatprep.subr.bf16.mxu1 %v11430_v39  ;;  %6522 = vmatprep.subr.bf16.mxu0 %v11430_v39 }
 0x4d0   : > { %v4009_v11 = vsel %vm2054_vm3, %v3997_v10, %v3999_v41  ;;  %v4000_v53 = vrot.slane %v3967_v7, 3  ;;  %v4426_v57 = vmax.f32 %v4384_v40, %v4414_v26  ;;  %v3969_v47 = vpop.f32.mrf.mxu1  ;;  %v4413_v10 = vsel %vm947_vm1, %v4399_v63, %v4400_v16  ;;  %v11437_v26 = vld [vmem:[#allocation36_spill] sm:$0xff] }
 0x4d1   : > { %v4387_v56 = vmax.f32 %v10433_v58, 0.0  ;;  %v4353_v43 = vmax.f32 %v4334_v49, %v4335_v6  ;;  %v4336_v32 = vadd.f32 %v10221_v22, %v4052_v19  ;;  %v4053_v23 = vadd.f32 %v4009_v11, %v10197_v0  ;;  %v6974_v0 = vld [vmem:[%s11062_s6 + $0xd8] sm:$0xff]   ;;  %v6976_v49 = vld [vmem:[%s11062_s6 + $0xd0] sm:$0xff]  }
 0x4d2   : > { %v4006_v13 = vsel %vm2054_vm3, %v3998_v55, %v4000_v53  ;;  %v4001_v38 = vrot.slane %v3969_v47, 3  ;;  %v10449_v48 = vpack.c.bf16 %v4426_v57, %v4425_v46  ;;  %v3971_v18 = vpop.f32.mrf.mxu1  ;;  %v4289_v21 = vsel %vm2513_vm4, %v4285_v42, %v4287_v50  ;;  %6479 = vmatpush3.bf16.msra.mxu1 %v6973_v35  ;;  %6523 = vmatpush3.bf16.msra.mxu0 %v6974_v0 }
 0x4d3   : > { %v4401_v22 = vrot.slane %v4387_v56, 1  ;;  %v10462_v40 = vadd.f32 %v10183_v31, %v4353_v43  ;;  %v4337_v36 = vadd.f32 %v10246_v3, %v4053_v23  ;;  %v4054_v63 = vadd.f32 %v4006_v13, %v10217_v20  ;;  %6480 = vmatprep.subr.bf16.mxu1 %v11430_v39  ;;  %6524 = vmatprep.subr.bf16.mxu0 %v11430_v39 }
 0x4d4   : > { %v4007_v61 = vsel %vm2054_vm3, %v3999_v41, %v4001_v38  ;;  %6407 = vmatmul.mubr.bf16.gmra.mxu1 %v10449_v48  ;;  %6451 = vmatmul.mubr.bf16.gmra.mxu0 %v10449_v48  ;;  %v4002_v3 = vrot.slane %v3971_v18, 3  ;;  %v4427_v20 = vmax.f32 %v4385_v62, %v4413_v10  ;;  %v3973_v9 = vpop.f32.mrf.mxu1  ;;  %v11436_v52 = vrot.slane %v10054_v12, 3 }
 0x4d5   : > { %v4388_v55 = vmax.f32 %v10462_v40, 0.0  ;;  %v4354_v46 = vmax.f32 %v4336_v32, %v4337_v36  ;;  %v4338_v28 = vadd.f32 %v10265_v15, %v4054_v63  ;;  %v4055_v25 = vadd.f32 %v4007_v61, %v10234_v2  ;;  %6410 = vmatprep.mubr.msk.bf16.mxu1 %vm7086_vm5, %v11430_v39  ;;  %6454 = vmatprep.mubr.msk.bf16.mxu0 %vm7086_vm5, %v11430_v39  ;;  %v6975_v2 = vld [vmem:[%s11062_s6 + $0x90] sm:$0xff]   ;;  %v6980_v40 = vld [vmem:[%s11062_s6 + $0xc0] sm:$0xff]  }
 0x4d6   : > { %v4004_v42 = vsel %vm2054_vm3, %v4000_v53, %v4002_v3  ;;  %v4030_v62 = vsel %vm2054_vm3, %v4002_v3, %v11436_v52  ;;  %v4003_v29 = vrot.slane %v3973_v9, 3  ;;  %v4412_v15 = vsel %vm947_vm1, %v4400_v16, %v4401_v22  ;;  %v11441_v53 = vld [vmem:[#allocation63_spill] sm:$0xff]  ;;  %6481 = vmatpush3.bf16.msra.mxu1 %v6975_v2  ;;  %6525 = vmatpush3.bf16.msra.mxu0 %v6976_v49 }
 0x4d7   : > { %v4402_v33 = vrot.slane %v4388_v55, 1  ;;  %v4375_v27 = vadd.f32 %v10183_v31, %v4354_v46  ;;  %v4339_v45 = vadd.f32 %v10347_v14, %v4055_v25  ;;  %v4056_v12 = vadd.f32 %v4004_v42, %v10256_v24  ;;  %6482 = vmatprep.subr.bf16.mxu1 %v11430_v39  ;;  %6526 = vmatprep.subr.bf16.mxu0 %v11430_v39  ;;  %v6984_v2 = vld [vmem:[%s11062_s6 + $0x120] sm:$0xff]  }
 0x4d8   : > { %v4058_v60 = vadd.f32 %v4030_v62, %v10042_v51  ;;  %v4005_v41 = vsel %vm2054_vm3, %v4001_v38, %v4003_v29  ;;  %v11438_v1 = vrot.slane %v11437_v26, 3  ;;  %v4428_v24 = vmax.f32 %v4386_v59, %v4412_v15  ;;  %v6983_v15 = vld [vmem:[%s11062_s6 + $0x128] sm:$0xff]  }
 0x4d9   : > { %v11440_v16 = vrot.slane %v11439_v34, 4  ;;  %v4389_v19 = vmax.f32 %v4375_v27, 0.0  ;;  %v4355_v7 = vmax.f32 %v4338_v28, %v4339_v45  ;;  %v4057_v51 = vadd.f32 %v4005_v41, %v10329_v5  ;;  %v6986_v27 = vld [vmem:[%s11062_s6 + $0x110] sm:$0xff]   ;;  %v6987_v45 = vld [vmem:[%s11062_s6 + $0x108] sm:$0xff]  }
 0x4da   : > { %v4031_v14 = vsel %vm2054_vm3, %v4003_v29, %v11438_v1  ;;  %v4340_v11 = vadd.f32 %v10397_v54, %v4056_v12  ;;  %v10520_v43 = vpack.c.bf16 %v4428_v24, %v4427_v20  ;;  %v4411_v32 = vsel %vm947_vm1, %v4401_v22, %v4402_v33  ;;  %v6978_v54 = vld [vmem:[%s11062_s6 + $0xc8] sm:$0xff]   ;;  %6483 = vmatpush3.bf16.msra.mxu1 %v6977_v30  ;;  %v6982_v29 = vld [vmem:[%s11062_s6 + $0x130] sm:$0xff]   ;;  %v6988_v12 = vld [vmem:[%s11062_s6 + $0x100] sm:$0xff]  }
 0x4db   : > { %v4315_v6 = vsel %vm2513_vm4, %v4287_v50, %v11440_v16  ;;  %v4059_v57 = vadd.f32 %v4031_v14, %v11441_v53  ;;  %v4403_v59 = vrot.slane %v4389_v19, 1  ;;  %v4376_v50 = vadd.f32 %v10183_v31, %v4355_v7  ;;  %6527 = vmatpush3.bf16.msra.mxu0 %v6978_v54  ;;  %6484 = vmatprep.subr.bf16.mxu1 %v11430_v39 }
 0x4dc   : > { %v4341_v23 = vadd.f32 %v4289_v21, %v4057_v51  ;;  %v4429_v5 = vmax.f32 %v4387_v56, %v4411_v32  ;;  %v4342_v47 = vadd.f32 %v10409_v4, %v4058_v60  ;;  %6411 = vmatmul.mubr.bf16.gmra.mxu1 %v10520_v43  ;;  %6455 = vmatmul.mubr.bf16.gmra.mxu0 %v10520_v43  ;;  %v6979_v4 = vld [vmem:[%s11062_s6 + $0x80] sm:$0xff]  }
 0x4dd   : > { %v4343_v13 = vadd.f32 %v4315_v6, %v4059_v57  ;;  %v4390_v38 = vmax.f32 %v4376_v50, 0.0  ;;  %6414 = vmatprep.mubr.msk.bf16.mxu1 %vm7086_vm5, %v11430_v39  ;;  %6458 = vmatprep.mubr.msk.bf16.mxu0 %vm7086_vm5, %v11430_v39  ;;  %v4410_v58 = vsel %vm947_vm1, %v4402_v33, %v4403_v59  ;;  %v6985_v33 = vld [vmem:[%s11062_s6 + $0x118] sm:$0xff]  }
 0x4de   : > { %v4356_v10 = vmax.f32 %v4340_v11, %v4341_v23  ;;  %v4430_v35 = vmax.f32 %v4388_v55, %v4410_v58  ;;  %6528 = vmatprep.subr.bf16.mxu0 %v11430_v39  ;;  %6485 = vmatpush3.bf16.msra.mxu1 %v6979_v4 }
 0x4df   : > { %v4357_v56 = vmax.f32 %v4342_v47, %v4343_v13  ;;  %v4404_v0 = vrot.slane %v4390_v38, 1  ;;  %6529 = vmatpush3.bf16.msra.mxu0 %v6980_v40  ;;  %6558 = vmatprep.subr.bf16.mxu1 %v11430_v39 }
 0x4e0   : > { %v4377_v22 = vadd.f32 %v10183_v31, %v4356_v10  ;;  %v10553_v63 = vpack.c.bf16 %v4430_v35, %v4429_v5  ;;  %6602 = vmatprep.subr.bf16.mxu0 %v11430_v39 }
 0x4e1   : > { %v4378_v36 = vadd.f32 %v10183_v31, %v4357_v56  ;;  %v4409_v21 = vsel %vm947_vm1, %v4403_v59, %v4404_v0 }
 0x4e2   : > { %v4391_v18 = vmax.f32 %v4377_v22, 0.0  ;;  %v4431_v3 = vmax.f32 %v4389_v19, %v4409_v21 }
 0x4e3   : > { %v4392_v61 = vmax.f32 %v4378_v36, 0.0 }
 0x4e4   : > { %v4405_v20 = vrot.slane %v4391_v18, 1  ;;  %6415 = vmatmul.mubr.bf16.gmra.mxu1 %v10553_v63  ;;  %6459 = vmatmul.mubr.bf16.gmra.mxu0 %v10553_v63 }
 0x4e5   : > { %v4406_v55 = vrot.slane %v4392_v61, 1  ;;  %6418 = vmatprep.mubr.msk.bf16.mxu1 %vm7086_vm5, %v11430_v39  ;;  %6462 = vmatprep.mubr.msk.bf16.mxu0 %vm7086_vm5, %v11430_v39 }
 0x4e6   : > { %v4408_v31 = vsel %vm947_vm1, %v4404_v0, %v4405_v20 }
 0x4e7   : > { %v4432_v46 = vmax.f32 %v4390_v38, %v4408_v31  ;;  %v4407_v28 = vsel %vm947_vm1, %v4405_v20, %v4406_v55  ;;  %v4420_v25 = vsel %vm947_vm1, %v4406_v55, %v10248_v44  ;;  %v6981_v44 = vld [vmem:[%s11062_s6 + $0x138] sm:$0xff]  }
 0x4e8   : > { %v4433_v9 = vmax.f32 %v4391_v18, %v4407_v28  ;;  %v4434_v42 = vmax.f32 %v4392_v61, %v4420_v25 }
 0x4e9   : > { %v10573_v52 = vpack.c.bf16 %v4432_v46, %v4431_v3 }
 0x4ea   : > { %v10575_v62 = vpack.c.bf16 %v4434_v42, %v4433_v9 }
 0x4ec   : > { %6419 = vmatmul.mubr.bf16.gmra.mxu1 %v10573_v52  ;;  %6463 = vmatmul.mubr.bf16.gmra.mxu0 %v10573_v52 }
 0x4ed   : > { %6422 = vmatprep.mubr.msk.bf16.mxu1 %vm7086_vm5, %v11430_v39  ;;  %6466 = vmatprep.mubr.msk.bf16.mxu0 %vm7086_vm5, %v11430_v39 }
 0x4f4   : > { %6423 = vmatmul.mubr.bf16.gmra.mxu1 %v10575_v62  ;;  %6467 = vmatmul.mubr.bf16.gmra.mxu0 %v10575_v62 }
 0x4f5   : > { %6486 = vmatprep.mubr.msk.bf16.mxu1 %vm7086_vm5, %v11430_v39  ;;  %6530 = vmatprep.mubr.msk.bf16.mxu0 %vm7086_vm5, %v11430_v39 }
 0x4fc   : > { %6487 = vmatmul.mubr.bf16.vlgmr.msra.gmra.mxu1 %v10302_v37  ;;  %6531 = vmatmul.mubr.bf16.vlgmr.msra.gmra.mxu0 %v10302_v37 }
 0x4fd   : > { %6490 = vmatprep.mubr.msk.bf16.mxu1 %vm7086_vm5, %v11430_v39  ;;  %6534 = vmatprep.mubr.msk.bf16.mxu0 %vm7086_vm5, %v11430_v39 }
 0x4fe   : > { %6559 = vmatpush3.bf16.msra.mxu1 %v6981_v44 }
 0x4ff   : > { %6560 = vmatprep.subr.bf16.mxu1 %v11430_v39 }
 0x502   : > { %6561 = vmatpush3.bf16.msra.mxu1 %v6982_v29 }
 0x503   : > { %6562 = vmatprep.subr.bf16.mxu1 %v11430_v39 }
 0x504   : > { %6491 = vmatmul.mubr.bf16.gmra.mxu1 %v10376_v8  ;;  %6535 = vmatmul.mubr.bf16.gmra.mxu0 %v10376_v8 }
 0x505   : > { %6494 = vmatprep.mubr.msk.bf16.mxu1 %vm7086_vm5, %v11430_v39  ;;  %6538 = vmatprep.mubr.msk.bf16.mxu0 %vm7086_vm5, %v11430_v39 }
 0x506   : > { %6563 = vmatpush3.bf16.msra.mxu1 %v6983_v15 }
 0x507   : > { %6564 = vmatprep.subr.bf16.mxu1 %v11430_v39 }
 0x50a   : > { %6565 = vmatpush3.bf16.msra.mxu1 %v6984_v2 }
 0x50b   : > { %6566 = vmatprep.subr.bf16.mxu1 %v11430_v39 }
 0x50c   : > { %6495 = vmatmul.mubr.bf16.gmra.mxu1 %v10449_v48  ;;  %6539 = vmatmul.mubr.bf16.gmra.mxu0 %v10449_v48 }
 0x50d   : > { %6498 = vmatprep.mubr.msk.bf16.mxu1 %vm7086_vm5, %v11430_v39  ;;  %6542 = vmatprep.mubr.msk.bf16.mxu0 %vm7086_vm5, %v11430_v39 }
 0x50e   : > { %6567 = vmatpush3.bf16.msra.mxu1 %v6985_v33 }
 0x50f   : > { %6568 = vmatprep.subr.bf16.mxu1 %v11430_v39 }
 0x512   : > { %6569 = vmatpush3.bf16.msra.mxu1 %v6986_v27 }
 0x513   : > { %6570 = vmatprep.subr.bf16.mxu1 %v11430_v39 }
 0x514   : > { %6499 = vmatmul.mubr.bf16.gmra.mxu1 %v10520_v43  ;;  %6543 = vmatmul.mubr.bf16.gmra.mxu0 %v10520_v43 }
 0x515   : > { %6502 = vmatprep.mubr.msk.bf16.mxu1 %vm7086_vm5, %v11430_v39  ;;  %6546 = vmatprep.mubr.msk.bf16.mxu0 %vm7086_vm5, %v11430_v39 }
 0x516   : > { %6571 = vmatpush3.bf16.msra.mxu1 %v6987_v45 }
 0x517   : > { %6572 = vmatprep.subr.bf16.mxu1 %v11430_v39 }
 0x51a   : > { %6573 = vmatpush3.bf16.msra.mxu1 %v6988_v12 }
 0x51b   : > { %6640 = vmatprep.subr.bf16.mxu1 %v11430_v39 }
 0x51c   : > { %6503 = vmatmul.mubr.bf16.gmra.mxu1 %v10553_v63  ;;  %6547 = vmatmul.mubr.bf16.gmra.mxu0 %v10553_v63 }
 0x51d   : > { %6506 = vmatprep.mubr.msk.bf16.mxu1 %vm7086_vm5, %v11430_v39  ;;  %6550 = vmatprep.mubr.msk.bf16.mxu0 %vm7086_vm5, %v11430_v39 }
 0x524   : > { %6507 = vmatmul.mubr.bf16.gmra.mxu1 %v10573_v52  ;;  %6551 = vmatmul.mubr.bf16.gmra.mxu0 %v10573_v52 }
 0x525   : > { %6510 = vmatprep.mubr.msk.bf16.mxu1 %vm7086_vm5, %v11430_v39  ;;  %6554 = vmatprep.mubr.msk.bf16.mxu0 %vm7086_vm5, %v11430_v39 }
 0x52c   : > { %6511 = vmatmul.mubr.bf16.gmra.mxu1 %v10575_v62  ;;  %6555 = vmatmul.mubr.bf16.gmra.mxu0 %v10575_v62 }
 0x52d   : > { %6574 = vmatprep.mubr.msk.bf16.mxu1 %vm7086_vm5, %v11430_v39  ;;  %6616 = vmatprep.mubr.msk.bf16.mxu0 %vm7086_vm5, %v11430_v39 }
 0x534   : > { %6575 = vmatmul.mubr.bf16.vlgmr.msra.gmra.mxu1 %v10302_v37 }
 0x535   : > { %6578 = vmatprep.mubr.msk.bf16.mxu1 %vm7086_vm5, %v11430_v39 }
 0x53c   : > { %6579 = vmatmul.mubr.bf16.gmra.mxu1 %v10376_v8 }
 0x53d   : > { %6582 = vmatprep.mubr.msk.bf16.mxu1 %vm7086_vm5, %v11430_v39 }
 0x544   : > { %6583 = vmatmul.mubr.bf16.gmra.mxu1 %v10449_v48 }
 0x545   : > { %6586 = vmatprep.mubr.msk.bf16.mxu1 %vm7086_vm5, %v11430_v39 }
 0x54c   : > { %6587 = vmatmul.mubr.bf16.gmra.mxu1 %v10520_v43 }
 0x54d   : > { %6590 = vmatprep.mubr.msk.bf16.mxu1 %vm7086_vm5, %v11430_v39 }
 0x554   : > { %6591 = vmatmul.mubr.bf16.gmra.mxu1 %v10553_v63 }
 0x555   : > { %6594 = vmatprep.mubr.msk.bf16.mxu1 %vm7086_vm5, %v11430_v39 }
 0x55c   : > { %6595 = vmatmul.mubr.bf16.gmra.mxu1 %v10573_v52 }
 0x55d   : > { %6598 = vmatprep.mubr.msk.bf16.mxu1 %vm7086_vm5, %v11430_v39 }
 0x564   : > { %6599 = vmatmul.mubr.bf16.gmra.mxu1 %v10575_v62 }
 0x565   : > { %6656 = vmatprep.mubr.msk.bf16.mxu1 %vm7086_vm5, %v11430_v39 }
 0x581   : > { %v10684_v37 = vpop.f32.mrf.mxu1  ;;  %v4722_v8 = vpop.f32.mrf.mxu0 }
 0x582   : > { %v4612_v26 = vrot.slane %v10684_v37, 2 }
 0x583   : > { %v6400_v48 = vpop.f32.mrf.mxu1  ;;  %v6444_v49 = vpop.f32.mrf.mxu0 }
 0x585   : > { %v4560_v60 = vpop.f32.mrf.mxu1  ;;  %v4725_v41 = vpop.f32.mrf.mxu0 }
 0x586   : > { %v4613_v1 = vrot.slane %v4560_v60, 2 }
 0x587   : > { %v6401_v14 = vpop.f32.mrf.mxu1  ;;  %v6445_v24 = vpop.f32.mrf.mxu0 }
 0x588   : > { %v4638_v34 = vsel %vm1595_vm2, %v4612_v26, %v4613_v1 }
 0x589   : > { %v10691_v16 = vadd.f32 %v4722_v8, %v4638_v34 }
 0x58c   : > { %v4565_v6 = vpop.f32.mrf.mxu1  ;;  %v4730_v19 = vpop.f32.mrf.mxu0 }
 0x58d   : > { %v4614_v7 = vrot.slane %v4565_v6, 2 }
 0x58e   : > { %v6404_v51 = vpop.f32.mrf.mxu1  ;;  %v6448_v11 = vpop.f32.mrf.mxu0 }
 0x58f   : > { %v4637_v53 = vsel %vm1595_vm2, %v4613_v1, %v4614_v7 }
 0x590   : > { %v10695_v57 = vadd.f32 %v4725_v41, %v4637_v53  ;;  %v4568_v43 = vpop.f32.mrf.mxu1  ;;  %v4733_v32 = vpop.f32.mrf.mxu0 }
 0x591   : > { %v4615_v30 = vrot.slane %v4568_v43, 2 }
 0x592   : > { %v6405_v59 = vpop.f32.mrf.mxu1  ;;  %v6449_v50 = vpop.f32.mrf.mxu0 }
 0x593   : > { %v4636_v23 = vsel %vm1595_vm2, %v4614_v7, %v4615_v30 }
 0x594   : > { %v10699_v5 = vadd.f32 %v4730_v19, %v4636_v23  ;;  %v4573_v54 = vpop.f32.mrf.mxu1  ;;  %v4738_v47 = vpop.f32.mrf.mxu0 }
 0x595   : > { %v4616_v13 = vrot.slane %v4573_v54, 2 }
 0x596   : > { %v6408_v38 = vpop.f32.mrf.mxu1  ;;  %v6452_v10 = vpop.f32.mrf.mxu0 }
 0x597   : > { %v4635_v58 = vsel %vm1595_vm2, %v4615_v30, %v4616_v13 }
 0x598   : > { %v10703_v56 = vadd.f32 %v4733_v32, %v4635_v58  ;;  %v4576_v35 = vpop.f32.mrf.mxu1  ;;  %v4741_v4 = vpop.f32.mrf.mxu0 }
 0x599   : > { %v4617_v0 = vrot.slane %v4576_v35, 2 }
 0x59a   : > { %v6409_v22 = vpop.f32.mrf.mxu1  ;;  %v6453_v40 = vpop.f32.mrf.mxu0 }
 0x59b   : > { %v4634_v36 = vsel %vm1595_vm2, %v4616_v13, %v4617_v0 }
 0x59c   : > { %v10707_v63 = vadd.f32 %v4738_v47, %v4634_v36  ;;  %v4581_v18 = vpop.f32.mrf.mxu1  ;;  %v4746_v21 = vpop.f32.mrf.mxu0 }
 0x59d   : > { %v4618_v61 = vrot.slane %v4581_v18, 2 }
 0x59e   : > { %v6412_v3 = vpop.f32.mrf.mxu1  ;;  %v6456_v20 = vpop.f32.mrf.mxu0 }
 0x59f   : > { %v4633_v55 = vsel %vm1595_vm2, %v4617_v0, %v4618_v61 }
 0x5a0   : > { %v10711_v31 = vadd.f32 %v4741_v4, %v4633_v55  ;;  %v4584_v46 = vpop.f32.mrf.mxu1  ;;  %v4749_v28 = vpop.f32.mrf.mxu0 }
 0x5a1   : > { %v4619_v25 = vrot.slane %v4584_v46, 2 }
 0x5a2   : > { %v6413_v9 = vpop.f32.mrf.mxu1  ;;  %v6457_v42 = vpop.f32.mrf.mxu0 }
 0x5a3   : > { %v4632_v52 = vsel %vm1595_vm2, %v4618_v61, %v4619_v25 }
 0x5a4   : > { %v10715_v62 = vadd.f32 %v4746_v21, %v4632_v52  ;;  %v4589_v44 = vpop.f32.mrf.mxu1  ;;  %v4754_v29 = vpop.f32.mrf.mxu0 }
 0x5a5   : > { %v4620_v15 = vrot.slane %v4589_v44, 2 }
 0x5a6   : > { %v6416_v2 = vpop.f32.mrf.mxu1  ;;  %v6460_v33 = vpop.f32.mrf.mxu0 }
 0x5a7   : > { %v4631_v27 = vsel %vm1595_vm2, %v4619_v25, %v4620_v15 }
 0x5a8   : > { %v10719_v45 = vadd.f32 %v4749_v28, %v4631_v27  ;;  %v4592_v12 = vpop.f32.mrf.mxu1  ;;  %v4757_v8 = vpop.f32.mrf.mxu0 }
 0x5a9   : > { %v4621_v48 = vrot.slane %v4592_v12, 2 }
 0x5aa   : > { %v6417_v49 = vpop.f32.mrf.mxu1  ;;  %v6461_v60 = vpop.f32.mrf.mxu0 }
 0x5ab   : > { %v4630_v41 = vsel %vm1595_vm2, %v4620_v15, %v4621_v48 }
 0x5ac   : > { %v10723_v1 = vadd.f32 %v4754_v29, %v4630_v41  ;;  %v4597_v14 = vpop.f32.mrf.mxu1  ;;  %v4762_v24 = vpop.f32.mrf.mxu0 }
 0x5ad   : > { %v4622_v34 = vrot.slane %v4597_v14, 2 }
 0x5ae   : > { %v6420_v6 = vpop.f32.mrf.mxu1  ;;  %v6464_v19 = vpop.f32.mrf.mxu0 }
 0x5af   : > { %v4629_v7 = vsel %vm1595_vm2, %v4621_v48, %v4622_v34 }
 0x5b0   : > { %v10727_v51 = vadd.f32 %v4757_v8, %v4629_v7  ;;  %v4600_v11 = vpop.f32.mrf.mxu1  ;;  %v4765_v53 = vpop.f32.mrf.mxu0 }
 0x5b1   : > { %v4623_v43 = vrot.slane %v4600_v11, 2 }
 0x5b2   : > { %v6421_v32 = vpop.f32.mrf.mxu1  ;;  %v6465_v30 = vpop.f32.mrf.mxu0 }
 0x5b3   : > { %v4628_v59 = vsel %vm1595_vm2, %v4622_v34, %v4623_v43 }
 0x5b4   : > { %v10731_v50 = vadd.f32 %v4762_v24, %v4628_v59  ;;  %v4605_v23 = vpop.f32.mrf.mxu1  ;;  %v4770_v54 = vpop.f32.mrf.mxu0 }
 0x5b5   : > { %v4624_v47 = vrot.slane %v4605_v23, 2 }
 0x5b6   : > { %v6424_v13 = vpop.f32.mrf.mxu1  ;;  %v6468_v38 = vpop.f32.mrf.mxu0 }
 0x5b7   : > { %v4627_v10 = vsel %vm1595_vm2, %v4623_v43, %v4624_v47 }
 0x5b8   : > { %v10735_v58 = vadd.f32 %v4765_v53, %v4627_v10  ;;  %v4608_v35 = vpop.f32.mrf.mxu1  ;;  %v4773_v4 = vpop.f32.mrf.mxu0 }
 0x5b9   : > { %v4625_v0 = vrot.slane %v4608_v35, 2 }
 0x5ba   : > { %v6425_v22 = vpop.f32.mrf.mxu1  ;;  %v6469_v40 = vpop.f32.mrf.mxu0 }
 0x5bb   : > { %v4626_v36 = vsel %vm1595_vm2, %v4624_v47, %v4625_v0  ;;  %v4639_v18 = vsel %vm1595_vm2, %v4625_v0, %v4612_v26 }
 0x5bc   : > { %v10743_v21 = vadd.f32 %v4770_v54, %v4626_v36  ;;  %v10745_v61 = vadd.f32 %v4773_v4, %v4639_v18  ;;  %v10747_v3 = vpop.f32.mrf.mxu1  ;;  %v10749_v20 = vpop.f32.mrf.mxu0 }
 0x5bd   : > { %v4931_v9 = vrot.slane %v10747_v3, 4  ;;  %v5127_v37 = vrot.slane %v10749_v20, 6 }
 0x5be   : > { %v6488_v55 = vpop.f32.mrf.mxu1  ;;  %v6532_v46 = vpop.f32.mrf.mxu0 }
 0x5c0   : > { %v4879_v28 = vpop.f32.mrf.mxu1  ;;  %v5075_v25 = vpop.f32.mrf.mxu0 }
 0x5c1   : > { %v4932_v42 = vrot.slane %v4879_v28, 4  ;;  %v5128_v26 = vrot.slane %v5075_v25, 6 }
 0x5c2   : > { %v6489_v52 = vpop.f32.mrf.mxu1  ;;  %v6533_v44 = vpop.f32.mrf.mxu0 }
 0x5c3   : > { %v4957_v29 = vsel %vm2513_vm4, %v4931_v9, %v4932_v42  ;;  %v5154_v15 = vsel %vm5141_vm6, %v5127_v37, %v5128_v26 }
 0x5c4   : > { %v4884_v2 = vpop.f32.mrf.mxu1  ;;  %v5080_v33 = vpop.f32.mrf.mxu0  ;;  %v4959_v27 = vadd.f32 %v4957_v29, %v10691_v16 }
 0x5c5   : > { %v4933_v12 = vrot.slane %v4884_v2, 4  ;;  %v5129_v8 = vrot.slane %v5080_v33, 6 }
 0x5c6   : > { %v6492_v48 = vpop.f32.mrf.mxu1  ;;  %v6536_v49 = vpop.f32.mrf.mxu0  ;;  %v10763_v60 = vadd.f32 %v5154_v15, %v4959_v27 }
 0x5c7   : > { %v4956_v41 = vsel %vm2513_vm4, %v4932_v42, %v4933_v12  ;;  %v5153_v14 = vsel %vm5141_vm6, %v5128_v26, %v5129_v8 }
 0x5c8   : > { %v4887_v24 = vpop.f32.mrf.mxu1  ;;  %v5083_v34 = vpop.f32.mrf.mxu0  ;;  %v4960_v6 = vadd.f32 %v4956_v41, %v10695_v57 }
 0x5c9   : > { %v4934_v19 = vrot.slane %v4887_v24, 4  ;;  %v5130_v7 = vrot.slane %v5083_v34, 6 }
 0x5ca   : > { %v6493_v11 = vpop.f32.mrf.mxu1  ;;  %v6537_v16 = vpop.f32.mrf.mxu0  ;;  %v10770_v53 = vadd.f32 %v5153_v14, %v4960_v6 }
 0x5cb   : > { %v4955_v43 = vsel %vm2513_vm4, %v4933_v12, %v4934_v19  ;;  %v5152_v32 = vsel %vm5141_vm6, %v5129_v8, %v5130_v7 }
 0x5cc   : > { %v4892_v30 = vpop.f32.mrf.mxu1  ;;  %v5088_v59 = vpop.f32.mrf.mxu0  ;;  %v4961_v23 = vadd.f32 %v4955_v43, %v10699_v5 }
 0x5cd   : > { %v4935_v54 = vrot.slane %v4892_v30, 4  ;;  %v5131_v47 = vrot.slane %v5088_v59, 6 }
 0x5ce   : > { %v6496_v13 = vpop.f32.mrf.mxu1  ;;  %v6540_v57 = vpop.f32.mrf.mxu0  ;;  %v10777_v38 = vadd.f32 %v5152_v32, %v4961_v23 }
 0x5cf   : > { %v4954_v10 = vsel %vm2513_vm4, %v4934_v19, %v4935_v54  ;;  %v5151_v35 = vsel %vm5141_vm6, %v5130_v7, %v5131_v47 }
 0x5d0   : > { %v4895_v4 = vpop.f32.mrf.mxu1  ;;  %v5091_v0 = vpop.f32.mrf.mxu0  ;;  %v4962_v22 = vadd.f32 %v4954_v10, %v10703_v56 }
 0x5d1   : > { %v4936_v40 = vrot.slane %v4895_v4, 4  ;;  %v5132_v36 = vrot.slane %v5091_v0, 6 }
 0x5d2   : > { %v6497_v18 = vpop.f32.mrf.mxu1  ;;  %v6541_v5 = vpop.f32.mrf.mxu0  ;;  %v10784_v55 = vadd.f32 %v5151_v35, %v4962_v22 }
 0x5d3   : > { %v4953_v46 = vsel %vm2513_vm4, %v4935_v54, %v4936_v40  ;;  %v5150_v28 = vsel %vm5141_vm6, %v5131_v47, %v5132_v36 }
 0x5d4   : > { %v4900_v25 = vpop.f32.mrf.mxu1  ;;  %v5096_v42 = vpop.f32.mrf.mxu0  ;;  %v4963_v26 = vadd.f32 %v4953_v46, %v10707_v63 }
 0x5d5   : > { %v4937_v52 = vrot.slane %v4900_v25, 4  ;;  %v5133_v44 = vrot.slane %v5096_v42, 6 }
 0x5d6   : > { %v6500_v29 = vpop.f32.mrf.mxu1  ;;  %v6544_v56 = vpop.f32.mrf.mxu0  ;;  %v10791_v15 = vadd.f32 %v5150_v28, %v4963_v26 }
 0x5d7   : > { %v4952_v2 = vsel %vm2513_vm4, %v4936_v40, %v4937_v52  ;;  %v5149_v33 = vsel %vm5141_vm6, %v5132_v36, %v5133_v44 }
 0x5d8   : > { %v4903_v27 = vpop.f32.mrf.mxu1  ;;  %v5099_v12 = vpop.f32.mrf.mxu0  ;;  %v4964_v8 = vadd.f32 %v4952_v2, %v10711_v31 }
 0x5d9   : > { %v4938_v48 = vrot.slane %v4903_v27, 4  ;;  %v5134_v49 = vrot.slane %v5099_v12, 6 }
 0x5da   : > { %v6501_v41 = vpop.f32.mrf.mxu1  ;;  %v6545_v63 = vpop.f32.mrf.mxu0  ;;  %v10798_v14 = vadd.f32 %v5149_v33, %v4964_v8 }
 0x5db   : > { %v4951_v24 = vsel %vm2513_vm4, %v4937_v52, %v4938_v48  ;;  %v5148_v34 = vsel %vm5141_vm6, %v5133_v44, %v5134_v49 }
 0x5dc   : > { %v4908_v6 = vpop.f32.mrf.mxu1  ;;  %v5104_v19 = vpop.f32.mrf.mxu0  ;;  %v4965_v7 = vadd.f32 %v4951_v24, %v10715_v62 }
 0x5dd   : > { %v4939_v11 = vrot.slane %v4908_v6, 4  ;;  %v5135_v16 = vrot.slane %v5104_v19, 6 }
 0x5de   : > { %v6504_v43 = vpop.f32.mrf.mxu1  ;;  %v6548_v31 = vpop.f32.mrf.mxu0  ;;  %v10805_v32 = vadd.f32 %v5148_v34, %v4965_v7 }
 0x5df   : > { %v4950_v30 = vsel %vm2513_vm4, %v4938_v48, %v4939_v11  ;;  %v5147_v59 = vsel %vm5141_vm6, %v5134_v49, %v5135_v16 }
 0x5e0   : > { %v4911_v23 = vpop.f32.mrf.mxu1  ;;  %v5107_v54 = vpop.f32.mrf.mxu0  ;;  %v4966_v47 = vadd.f32 %v4950_v30, %v10719_v45 }
 0x5e1   : > { %v4940_v13 = vrot.slane %v4911_v23, 4  ;;  %v5136_v57 = vrot.slane %v5107_v54, 6 }
 0x5e2   : > { %v6505_v10 = vpop.f32.mrf.mxu1  ;;  %v6549_v62 = vpop.f32.mrf.mxu0  ;;  %v10812_v35 = vadd.f32 %v5147_v59, %v4966_v47 }
 0x5e3   : > { %v4949_v4 = vsel %vm2513_vm4, %v4939_v11, %v4940_v13  ;;  %v5146_v0 = vsel %vm5141_vm6, %v5135_v16, %v5136_v57 }
 0x5e4   : > { %v4916_v22 = vpop.f32.mrf.mxu1  ;;  %v5112_v40 = vpop.f32.mrf.mxu0  ;;  %v4967_v36 = vadd.f32 %v4949_v4, %v10723_v1 }
 0x5e5   : > { %v4941_v18 = vrot.slane %v4916_v22, 4  ;;  %v5137_v5 = vrot.slane %v5112_v40, 6 }
 0x5e6   : > { %v6508_v46 = vpop.f32.mrf.mxu1  ;;  %v6552_v45 = vpop.f32.mrf.mxu0  ;;  %v10819_v28 = vadd.f32 %v5146_v0, %v4967_v36 }
 0x5e7   : > { %v4948_v25 = vsel %vm2513_vm4, %v4940_v13, %v4941_v18  ;;  %v5145_v42 = vsel %vm5141_vm6, %v5136_v57, %v5137_v5 }
 0x5e8   : > { %v10825_v26 = vpop.f32.mrf.mxu1  ;;  %v10827_v52 = vpop.f32.mrf.mxu0  ;;  %v4968_v44 = vadd.f32 %v4948_v25, %v10727_v51 }
 0x5e9   : > { %v4942_v1 = vrot.slane %v10825_v26, 4  ;;  %v5138_v29 = vrot.slane %v10827_v52, 6 }
 0x5ea   : > { %v6509_v56 = vpop.f32.mrf.mxu1  ;;  %v6553_v2 = vpop.f32.mrf.mxu0  ;;  %v10832_v33 = vadd.f32 %v5145_v42, %v4968_v44 }
 0x5eb   : > { %v4947_v27 = vsel %vm2513_vm4, %v4941_v18, %v4942_v1  ;;  %v5144_v51 = vsel %vm5141_vm6, %v5137_v5, %v5138_v29 }
 0x5ec   : > { %v10838_v12 = vpop.f32.mrf.mxu1  ;;  %v10840_v8 = vpop.f32.mrf.mxu0  ;;  %v4969_v48 = vadd.f32 %v4947_v27, %v10731_v50 }
 0x5ee   : > { %v6512_v49 = vpop.f32.mrf.mxu1  ;;  %v6556_v41 = vpop.f32.mrf.mxu0  ;;  %v10847_v63 = vadd.f32 %v5144_v51, %v4969_v48 }
 0x5f0   : > { %v10849_v24 = vpop.f32.mrf.mxu1  ;;  %v10851_v34 = vpop.f32.mrf.mxu0 }
 0x5f1   : > { %v4944_v6 = vrot.slane %v10849_v24, 4  ;;  %v5140_v19 = vrot.slane %v10851_v34, 6  ;;  %v6989_v34 = vld [vmem:[%s11065_s9 + $0x38] sm:$0xff]  }
 0x5f2   : > { %v6513_v7 = vpop.f32.mrf.mxu1  ;;  %v6557_v11 = vpop.f32.mrf.mxu0 }
 0x5f3   : > { %v4958_v50 = vsel %vm2513_vm4, %v4944_v6, %v4931_v9  ;;  %v5155_v31 = vsel %vm5141_vm6, %v5140_v19, %v5127_v37  ;;  %v10876_v9 = vld [vmem:[%s11063_s7] ss:$0 sm:$0xff] }
 0x5f4   : > { %v4972_v16 = vadd.f32 %v4958_v50, %v10745_v61  ;;  %v10862_v43 = vpop.f32.mrf.mxu1 }
 0x5f6   : > { %v10870_v30 = vadd.f32 %v5155_v31, %v4972_v16  ;;  %v6576_v59 = vpop.f32.mrf.mxu1 }
 0x5f8   : > { %v5272_v3 = vpop.f32.mrf.mxu1  ;;  %v5337_v24 = vadd.f32 %v10862_v43, %v10870_v30 }
 0x5f9   : > { %v5324_v23 = vadd.f32 %v5272_v3, %v10763_v60 }
 0x5fa   : > { %v6577_v61 = vpop.f32.mrf.mxu1 }
 0x5fb   : > { %v5345_v20 = vadd.f32 %v10876_v9, %v5324_v23 }
 0x5fc   : > { %v5277_v54 = vpop.f32.mrf.mxu1 }
 0x5fd   : > { %v5325_v47 = vadd.f32 %v5277_v54, %v10770_v53  ;;  %v5359_v10 = vmax.f32 %v5345_v20, 0.0 }
 0x5fe   : > { %v6580_v13 = vpop.f32.mrf.mxu1 }
 0x5ff   : > { %v5346_v37 = vadd.f32 %v10876_v9, %v5325_v47 }
 0x600   : > { %v5280_v57 = vpop.f32.mrf.mxu1 }
 0x601   : > { %v5360_v62 = vmax.f32 %v5346_v37, 0.0  ;;  %v5326_v4 = vadd.f32 %v5280_v57, %v10777_v38  ;;  %v5139_v57 = vrot.slane %v10840_v8, 6 }
 0x602   : > { %v6581_v60 = vpop.f32.mrf.mxu1 }
 0x603   : > { %v10882_v0 = vpack.c.bf16 %v5360_v62, %v5359_v10  ;;  %v5347_v40 = vadd.f32 %v10876_v9, %v5326_v4  ;;  %v5142_v52 = vsel %vm5141_vm6, %v5139_v57, %v5140_v19  ;;  %v6990_v19 = vld [vmem:[%s11065_s9 + $0x30] sm:$0xff]  }
 0x604   : > { %v5285_v22 = vpop.f32.mrf.mxu1 }
 0x605   : > { %v5327_v36 = vadd.f32 %v5285_v22, %v10784_v55  ;;  %v5361_v46 = vmax.f32 %v5347_v40, 0.0 }
 0x606   : > { %v6584_v18 = vpop.f32.mrf.mxu1 }
 0x607   : > { %v5348_v5 = vadd.f32 %v10876_v9, %v5327_v36 }
 0x608   : > { %v5288_v53 = vpop.f32.mrf.mxu1 }
 0x609   : > { %v5362_v45 = vmax.f32 %v5348_v5, 0.0  ;;  %v5328_v25 = vadd.f32 %v5288_v53, %v10791_v15 }
 0x60a   : > { %v6585_v42 = vpop.f32.mrf.mxu1 }
 0x60b   : > { %v10888_v44 = vpack.c.bf16 %v5362_v45, %v5361_v46  ;;  %v5349_v56 = vadd.f32 %v10876_v9, %v5328_v25  ;;  %v5358_v46 = vadd.f32 %v10876_v9, %v5337_v24 }
 0x60c   : > { %v5293_v38 = vpop.f32.mrf.mxu1 }
 0x60d   : > { %v5329_v2 = vadd.f32 %v5293_v38, %v10798_v14  ;;  %v5363_v51 = vmax.f32 %v5349_v56, 0.0  ;;  %v4943_v14 = vrot.slane %v10838_v12, 4  ;;  %v5372_v38 = vmax.f32 %v5358_v46, 0.0 }
 0x60e   : > { %v6588_v27 = vpop.f32.mrf.mxu1 }
 0x60f   : > { %v5350_v48 = vadd.f32 %v10876_v9, %v5329_v2  ;;  %v6994_v27 = vld [vmem:[%s11065_s9 + $0x10] sm:$0xff]  }
 0x610   : > { %v5296_v55 = vpop.f32.mrf.mxu1 }
 0x611   : > { %v5364_v49 = vmax.f32 %v5350_v48, 0.0  ;;  %v5330_v41 = vadd.f32 %v5296_v55, %v10805_v32  ;;  %v4946_v32 = vsel %vm2513_vm4, %v4942_v1, %v4943_v14  ;;  %v6995_v48 = vld [vmem:[%s11065_s9 + $0x8] sm:$0xff]   ;;  %v6996_v55 = vld [vmem:[%s11065_s9] sm:$0xff]  }
 0x612   : > { %v6589_v7 = vpop.f32.mrf.mxu1  ;;  %v4970_v62 = vadd.f32 %v4946_v32, %v10735_v58 }
 0x613   : > { %v5376_v11 = vpack.c.bf16 %v5364_v49, %v5363_v51  ;;  %v5351_v15 = vadd.f32 %v10876_v9, %v5330_v41  ;;  %v6997_v51 = vld [vmem:[%s11067_s11 + $0x38] sm:$0xff]   ;;  %v6998_v49 = vld [vmem:[%s11067_s11 + $0x30] sm:$0xff]   ;;  %v6999_v41 = vld [vmem:[%s11067_s11 + $0x28] sm:$0xff]  }
 0x614   : > { %v5301_v50 = vpop.f32.mrf.mxu1  ;;  %6641 = vmatpush3.bf16.msra.mxu1 %v6997_v51  ;;  %v7000_v7 = vld [vmem:[%s11067_s11 + $0x20] sm:$0xff]  }
 0x615   : > { %v5331_v16 = vadd.f32 %v5301_v50, %v10812_v35  ;;  %v5365_v23 = vmax.f32 %v5351_v15, 0.0  ;;  %6642 = vmatprep.subr.bf16.mxu1 %v11430_v39  ;;  %v7002_v50 = vld [vmem:[%s11067_s11 + $0x10] sm:$0xff]   ;;  %v7003_v15 = vld [vmem:[%s11067_s11 + $0x8] sm:$0xff]  }
 0x616   : > { %v6592_v31 = vpop.f32.mrf.mxu1 }
 0x617   : > { %v5352_v59 = vadd.f32 %v10876_v9, %v5331_v16 }
 0x618   : > { %v5304_v3 = vpop.f32.mrf.mxu1  ;;  %6643 = vmatpush3.bf16.msra.mxu1 %v6998_v49 }
 0x619   : > { %v5366_v61 = vmax.f32 %v5352_v59, 0.0  ;;  %v5332_v54 = vadd.f32 %v5304_v3, %v10819_v28  ;;  %v4945_v28 = vsel %vm2513_vm4, %v4943_v14, %v4944_v6  ;;  %6644 = vmatprep.subr.bf16.mxu1 %v11430_v39 }
 0x61a   : > { %v6593_v20 = vpop.f32.mrf.mxu1  ;;  %v4971_v58 = vadd.f32 %v4945_v28, %v10743_v21 }
 0x61b   : > { %v5377_v47 = vpack.c.bf16 %v5366_v61, %v5365_v23  ;;  %v5353_v35 = vadd.f32 %v10876_v9, %v5332_v54  ;;  %v7004_v23 = vld [vmem:[%s11067_s11] sm:$0xff]  }
 0x61c   : > { %v5309_v13 = vpop.f32.mrf.mxu1  ;;  %6645 = vmatpush3.bf16.msra.mxu1 %v6999_v41  ;;  %v6201_v61 = vld [vmem:[%s11066_s10] ss:$0 sm:$0xff] }
 0x61d   : > { %v5333_v37 = vadd.f32 %v5309_v13, %v10832_v33  ;;  %v5367_v4 = vmax.f32 %v5353_v35, 0.0  ;;  %v5143_v33 = vsel %vm5141_vm6, %v5138_v29, %v5139_v57  ;;  %v5168_v29 = vadd.f32 %v5142_v52, %v4971_v58  ;;  %6646 = vmatprep.subr.bf16.mxu1 %v11430_v39 }
 0x61e   : > { %v6596_v12 = vpop.f32.mrf.mxu1  ;;  %v5167_v40 = vadd.f32 %v5143_v33, %v4970_v62 }
 0x61f   : > { %v5354_v10 = vadd.f32 %v10876_v9, %v5333_v37  ;;  %v6210_v37 = vld [vmem:[%s11068_s12] ss:$0 sm:$0xff] }
 0x620   : > { %v5312_v26 = vpop.f32.mrf.mxu1  ;;  %6647 = vmatpush3.bf16.msra.mxu1 %v7000_v7 }
 0x621   : > { %v5368_v1 = vmax.f32 %v5354_v10, 0.0  ;;  %v5334_v60 = vadd.f32 %v5312_v26, %v10847_v63  ;;  %6648 = vmatprep.subr.bf16.mxu1 %v11430_v39 }
 0x622   : > { %v6597_v22 = vpop.f32.mrf.mxu1 }
 0x623   : > { %v5378_v8 = vpack.c.bf16 %v5368_v1, %v5367_v4  ;;  %v5355_v6 = vadd.f32 %v10876_v9, %v5334_v60 }
 0x624   : > { %v5317_v36 = vpop.f32.mrf.mxu1 }
 0x625   : > { %v5335_v18 = vadd.f32 %v5317_v36, %v5167_v40  ;;  %v5369_v21 = vmax.f32 %v5355_v6, 0.0 }
 0x626   : > { %v6600_v5 = vpop.f32.mrf.mxu1 }
 0x627   : > { %v5356_v63 = vadd.f32 %v10876_v9, %v5335_v18 }
 0x628   : > { %v5320_v53 = vpop.f32.mrf.mxu1 }
 0x629   : > { %v5370_v45 = vmax.f32 %v5356_v63, 0.0  ;;  %v5336_v25 = vadd.f32 %v5320_v53, %v5168_v29 }
 0x62a   : > { %v6601_v42 = vpop.f32.mrf.mxu1 }
 0x62b   : > { %v5379_v43 = vpack.c.bf16 %v5370_v45, %v5369_v21  ;;  %v5357_v30 = vadd.f32 %v10876_v9, %v5336_v25  ;;  %v6991_v9 = vld [vmem:[%s11065_s9 + $0x28] sm:$0xff]  }
 0x62d   : > { %v5371_v56 = vmax.f32 %v5357_v30, 0.0 }
 0x62f   : > { %v5380_v2 = vpack.c.bf16 %v5372_v38, %v5371_v56 }
 0x631   : > { %6603 = vmatpush3.bf16.msra.mxu0 %v5380_v2 }
 0x632   : > { %6604 = vmatprep.subr.bf16.mxu0 %v11430_v39 }
 0x635   : > { %6605 = vmatpush3.bf16.msra.mxu0 %v5379_v43 }
 0x636   : > { %6606 = vmatprep.subr.bf16.mxu0 %v11430_v39 }
 0x639   : > { %6607 = vmatpush3.bf16.msra.mxu0 %v5378_v8 }
 0x63a   : > { %6608 = vmatprep.subr.bf16.mxu0 %v11430_v39 }
 0x63d   : > { %6609 = vmatpush3.bf16.msra.mxu0 %v5377_v47 }
 0x63e   : > { %6610 = vmatprep.subr.bf16.mxu0 %v11430_v39 }
 0x641   : > { %6611 = vmatpush3.bf16.msra.mxu0 %v5376_v11  ;;  %v7001_v11 = vld [vmem:[%s11067_s11 + $0x18] sm:$0xff]  }
 0x642   : > { %6612 = vmatprep.subr.bf16.mxu0 %v11430_v39  ;;  %6649 = vmatpush3.bf16.msra.mxu1 %v7001_v11 }
 0x643   : > { %6650 = vmatprep.subr.bf16.mxu1 %v11430_v39 }
 0x645   : > { %6613 = vmatpush3.bf16.msra.mxu0 %v10888_v44  ;;  %v6993_v44 = vld [vmem:[%s11065_s9 + $0x18] sm:$0xff]  }
 0x646   : > { %6614 = vmatprep.subr.bf16.mxu0 %v11430_v39  ;;  %6651 = vmatpush3.bf16.msra.mxu1 %v7002_v50 }
 0x647   : > { %6652 = vmatprep.subr.bf16.mxu1 %v11430_v39 }
 0x649   : > { %6615 = vmatpush3.bf16.msra.mxu0 %v10882_v0  ;;  %v6992_v0 = vld [vmem:[%s11065_s9 + $0x20] sm:$0xff]  }
 0x64a   : > { %6620 = vmatprep.subr.bf16.mxu0 %v11430_v39  ;;  %6653 = vmatpush3.bf16.msra.mxu1 %v7003_v15 }
 0x64b   : > { %6654 = vmatprep.subr.bf16.mxu1 %v11430_v39 }
 0x64c   : > { %6617 = vmatmul.mubr.msk.bf16.vlgmr.msra.gmra.mxu0 %vm5381_vm7, %v5373_v17 }
 0x64d   : > { %6621 = vmatpush3.bf16.msra.mxu0 %v6989_v34  ;;  %6636 = vmatprep.mubr.msk.bf16.mxu0 %vm7086_vm5, %v11430_v39 }
 0x64e   : > { %6622 = vmatprep.subr.bf16.mxu0 %v11430_v39  ;;  %6655 = vmatpush3.bf16.msra.mxu1 %v7004_v23 }
 0x651   : > { %6623 = vmatpush3.bf16.msra.mxu0 %v6990_v19 }
 0x652   : > { %6624 = vmatprep.subr.bf16.mxu0 %v11430_v39 }
 0x655   : > { %6625 = vmatpush3.bf16.msra.mxu0 %v6991_v9 }
 0x656   : > { %6626 = vmatprep.subr.bf16.mxu0 %v11430_v39 }
 0x659   : > { %6627 = vmatpush3.bf16.msra.mxu0 %v6992_v0 }
 0x65a   : > { %6628 = vmatprep.subr.bf16.mxu0 %v11430_v39 }
 0x65d   : > { %6629 = vmatpush3.bf16.msra.mxu0 %v6993_v44 }
 0x65e   : > { %6630 = vmatprep.subr.bf16.mxu0 %v11430_v39 }
 0x661   : > { %6631 = vmatpush3.bf16.msra.mxu0 %v6994_v27 }
 0x662   : > { %6632 = vmatprep.subr.bf16.mxu0 %v11430_v39 }
 0x665   : > { %6633 = vmatpush3.bf16.msra.mxu0 %v6995_v48 }
 0x666   : > { %6634 = vmatprep.subr.bf16.mxu0 %v11430_v39 }
 0x669   : > { %6635 = vmatpush3.bf16.msra.mxu0 %v6996_v55 }
 0x70c   : > { %v5419_v16 = vpop.f32.mrf.mxu0 }
 0x70d   : > { %v5425_v31 = vpack.c.bf16 %v5419_v16, %v5419_v16 }
 0x70e   : > { %v6618_v59 = vpop.f32.mrf.mxu0 }
 0x70f   : > { %6637 = vmatmul.mubr.bf16.vlgmr.msra.gmra.mxu0 %v5425_v31 }
 0x710   : > { %v5422_v14 = vpop.f32.mrf.mxu0 }
 0x712   : > { %v6619_v3 = vpop.f32.mrf.mxu0 }
 0x7cf   : > { %v5531_v54 = vpop.f32.mrf.mxu0 }
 0x7d0   : > { %v5532_v20 = vadd.f32 %v6201_v61, %v5531_v54 }
 0x7d1   : > { %v6638_v39 = vpop.f32.mrf.mxu0 }
 0x7d2   : > { %v5537_v47 = vmax.f32 %v5532_v20, 0.0 }
 0x7d3   : > { %v5534_v32 = vpop.f32.mrf.mxu0 }
 0x7d4   : > { %v5538_v13 = vpack.c.bf16 %v5537_v47, %v5537_v47 }
 0x7d5   : > { %v6639_v35 = vpop.f32.mrf.mxu0 }
 0x7d6   : > { %6657 = vmatmul.mubr.bf16.vlgmr.msra.gmra.mxu1 %v5538_v13 }
 0x896   : > { %v5644_v57 = vpop.f32.mrf.mxu1 }
 0x897   : > { %v5645_v12 = vadd.f32 %v6210_v37, %v5644_v57 }
 0x898   : > { %v6658_v10 = vpop.f32.mrf.mxu1 }
 0x899   : > { %5650 = vst [vmem:[%s434_s20] sm:$0xff] %v5645_v12 }
 0x89a   : > { %v5647_v62 = vpop.f32.mrf.mxu1 }
 0x89b   : > { %7035 = shalt.err (!%p7032_p3)
}
 0x89c   : > { %s7036_s16 = scalar_lea.hbm %s11015_s24, 128  ;;  %s7040_s20 = scalar_lea.hbm %s11069_s13, 256 }
 0x89d   : > { %p7037_p4 = scmp.ne.s32.totalorder %s11015_s24, %s7036_s16  ;;  %p7041_p9 = scmp.lt.s32.totalorder %s11015_s24, %s11069_s13 }
 0x89e   : > { %p7042_p10 = scmp.lt.s32.totalorder %s7040_s20, %s7036_s16 }
 0x89f   : > { %p7038_p7 = pnand %p7037_p4, %p7196_p5 }
 0x8a0   : > { %p7043_p11 = por %p7042_p10, %p7041_p9 }
 0x8a1   : > { %p7039_p8 = pneg %p7038_p7 }
 0x8a3   : > { %p7044_p12 = pnand %p7043_p11, %p7039_p8 }
 0x8a5   : > { %7047 = shalt.err (!%p7044_p12)
}
 0x8a6   : > { %6660 = dma.vmem_to_hbm [thread:$0]  (%p7196_p5), %s11017_s21, 128, %s11015_s24, %s5652_s14   ;;  %v6659_v28 = vpop.f32.mrf.mxu1 }
 0x8a7 PF: > { %p6666_p13 = scmp.ge.s32.totalorder %s7082_s28, 2  ;;  %s5677_s29 = sand.u32 1, %s7070_s25  }
 0x8a8   : > { %s5678_s15 = scalar_lea.sflag [#allocation3], %s5677_s29 }
 0x8a9   : > { %p6663_p0 = pnand %p6666_p13, %p7200_p6 }
 0x8ab   : > { %p6664_p1 = pneg %p6663_p0 }
 0x8ad   : > { %7065 = dma.done.wait (%p6664_p1), %s5678_s15, 128  }
 0x8ae   : > { %7067 = vsyncadd (%p6664_p1), %s5678_s15, 4294967168  ;;  %s11443_s28 = sld [smem:[#allocation6_spill]]  ;;  %s11446_s25 = smov %s7074_s26 }
 0x8af   : > { %s11444_s19 = sld [smem:[#allocation5_spill]] }
 0x8b0   : > { %s11445_s27 = sld [smem:[#allocation7_spill]] }
 0x8b4   : > { %p23_p2 = scmp.ge.s32.totalorder %s11443_s28, 4  }
 0x8b5   : > { %s11447_s26 = smov %s11444_s19 }
 0x8b6   :  { %25 = sbr.rel (!%p23_p2) target bundleno = 3 (0x3), region = 119 }
 0x8bb   :  { %5683 = vsyncpa [#allocation3], 1 }
 0x8bc   :  { %5685 = vsyncpa [#allocation3 + $0x1], 1 }

</bundles_post_ra>
